<compile_context>
chip_gen: v7x
topology: tpu7x:2x2x1
jax: 0.10.0
libtpu: 0.0.40
codegen_flags: <defaults>
</compile_context>

<pallas_src>
from functools import partial

import jax
import jax.numpy as jnp
import numpy as np
from jax import lax
from jax.experimental import pallas as pl
from jax.experimental.pallas import tpu as pltpu

_PAD = 8  # interior column offset inside the padded scratch (tile-aligned)


# ----------------------------------------------------------------------------
# In-kernel helpers
# ----------------------------------------------------------------------------
def _conv3x3_im2col(xp_ref, w_ref, H, W):
    """3x3 'same' conv as one im2col matmul over a zero-padded VMEM scratch.

    xp_ref: (H+2, W+2*_PAD, C) scratch; interior at [1:H+1, _PAD:_PAD+W, :],
            the 1-pixel halo around the interior reads as zero.
    w_ref : (9*C, Cout) tap-major flattened weights (BN scale pre-folded).
    Returns (H*W, Cout) float32.
    """
    C = xp_ref.shape[-1]
    parts = []
    for dy in range(3):
        for dx in range(3):
            parts.append(xp_ref[dy:dy + H, _PAD - 1 + dx:_PAD - 1 + dx + W, :])
    slab = jnp.concatenate(parts, axis=-1).reshape(H * W, 9 * C)
    return jnp.dot(slab, w_ref[...], preferred_element_type=jnp.float32)


# ----------------------------------------------------------------------------
# Fused kernel: conv1+BN+ReLU -> conv2+BN+ReLU -> SE gate -> 1x1 out conv
# One batch element per grid step; output is lane-dense (NO, H*W).
# ----------------------------------------------------------------------------
def yolo_head_kernel(x_ref, w1_ref, b1_ref, w2_ref, b2_ref,
                     wse1_ref, wse2_ref, woutT_ref, bout_ref,
                     o_ref, xp_ref, h1p_ref, *, H, W):
    C1 = w1_ref.shape[-1]

    # Zero the padded scratches (halo must read as zero).  Done every grid
    # step so the kernel has no cross-iteration scratch dependence (safe under
    # megacore "parallel" splitting of the batch grid axis).
    xp_ref[...] = jnp.zeros_like(xp_ref)
    h1p_ref[...] = jnp.zeros_like(h1p_ref)

    # Tile-aligned interior store of the (unpadded) input block.
    xp_ref[1:H + 1, _PAD:_PAD + W, :] = x_ref[0]

    # conv1 (+ folded BN bias) + ReLU, written into the padded h1 scratch so
    # conv2 gets its halo for free (h1 never touches HBM).
    h1 = jnp.maximum(_conv3x3_im2col(xp_ref, w1_ref, H, W) + b1_ref[...], 0.0)
    h1p_ref[1:H + 1, _PAD:_PAD + W, :] = h1.reshape(H, W, C1)

    # conv2 (+ folded BN bias) + ReLU.
    h2 = jnp.maximum(_conv3x3_im2col(h1p_ref, w2_ref, H, W) + b2_ref[...], 0.0)

    # SE block: global average pool -> FC -> ReLU -> FC -> sigmoid.
    pooled = jnp.mean(h2, axis=0, keepdims=True)                       # (1, C2)
    z = jnp.maximum(jnp.dot(pooled, wse1_ref[...],
                            preferred_element_type=jnp.float32), 0.0)
    gate = jax.nn.sigmoid(jnp.dot(z, wse2_ref[...],
                                  preferred_element_type=jnp.float32))  # (1, C2)

    # Fold the SE gate into the transposed 1x1-conv weights and emit the
    # output lane-dense: out[n, p] = sum_c h2[p, c] * gate[c] * wout[c, n].
    wg = woutT_ref[...] * gate                                         # (NO, C2)
    out_t = lax.dot_general(wg, h2, (((1,), (1,)), ((), ())),
                            preferred_element_type=jnp.float32)        # (NO, HW)
    o_ref[0] = (out_t + bout_ref[...]).astype(o_ref.dtype)


# ----------------------------------------------------------------------------
# Wrapper: weight preprocessing + pallas_call plumbing
# ----------------------------------------------------------------------------
def yolo_head_forward(x_nchw, params):
    """Full fused YOLOHead forward.  Input NCHW (PyTorch), output NCHW."""
    x = jnp.transpose(x_nchw, (0, 2, 3, 1))                   # NCHW -> NHWC
    B, H, W, Cin = x.shape

    # Fold BN scale into the conv weights; flatten the 9 taps into the K dim.
    w1f = (params["w1"] * params["scale1"]).reshape(9 * Cin, -1)
    C1 = w1f.shape[-1]
    w2f = (params["w2"] * params["scale2"]).reshape(9 * C1, -1)
    C2 = w2f.shape[-1]
    wse1, wse2 = params["wse1"], params["wse2"]
    R = wse1.shape[-1]
    woutT = params["wout"].T                                  # (NO, C2)
    NO = woutT.shape[0]
    bout_col = params["bout"].reshape(NO, 1)

    kern = partial(yolo_head_kernel, H=H, W=W)
    out_flat = pl.pallas_call(
        kern,
        out_shape=jax.ShapeDtypeStruct((B, NO, H * W), jnp.float32),
        grid=(B,),
        in_specs=[
            pl.BlockSpec((1, H, W, Cin), lambda b: (b, 0, 0, 0)),
            pl.BlockSpec((9 * Cin, C1), lambda b: (0, 0)),
            pl.BlockSpec((1, C1), lambda b: (0, 0)),
            pl.BlockSpec((9 * C1, C2), lambda b: (0, 0)),
            pl.BlockSpec((1, C2), lambda b: (0, 0)),
            pl.BlockSpec((C2, R), lambda b: (0, 0)),
            pl.BlockSpec((R, C2), lambda b: (0, 0)),
            pl.BlockSpec((NO, C2), lambda b: (0, 0)),
            pl.BlockSpec((NO, 1), lambda b: (0, 0)),
        ],
        out_specs=pl.BlockSpec((1, NO, H * W), lambda b: (b, 0, 0)),
        scratch_shapes=[
            pltpu.VMEM((H + 2, W + 2 * _PAD, Cin), jnp.float32),  # padded x
            pltpu.VMEM((H + 2, W + 2 * _PAD, C1), jnp.float32),   # padded h1
        ],
        compiler_params=pltpu.CompilerParams(dimension_semantics=("parallel",)),
    )(x, w1f, params["bias1"], w2f, params["bias2"], wse1, wse2, woutT, bout_col)

    return out_flat.reshape(B, NO, H, W)                      # NCHW (free reshape)


# ----------------------------------------------------------------------------
# Pure-JAX reference (lax conv) for verification
# ----------------------------------------------------------------------------
def yolo_head_reference(x_nchw, params):
    x = jnp.transpose(x_nchw, (0, 2, 3, 1))

    def conv3x3(x, w_flat):
        Cin, Cout = w_flat.shape[1], w_flat.shape[2]
        w_hwio = w_flat.reshape(3, 3, Cin, Cout)
        return lax.conv_general_dilated(
            x, w_hwio, (1, 1), "SAME",
            dimension_numbers=("NHWC", "HWIO", "NHWC"))

    h1 = jnp.maximum(conv3x3(x, params["w1"]) * params["scale1"] + params["bias1"], 0.0)
    h2 = jnp.maximum(conv3x3(h1, params["w2"]) * params["scale2"] + params["bias2"], 0.0)
    pooled = jnp.mean(h2, axis=(1, 2))                                    # (B, C2)
    z = jnp.maximum(pooled @ params["wse1"], 0.0)
    gate = jax.nn.sigmoid(z @ params["wse2"])                             # (B, C2)
    h2 = h2 * gate[:, None, None, :]
    out = jnp.einsum("bhwc,cn->bhwn", h2, params["wout"]) + params["bout"]
    return jnp.transpose(out, (0, 3, 1, 2))


# ----------------------------------------------------------------------------
# Deterministic parameter construction (mirrors YOLOHead.__init__ shapes)
# ----------------------------------------------------------------------------
def make_params(key, in_channels, num_outputs, reduction=16):
    c1 = in_channels // 2
    c2 = in_channels // 4
    r = c2 // reduction
    eps = 1e-5
    ks = jax.random.split(key, 12)

    def norm(k, shape, s=0.05):
        return jax.random.normal(k, shape, jnp.float32) * s

    # conv1: Conv2d(in, c1, 3) + BN(c1) folded (eval mode)
    w1 = norm(ks[0], (9, in_channels, c1))
    b1_conv = norm(ks[1], (c1,))
    gamma1, beta1 = 1.0 + norm(ks[2], (c1,)), norm(ks[3], (c1,))
    rm1, rv1 = jnp.zeros((c1,)), jnp.ones((c1,))
    scale1 = (gamma1 / jnp.sqrt(rv1 + eps)).reshape(1, c1)
    bias1 = (beta1 + (b1_conv - rm1) * scale1.reshape(-1)).reshape(1, c1)

    # conv2: Conv2d(c1, c2, 3) + BN(c2) folded (eval mode)
    w2 = norm(ks[4], (9, c1, c2))
    b2_conv = norm(ks[5], (c2,))
    gamma2, beta2 = 1.0 + norm(ks[6], (c2,)), norm(ks[7], (c2,))
    rm2, rv2 = jnp.zeros((c2,)), jnp.ones((c2,))
    scale2 = (gamma2 / jnp.sqrt(rv2 + eps)).reshape(1, c2)
    bias2 = (beta2 + (b2_conv - rm2) * scale2.reshape(-1)).reshape(1, c2)

    # SEBlock(c2): Linear(c2, r, bias=False), Linear(r, c2, bias=False)
    wse1 = norm(ks[8], (c2, r), s=0.2)
    wse2 = norm(ks[9], (r, c2), s=0.2)

    # out_conv: Conv2d(c2, num_outputs, 1) -> (c2, num_outputs) matmul + bias
    wout = norm(ks[10], (c2, num_outputs))
    bout = norm(ks[11], (1, num_outputs))

    return dict(w1=w1, scale1=scale1, bias1=bias1,
                w2=w2, scale2=scale2, bias2=bias2,
                wse1=wse1, wse2=wse2, wout=wout, bout=bout)


if __name__ == "__main__":
    # in_channels=128 -> c1=64, c2=32, SE reduction 16 -> r=2 (smallest channel
    # count for which the SEBlock is non-degenerate).
    B, IN_CH, H, W = 2, 128, 16, 16
    NUM_OUTPUTS = 9

    key = jax.random.PRNGKey(0)
    kx, kp = jax.random.split(key)
    x = jax.random.normal(kx, (B, IN_CH, H, W), jnp.float32)   # NCHW (PyTorch layout)
    params = make_params(kp, IN_CH, NUM_OUTPUTS)

    out = jax.block_until_ready(yolo_head_forward(x, params))
    assert out.shape == (B, NUM_OUTPUTS, H, W), out.shape

    ref = jax.block_until_ready(yolo_head_reference(x, params))
    np.testing.assert_allclose(np.asarray(out), np.asarray(ref), rtol=2e-4, atol=2e-4)

    print("KERNEL_OK")
</pallas_src>

<mosaic_0001>
module attributes {stable_mosaic.version = 11 : i64} {
  func.func @yolo_head_kernel(%arg0: i32, %arg1: memref<1x16x16x128xf32, #tpu.memory_space<vmem>>, %arg2: memref<1152x64xf32, #tpu.memory_space<vmem>>, %arg3: memref<1x64xf32, #tpu.memory_space<vmem>>, %arg4: memref<576x32xf32, #tpu.memory_space<vmem>>, %arg5: memref<1x32xf32, #tpu.memory_space<vmem>>, %arg6: memref<32x2xf32, #tpu.memory_space<vmem>>, %arg7: memref<2x32xf32, #tpu.memory_space<vmem>>, %arg8: memref<9x32xf32, #tpu.memory_space<vmem>>, %arg9: memref<9x1xf32, #tpu.memory_space<vmem>>, %arg10: memref<1x9x256xf32, #tpu.memory_space<vmem>>, %arg11: memref<18x32x128xf32, #tpu.memory_space<vmem>>, %arg12: memref<18x32x64xf32, #tpu.memory_space<vmem>>) attributes {dimension_semantics = [#tpu.dimension_semantics<parallel>], iteration_bounds = array<i64: 2>, scalar_prefetch = 0 : i64, scratch_operands = 2 : i64, tpu.core_type = #tpu.core_type<tc>, window_params = [{transform_indices = @transform_0, window_bounds = array<i64: 1, 16, 16, 128>}, {pipeline_mode = #tpu.pipeline_mode<synchronous>, transform_indices = @transform_1, window_bounds = array<i64: 1152, 64>}, {pipeline_mode = #tpu.pipeline_mode<synchronous>, transform_indices = @transform_2, window_bounds = array<i64: 1, 64>}, {pipeline_mode = #tpu.pipeline_mode<synchronous>, transform_indices = @transform_3, window_bounds = array<i64: 576, 32>}, {pipeline_mode = #tpu.pipeline_mode<synchronous>, transform_indices = @transform_4, window_bounds = array<i64: 1, 32>}, {pipeline_mode = #tpu.pipeline_mode<synchronous>, transform_indices = @transform_5, window_bounds = array<i64: 32, 2>}, {pipeline_mode = #tpu.pipeline_mode<synchronous>, transform_indices = @transform_6, window_bounds = array<i64: 2, 32>}, {pipeline_mode = #tpu.pipeline_mode<synchronous>, transform_indices = @transform_7, window_bounds = array<i64: 9, 32>}, {pipeline_mode = #tpu.pipeline_mode<synchronous>, transform_indices = @transform_8, window_bounds = array<i64: 9, 1>}, {transform_indices = @transform_9, window_bounds = array<i64: 1, 9, 256>}]} {
    %cst = arith.constant 0.000000e+00 : f32
    %0 = vector.broadcast %cst : f32 to vector<18x32x128xf32>
    %c0 = arith.constant 0 : index
    %c0_0 = arith.constant 0 : index
    %c0_1 = arith.constant 0 : index
    %1 = vector.load %arg11[%c0, %c0_0, %c0_1] : memref<18x32x128xf32, #tpu.memory_space<vmem>>, vector<18x32x128xf32>
    tpu.vector_store %arg11[%c0, %c0_0, %c0_1], %0 {strides = array<i32>} : memref<18x32x128xf32, #tpu.memory_space<vmem>>, vector<18x32x128xf32>,
    %cst_2 = arith.constant 0.000000e+00 : f32
    %2 = vector.broadcast %cst_2 : f32 to vector<18x32x64xf32>
    %c0_3 = arith.constant 0 : index
    %c0_4 = arith.constant 0 : index
    %c0_5 = arith.constant 0 : index
    %3 = vector.load %arg12[%c0_3, %c0_4, %c0_5] : memref<18x32x64xf32, #tpu.memory_space<vmem>>, vector<18x32x64xf32>
    tpu.vector_store %arg12[%c0_3, %c0_4, %c0_5], %2 {strides = array<i32>} : memref<18x32x64xf32, #tpu.memory_space<vmem>>, vector<18x32x64xf32>,
    %c0_6 = arith.constant 0 : index
    %c0_7 = arith.constant 0 : index
    %c0_8 = arith.constant 0 : index
    %c0_9 = arith.constant 0 : index
    %4 = vector.load %arg1[%c0_6, %c0_7, %c0_8, %c0_9] : memref<1x16x16x128xf32, #tpu.memory_space<vmem>>, vector<1x16x16x128xf32>
    %5 = vector.shape_cast %4 : vector<1x16x16x128xf32> to vector<16x16x128xf32>
    %c1 = arith.constant 1 : index
    %c8 = arith.constant 8 : index
    %c0_10 = arith.constant 0 : index
    %6 = vector.load %arg11[%c1, %c8, %c0_10] : memref<18x32x128xf32, #tpu.memory_space<vmem>>, vector<16x16x128xf32>
    tpu.vector_store %arg11[%c1, %c8, %c0_10], %5 {strides = array<i32>} : memref<18x32x128xf32, #tpu.memory_space<vmem>>, vector<16x16x128xf32>,
    %c0_11 = arith.constant 0 : index
    %c7 = arith.constant 7 : index
    %c0_12 = arith.constant 0 : index
    %7 = vector.load %arg11[%c0_11, %c7, %c0_12] : memref<18x32x128xf32, #tpu.memory_space<vmem>>, vector<16x16x128xf32>
    %c0_13 = arith.constant 0 : index
    %c8_14 = arith.constant 8 : index
    %c0_15 = arith.constant 0 : index
    %8 = vector.load %arg11[%c0_13, %c8_14, %c0_15] : memref<18x32x128xf32, #tpu.memory_space<vmem>>, vector<16x16x128xf32>
    %c0_16 = arith.constant 0 : index
    %c9 = arith.constant 9 : index
    %c0_17 = arith.constant 0 : index
    %9 = vector.load %arg11[%c0_16, %c9, %c0_17] : memref<18x32x128xf32, #tpu.memory_space<vmem>>, vector<16x16x128xf32>
    %c1_18 = arith.constant 1 : index
    %c7_19 = arith.constant 7 : index
    %c0_20 = arith.constant 0 : index
    %10 = vector.load %arg11[%c1_18, %c7_19, %c0_20] : memref<18x32x128xf32, #tpu.memory_space<vmem>>, vector<16x16x128xf32>
    %c1_21 = arith.constant 1 : index
    %c8_22 = arith.constant 8 : index
    %c0_23 = arith.constant 0 : index
    %11 = vector.load %arg11[%c1_21, %c8_22, %c0_23] : memref<18x32x128xf32, #tpu.memory_space<vmem>>, vector<16x16x128xf32>
    %c1_24 = arith.constant 1 : index
    %c9_25 = arith.constant 9 : index
    %c0_26 = arith.constant 0 : index
    %12 = vector.load %arg11[%c1_24, %c9_25, %c0_26] : memref<18x32x128xf32, #tpu.memory_space<vmem>>, vector<16x16x128xf32>
    %c2 = arith.constant 2 : index
    %c7_27 = arith.constant 7 : index
    %c0_28 = arith.constant 0 : index
    %13 = vector.load %arg11[%c2, %c7_27, %c0_28] : memref<18x32x128xf32, #tpu.memory_space<vmem>>, vector<16x16x128xf32>
    %c2_29 = arith.constant 2 : index
    %c8_30 = arith.constant 8 : index
    %c0_31 = arith.constant 0 : index
    %14 = vector.load %arg11[%c2_29, %c8_30, %c0_31] : memref<18x32x128xf32, #tpu.memory_space<vmem>>, vector<16x16x128xf32>
    %c2_32 = arith.constant 2 : index
    %c9_33 = arith.constant 9 : index
    %c0_34 = arith.constant 0 : index
    %15 = vector.load %arg11[%c2_32, %c9_33, %c0_34] : memref<18x32x128xf32, #tpu.memory_space<vmem>>, vector<16x16x128xf32>
    %16 = tpu.concatenate %7, %8, %9, %10, %11, %12, %13, %14, %15 in 2 : vector<16x16x128xf32>, vector<16x16x128xf32>, vector<16x16x128xf32>, vector<16x16x128xf32>, vector<16x16x128xf32>, vector<16x16x128xf32>, vector<16x16x128xf32>, vector<16x16x128xf32>, vector<16x16x128xf32> -> vector<16x16x1152xf32>
    %17 = vector.shape_cast %16 : vector<16x16x1152xf32> to vector<256x1152xf32>
    %c0_35 = arith.constant 0 : index
    %c0_36 = arith.constant 0 : index
    %18 = vector.load %arg2[%c0_35, %c0_36] : memref<1152x64xf32, #tpu.memory_space<vmem>>, vector<1152x64xf32>
    %cst_37 = arith.constant dense<0.000000e+00> : vector<256x64xf32>
    %19 = tpu.matmul %17, %18, %cst_37 {dimension_numbers = #tpu.dot_dimension_numbers<[1], [0], [0], [1], [0, 0, 1, 1], [], []>} : vector<256x1152xf32>, vector<1152x64xf32>, vector<256x64xf32> -> vector<256x64xf32>
    %c0_38 = arith.constant 0 : index
    %c0_39 = arith.constant 0 : index
    %20 = vector.load %arg3[%c0_38, %c0_39] : memref<1x64xf32, #tpu.memory_space<vmem>>, vector<1x64xf32>
    %21 = vector.broadcast %20 : vector<1x64xf32> to vector<256x64xf32>
    %22 = arith.addf %19, %21 : vector<256x64xf32>
    %cst_40 = arith.constant 0.000000e+00 : f32
    %23 = vector.broadcast %cst_40 : f32 to vector<256x64xf32>
    %24 = arith.maximumf %22, %23 : vector<256x64xf32>
    %25 = vector.shape_cast %24 : vector<256x64xf32> to vector<16x16x64xf32>
    %c1_41 = arith.constant 1 : index
    %c8_42 = arith.constant 8 : index
    %c0_43 = arith.constant 0 : index
    %26 = vector.load %arg12[%c1_41, %c8_42, %c0_43] : memref<18x32x64xf32, #tpu.memory_space<vmem>>, vector<16x16x64xf32>
    tpu.vector_store %arg12[%c1_41, %c8_42, %c0_43], %25 {strides = array<i32>} : memref<18x32x64xf32, #tpu.memory_space<vmem>>, vector<16x16x64xf32>,
    %c0_44 = arith.constant 0 : index
    %c7_45 = arith.constant 7 : index
    %c0_46 = arith.constant 0 : index
    %27 = vector.load %arg12[%c0_44, %c7_45, %c0_46] : memref<18x32x64xf32, #tpu.memory_space<vmem>>, vector<16x16x64xf32>
    %c0_47 = arith.constant 0 : index
    %c8_48 = arith.constant 8 : index
    %c0_49 = arith.constant 0 : index
    %28 = vector.load %arg12[%c0_47, %c8_48, %c0_49] : memref<18x32x64xf32, #tpu.memory_space<vmem>>, vector<16x16x64xf32>
    %c0_50 = arith.constant 0 : index
    %c9_51 = arith.constant 9 : index
    %c0_52 = arith.constant 0 : index
    %29 = vector.load %arg12[%c0_50, %c9_51, %c0_52] : memref<18x32x64xf32, #tpu.memory_space<vmem>>, vector<16x16x64xf32>
    %c1_53 = arith.constant 1 : index
    %c7_54 = arith.constant 7 : index
    %c0_55 = arith.constant 0 : index
    %30 = vector.load %arg12[%c1_53, %c7_54, %c0_55] : memref<18x32x64xf32, #tpu.memory_space<vmem>>, vector<16x16x64xf32>
    %c1_56 = arith.constant 1 : index
    %c8_57 = arith.constant 8 : index
    %c0_58 = arith.constant 0 : index
    %31 = vector.load %arg12[%c1_56, %c8_57, %c0_58] : memref<18x32x64xf32, #tpu.memory_space<vmem>>, vector<16x16x64xf32>
    %c1_59 = arith.constant 1 : index
    %c9_60 = arith.constant 9 : index
    %c0_61 = arith.constant 0 : index
    %32 = vector.load %arg12[%c1_59, %c9_60, %c0_61] : memref<18x32x64xf32, #tpu.memory_space<vmem>>, vector<16x16x64xf32>
    %c2_62 = arith.constant 2 : index
    %c7_63 = arith.constant 7 : index
    %c0_64 = arith.constant 0 : index
    %33 = vector.load %arg12[%c2_62, %c7_63, %c0_64] : memref<18x32x64xf32, #tpu.memory_space<vmem>>, vector<16x16x64xf32>
    %c2_65 = arith.constant 2 : index
    %c8_66 = arith.constant 8 : index
    %c0_67 = arith.constant 0 : index
    %34 = vector.load %arg12[%c2_65, %c8_66, %c0_67] : memref<18x32x64xf32, #tpu.memory_space<vmem>>, vector<16x16x64xf32>
    %c2_68 = arith.constant 2 : index
    %c9_69 = arith.constant 9 : index
    %c0_70 = arith.constant 0 : index
    %35 = vector.load %arg12[%c2_68, %c9_69, %c0_70] : memref<18x32x64xf32, #tpu.memory_space<vmem>>, vector<16x16x64xf32>
    %36 = tpu.concatenate %27, %28, %29, %30, %31, %32, %33, %34, %35 in 2 : vector<16x16x64xf32>, vector<16x16x64xf32>, vector<16x16x64xf32>, vector<16x16x64xf32>, vector<16x16x64xf32>, vector<16x16x64xf32>, vector<16x16x64xf32>, vector<16x16x64xf32>, vector<16x16x64xf32> -> vector<16x16x576xf32>
    %37 = vector.shape_cast %36 : vector<16x16x576xf32> to vector<256x576xf32>
    %c0_71 = arith.constant 0 : index
    %c0_72 = arith.constant 0 : index
    %38 = vector.load %arg4[%c0_71, %c0_72] : memref<576x32xf32, #tpu.memory_space<vmem>>, vector<576x32xf32>
    %cst_73 = arith.constant dense<0.000000e+00> : vector<256x32xf32>
    %39 = tpu.matmul %37, %38, %cst_73 {dimension_numbers = #tpu.dot_dimension_numbers<[1], [0], [0], [1], [0, 0, 1, 1], [], []>} : vector<256x576xf32>, vector<576x32xf32>, vector<256x32xf32> -> vector<256x32xf32>
    %c0_74 = arith.constant 0 : index
    %c0_75 = arith.constant 0 : index
    %40 = vector.load %arg5[%c0_74, %c0_75] : memref<1x32xf32, #tpu.memory_space<vmem>>, vector<1x32xf32>
    %41 = vector.broadcast %40 : vector<1x32xf32> to vector<256x32xf32>
    %42 = arith.addf %39, %41 : vector<256x32xf32>
    %cst_76 = arith.constant 0.000000e+00 : f32
    %43 = vector.broadcast %cst_76 : f32 to vector<256x32xf32>
    %44 = arith.maximumf %42, %43 : vector<256x32xf32>
    %cst_77 = arith.constant dense<0.000000e+00> : vector<32xf32>
    %45 = vector.multi_reduction <add>, %44, %cst_77 [0] : vector<256x32xf32> to vector<32xf32>
    %46 = vector.shape_cast %45 : vector<32xf32> to vector<1x32xf32>
    %cst_78 = arith.constant 2.560000e+02 : f32
    %47 = vector.broadcast %cst_78 : f32 to vector<1x32xf32>
    %48 = arith.divf %46, %47 : vector<1x32xf32>
    %c0_79 = arith.constant 0 : index
    %c0_80 = arith.constant 0 : index
    %49 = vector.load %arg6[%c0_79, %c0_80] : memref<32x2xf32, #tpu.memory_space<vmem>>, vector<32x2xf32>
    %cst_81 = arith.constant dense<0.000000e+00> : vector<1x2xf32>
    %50 = tpu.matmul %48, %49, %cst_81 {dimension_numbers = #tpu.dot_dimension_numbers<[1], [0], [0], [1], [0, 0, 1, 1], [], []>} : vector<1x32xf32>, vector<32x2xf32>, vector<1x2xf32> -> vector<1x2xf32>
    %cst_82 = arith.constant 0.000000e+00 : f32
    %51 = vector.broadcast %cst_82 : f32 to vector<1x2xf32>
    %52 = arith.maximumf %50, %51 : vector<1x2xf32>
    %c0_83 = arith.constant 0 : index
    %c0_84 = arith.constant 0 : index
    %53 = vector.load %arg7[%c0_83, %c0_84] : memref<2x32xf32, #tpu.memory_space<vmem>>, vector<2x32xf32>
    %cst_85 = arith.constant dense<0.000000e+00> : vector<1x32xf32>
    %54 = tpu.matmul %52, %53, %cst_85 {dimension_numbers = #tpu.dot_dimension_numbers<[1], [0], [0], [1], [0, 0, 1, 1], [], []>} : vector<1x2xf32>, vector<2x32xf32>, vector<1x32xf32> -> vector<1x32xf32>
    %55 = arith.negf %54 : vector<1x32xf32>
    %56 = math.exp %55 : vector<1x32xf32>
    %cst_86 = arith.constant 1.000000e+00 : f32
    %57 = vector.broadcast %cst_86 : f32 to vector<1x32xf32>
    %58 = arith.addf %57, %56 : vector<1x32xf32>
    %59 = arith.divf %57, %58 : vector<1x32xf32>
    %c0_87 = arith.constant 0 : index
    %c0_88 = arith.constant 0 : index
    %60 = vector.load %arg8[%c0_87, %c0_88] : memref<9x32xf32, #tpu.memory_space<vmem>>, vector<9x32xf32>
    %61 = vector.broadcast %59 : vector<1x32xf32> to vector<9x32xf32>
    %62 = arith.mulf %60, %61 : vector<9x32xf32>
    %cst_89 = arith.constant dense<0.000000e+00> : vector<9x256xf32>
    %63 = tpu.matmul %62, %44, %cst_89 {dimension_numbers = #tpu.dot_dimension_numbers<[1], [1], [0], [0], [0, 0, 1, 0], [], []>} : vector<9x32xf32>, vector<256x32xf32>, vector<9x256xf32> -> vector<9x256xf32>
    %c0_90 = arith.constant 0 : index
    %c0_91 = arith.constant 0 : index
    %64 = vector.load %arg9[%c0_90, %c0_91] : memref<9x1xf32, #tpu.memory_space<vmem>>, vector<9x1xf32>
    %65 = vector.broadcast %64 : vector<9x1xf32> to vector<9x256xf32>
    %66 = arith.addf %63, %65 : vector<9x256xf32>
    %c0_92 = arith.constant 0 : index
    %c0_93 = arith.constant 0 : index
    %c0_94 = arith.constant 0 : index
    %67 = vector.load %arg10[%c0_92, %c0_93, %c0_94] : memref<1x9x256xf32, #tpu.memory_space<vmem>>, vector<1x9x256xf32>
    %68 = vector.shape_cast %67 : vector<1x9x256xf32> to vector<9x256xf32>
    %69 = vector.shape_cast %66 : vector<9x256xf32> to vector<1x9x256xf32>
    tpu.vector_store %arg10[%c0_92, %c0_93, %c0_94], %69 {strides = array<i32>} : memref<1x9x256xf32, #tpu.memory_space<vmem>>, vector<1x9x256xf32>,
    return
  }
  func.func @transform_0(%arg0: i32) -> (i32, i32, i32, i32) {
    %c0_i32 = arith.constant 0 : i32
    %c0_i32_0 = arith.constant 0 : i32
    %c0_i32_1 = arith.constant 0 : i32
    %c0_i32_2 = arith.constant 0 : i32
    return %arg0, %c0_i32, %c0_i32_0, %c0_i32_1 : i32, i32, i32, i32
  }
  func.func @transform_1(%arg0: i32) -> (i32, i32) {
    %c0_i32 = arith.constant 0 : i32
    %c0_i32_0 = arith.constant 0 : i32
    %c0_i32_1 = arith.constant 0 : i32
    return %c0_i32, %c0_i32_0 : i32, i32
  }
  func.func @transform_2(%arg0: i32) -> (i32, i32) {
    %c0_i32 = arith.constant 0 : i32
    %c0_i32_0 = arith.constant 0 : i32
    %c0_i32_1 = arith.constant 0 : i32
    return %c0_i32, %c0_i32_0 : i32, i32
  }
  func.func @transform_3(%arg0: i32) -> (i32, i32) {
    %c0_i32 = arith.constant 0 : i32
    %c0_i32_0 = arith.constant 0 : i32
    %c0_i32_1 = arith.constant 0 : i32
    return %c0_i32, %c0_i32_0 : i32, i32
  }
  func.func @transform_4(%arg0: i32) -> (i32, i32) {
    %c0_i32 = arith.constant 0 : i32
    %c0_i32_0 = arith.constant 0 : i32
    %c0_i32_1 = arith.constant 0 : i32
    return %c0_i32, %c0_i32_0 : i32, i32
  }
  func.func @transform_5(%arg0: i32) -> (i32, i32) {
    %c0_i32 = arith.constant 0 : i32
    %c0_i32_0 = arith.constant 0 : i32
    %c0_i32_1 = arith.constant 0 : i32
    return %c0_i32, %c0_i32_0 : i32, i32
  }
  func.func @transform_6(%arg0: i32) -> (i32, i32) {
    %c0_i32 = arith.constant 0 : i32
    %c0_i32_0 = arith.constant 0 : i32
    %c0_i32_1 = arith.constant 0 : i32
    return %c0_i32, %c0_i32_0 : i32, i32
  }
  func.func @transform_7(%arg0: i32) -> (i32, i32) {
    %c0_i32 = arith.constant 0 : i32
    %c0_i32_0 = arith.constant 0 : i32
    %c0_i32_1 = arith.constant 0 : i32
    return %c0_i32, %c0_i32_0 : i32, i32
  }
  func.func @transform_8(%arg0: i32) -> (i32, i32) {
    %c0_i32 = arith.constant 0 : i32
    %c0_i32_0 = arith.constant 0 : i32
    %c0_i32_1 = arith.constant 0 : i32
    return %c0_i32, %c0_i32_0 : i32, i32
  }
  func.func @transform_9(%arg0: i32) -> (i32, i32, i32) {
    %c0_i32 = arith.constant 0 : i32
    %c0_i32_0 = arith.constant 0 : i32
    %c0_i32_1 = arith.constant 0 : i32
    return %arg0, %c0_i32, %c0_i32_0 : i32, i32, i32
  }
}

</mosaic_0001>

<bundles_post_ra>
// kernel: tpu_custom_call.1
= control target key start
LH: loop header
LB: loop body
LE: loop exit
PB: predicated region body
PF: predicated region fallthrough
CT: control target
= control target key end

     0   :  { %s5999_s30 = smov 0   ;;  %s8417_s0 = inlined_call_operand.vmem [shape: f32[2,16,16,128], index: 0, kind: input, shape index: {}]   ;;  %s8418_s1 = inlined_call_operand.vmem [shape: f32[1152,64], index: 1, kind: input, shape index: {}]   ;;  %s8419_s2 = inlined_call_operand.vmem [shape: f32[1,64], index: 2, kind: input, shape index: {}]   ;;  %s8420_s3 = inlined_call_operand.vmem [shape: f32[576,32], index: 3, kind: input, shape index: {}]   ;;  %s8421_s4 = inlined_call_operand.vmem [shape: f32[1,32], index: 4, kind: input, shape index: {}]   ;;  %s8422_s5 = inlined_call_operand.vmem [shape: f32[32,2], index: 5, kind: input, shape index: {}]   ;;  %s8423_s6 = inlined_call_operand.vmem [shape: f32[2,32], index: 6, kind: input, shape index: {}]   ;;  %s8424_s7 = inlined_call_operand.vmem [shape: f32[9,32], index: 7, kind: input, shape index: {}]   ;;  %s8425_s8 = inlined_call_operand.vmem [shape: f32[9,1], index: 8, kind: input, shape index: {}]   ;;  %s8426_s9 = inlined_call_operand.vmem [shape: f32[2,9,256], index: 9, kind: output, shape index: {}]  }
   0x1 LB: > { %s4477_s10 = sadd.s32 4294967295, %s5942_s30   ;;  %p4481_p0 = scmp.ge.s32.totalorder %s5942_s30, 1  ;;  %s5942_s30 = sphi %s5999_s30, %s19_s30  }
   0x2   : > { %p287_p1 = scmp.lt.s32.totalorder %s5942_s30, 3 }
   0x4   : > { %p288_p2 = pnand %p4481_p0, %p287_p1 }
   0x5   : > { %v832_v0 = vld [vmem:[%s8418_s1] sm:$0xff] (!%p288_p2)  ;;  %v833_v1 = vld [vmem:[%s8418_s1 + $0x8] sm:$0xff] (!%p288_p2)  ;;  %v834_v2 = vld [vmem:[%s8418_s1 + $0x10] sm:$0xff] (!%p288_p2)  ;;  %p6018_p3 = scmp.lt.s32.totalorder (!%p288_p2), %s4477_s10, 1  ;;  %v5944_v3 = vmov (!%p288_p2), 0.0|0.0   ;;  %v5945_v6 = vmov (!%p288_p2), 0.0  }
   0x6   : > { %291 = sbr.rel (%p288_p2) target bundleno = 2031 (0x7ef), region = 56  ;;  %4853 = vmatprep.subr.bf16.mxu0 (!%p288_p2), %v5944_v3  ;;  %v4854_v4 = vpack.c.bf16 (!%p288_p2), %v833_v1, %v832_v0  ;;  %v835_v5 = vld [vmem:[%s8418_s1 + $0x18] sm:$0xff] (!%p288_p2)  ;;  %334 = vst [vmem:[#allocation2 + $0x8] sm:$0xff] (!%p288_p2), %v5945_v6  ;;  %1047 = vmatprep.mubr.f32.mxu0 (!%p288_p2), %v5945_v6  ;;  %333 = vst [vmem:[#allocation2] sm:$0xff] (!%p288_p2), %v5945_v6  ;;  %v836_v8 = vld [vmem:[%s8418_s1 + $0x20] sm:$0xff] (!%p288_p2)  ;;  %vm405_vm0 = vcmask (!%p288_p2), 523264  }
   0x7   : > { %335 = vst [vmem:[#allocation2 + $0x10] sm:$0xff] (!%p288_p2), %v5945_v6  ;;  %336 = vst [vmem:[#allocation2 + $0x18] sm:$0xff] (!%p288_p2), %v5945_v6  ;;  %v4857_v7 = vpack.c.bf16 (!%p288_p2), %v835_v5, %v834_v2  ;;  %v837_v9 = vld [vmem:[%s8418_s1 + $0x28] sm:$0xff] (!%p288_p2)  ;;  %v838_v11 = vld [vmem:[%s8418_s1 + $0x30] sm:$0xff] (!%p288_p2)  ;;  %s5946_s15 = smov (!%p288_p2), 64   ;;  %vm5947_vm1 = vmmov (!%p288_p2), 0  }
   0x8   : > { %337 = vst [vmem:[#allocation2 + $0x20] sm:$0xff] (!%p288_p2), %v5945_v6  ;;  %340 = vst [vmem:[#allocation2 + $0x38] sm:$0xff] (!%p288_p2), %v5945_v6  ;;  %4855 = vmatpush1.bf16.msra.mxu0 (!%p288_p2), %v4854_v4  ;;  %v4860_v10 = vpack.c.bf16 (!%p288_p2), %v837_v9, %v836_v8  ;;  %v839_v12 = vld [vmem:[%s8418_s1 + $0x38] sm:$0xff] (!%p288_p2)  ;;  %v840_v14 = vld [vmem:[%s8418_s1 + $0x40] sm:$0xff] (!%p288_p2)  ;;  %vm3984_vm2 = vcmask (!%p288_p2), 261120   ;;  %vm4139_vm3 = vcmask (!%p288_p2), 1041408  }
   0x9   : > { %341 = vst [vmem:[#allocation2 + $0x40] sm:$0xff] (!%p288_p2), %v5945_v6  ;;  %344 = vst [vmem:[#allocation2 + $0x58] sm:$0xff] (!%p288_p2), %v5945_v6  ;;  %4856 = vmatprep.subr.bf16.mxu0 (!%p288_p2), %v5944_v3  ;;  %v4863_v13 = vpack.c.bf16 (!%p288_p2), %v839_v12, %v838_v11  ;;  %v841_v15 = vld [vmem:[%s8418_s1 + $0x48] sm:$0xff] (!%p288_p2)  ;;  %v842_v23 = vld [vmem:[%s8418_s1 + $0x50] sm:$0xff] (!%p288_p2)  ;;  %vm4135_vm5 = vcmask (!%p288_p2), 15360  }
   0xa   : > { %345 = vst [vmem:[#allocation2 + $0x60] sm:$0xff] (!%p288_p2), %v5945_v6  ;;  %348 = vst [vmem:[#allocation2 + $0x78] sm:$0xff] (!%p288_p2), %v5945_v6  ;;  %v4866_v21 = vpack.c.bf16 (!%p288_p2), %v841_v15, %v840_v14  ;;  %v843_v24 = vld [vmem:[%s8418_s1 + $0x58] sm:$0xff] (!%p288_p2)  ;;  %v844_v32 = vld [vmem:[%s8418_s1 + $0x60] sm:$0xff] (!%p288_p2) }
   0xb   : > { %349 = vst [vmem:[#allocation2 + $0x80] sm:$0xff] (!%p288_p2), %v5945_v6  ;;  %352 = vst [vmem:[#allocation2 + $0x98] sm:$0xff] (!%p288_p2), %v5945_v6  ;;  %v4869_v30 = vpack.c.bf16 (!%p288_p2), %v843_v24, %v842_v23  ;;  %v845_v33 = vld [vmem:[%s8418_s1 + $0x68] sm:$0xff] (!%p288_p2)  ;;  %v846_v38 = vld [vmem:[%s8418_s1 + $0x70] sm:$0xff] (!%p288_p2) }
   0xc   : > { %353 = vst [vmem:[#allocation2 + $0xa0] sm:$0xff] (!%p288_p2), %v5945_v6  ;;  %356 = vst [vmem:[#allocation2 + $0xb8] sm:$0xff] (!%p288_p2), %v5945_v6  ;;  %4858 = vmatpush1.bf16.msra.mxu0 (!%p288_p2), %v4857_v7  ;;  %v4872_v36 = vpack.c.bf16 (!%p288_p2), %v845_v33, %v844_v32  ;;  %v847_v39 = vld [vmem:[%s8418_s1 + $0x78] sm:$0xff] (!%p288_p2)  ;;  %v848_v44 = vld [vmem:[%s8418_s1 + $0x80] sm:$0xff] (!%p288_p2) }
   0xd   : > { %357 = vst [vmem:[#allocation2 + $0xc0] sm:$0xff] %v5945_v6  ;;  %360 = vst [vmem:[#allocation2 + $0xd8] sm:$0xff] %v5945_v6  ;;  %s8431_s10 = smov (!%p6018_p3, %s4477_s10), 1  ;;  %4859 = vmatprep.subr.bf16.mxu0 %v5944_v3  ;;  %v4875_v42 = vpack.c.bf16 %v847_v39, %v846_v38  ;;  %v849_v45 = vld [vmem:[%s8418_s1 + $0x88] sm:$0xff]  ;;  %v850_v52 = vld [vmem:[%s8418_s1 + $0x90] sm:$0xff] }
   0xe   : > { %361 = vst [vmem:[#allocation2 + $0xe0] sm:$0xff] %v5945_v6  ;;  %364 = vst [vmem:[#allocation2 + $0xf8] sm:$0xff] %v5945_v6  ;;  %s4560_s24 = sshll.u32 %s8431_s10, 8  ;;  %v4878_v49 = vpack.c.bf16 %v849_v45, %v848_v44  ;;  %v851_v53 = vld [vmem:[%s8418_s1 + $0x98] sm:$0xff]  ;;  %v852_v57 = vld [vmem:[%s8418_s1 + $0xa0] sm:$0xff]  ;;  %s4561_s23 = sshll.u32 %s8431_s10, 5 }
   0xf   : > { %365 = vst [vmem:[#allocation2 + $0x100] sm:$0xff] %v5945_v6  ;;  %368 = vst [vmem:[#allocation2 + $0x118] sm:$0xff] %v5945_v6  ;;  %s6091_s12 = scalar_lea.vmem %s8417_s0, %s4560_s24  ;;  %v4881_v56 = vpack.c.bf16 %v851_v53, %v850_v52  ;;  %v853_v58 = vld [vmem:[%s8418_s1 + $0xa8] sm:$0xff]  ;;  %v854_v61 = vld [vmem:[%s8418_s1 + $0xb0] sm:$0xff]  ;;  %s332_s26 = scalar_lea.vmem %s8426_s9, %s4561_s23 }
  0x10   : > { %369 = vst [vmem:[#allocation2 + $0x120] sm:$0xff] %v5945_v6  ;;  %372 = vst [vmem:[#allocation2 + $0x138] sm:$0xff] %v5945_v6  ;;  %4861 = vmatpush1.bf16.msra.mxu0 %v4860_v10  ;;  %v6101_v16 = vld [vmem:[%s6091_s12] sm:$0xff]  ;;  %v6105_v17 = vld [vmem:[%s6091_s12 + $0x8] sm:$0xff]  ;;  %v4884_v60 = vpack.c.bf16 %v853_v58, %v852_v57 }
  0x11   : > { %373 = vst [vmem:[#allocation2 + $0x140] sm:$0xff] %v5945_v6  ;;  %376 = vst [vmem:[#allocation2 + $0x158] sm:$0xff] %v5945_v6  ;;  %4862 = vmatprep.subr.bf16.mxu0 %v5944_v3  ;;  %v6108_v18 = vld [vmem:[%s6091_s12 + $0x10] sm:$0xff]  ;;  %v6113_v19 = vld [vmem:[%s6091_s12 + $0x18] sm:$0xff] }
  0x12   : > { %377 = vst [vmem:[#allocation2 + $0x160] sm:$0xff] %v5945_v6  ;;  %380 = vst [vmem:[#allocation2 + $0x178] sm:$0xff] %v5945_v6  ;;  %v6116_v20 = vld [vmem:[%s6091_s12 + $0x20] sm:$0xff]  ;;  %v6121_v22 = vld [vmem:[%s6091_s12 + $0x28] sm:$0xff] }
  0x13   : > { %381 = vst [vmem:[#allocation2 + $0x180] sm:$0xff] %v5945_v6  ;;  %384 = vst [vmem:[#allocation2 + $0x198] sm:$0xff] %v5945_v6  ;;  %v6132_v25 = vld [vmem:[%s6091_s12 + $0x30] sm:$0xff]  ;;  %v6136_v26 = vld [vmem:[%s6091_s12 + $0x38] sm:$0xff] }
  0x14   : > { %385 = vst [vmem:[#allocation2 + $0x1a0] sm:$0xff] %v5945_v6  ;;  %388 = vst [vmem:[#allocation2 + $0x1b8] sm:$0xff] %v5945_v6  ;;  %4864 = vmatpush1.bf16.msra.mxu0 %v4863_v13  ;;  %v6139_v27 = vld [vmem:[%s6091_s12 + $0x40] sm:$0xff]  ;;  %v6144_v28 = vld [vmem:[%s6091_s12 + $0x48] sm:$0xff] }
  0x15   : > { %389 = vst [vmem:[#allocation2 + $0x1c0] sm:$0xff] %v5945_v6  ;;  %392 = vst [vmem:[#allocation2 + $0x1d8] sm:$0xff] %v5945_v6  ;;  %4865 = vmatprep.subr.bf16.mxu0 %v5944_v3  ;;  %v6147_v29 = vld [vmem:[%s6091_s12 + $0x50] sm:$0xff]  ;;  %v6152_v31 = vld [vmem:[%s6091_s12 + $0x58] sm:$0xff] }
  0x16   : > { %393 = vst [vmem:[#allocation2 + $0x1e0] sm:$0xff] %v5945_v6  ;;  %396 = vst [vmem:[#allocation2 + $0x1f8] sm:$0xff] %v5945_v6  ;;  %v6163_v34 = vld [vmem:[%s6091_s12 + $0x60] sm:$0xff]  ;;  %v6167_v35 = vld [vmem:[%s6091_s12 + $0x68] sm:$0xff] }
  0x17   : > { %397 = vst [vmem:[#allocation2 + $0x200] sm:$0xff] %v5945_v6  ;;  %400 = vst [vmem:[#allocation2 + $0x218] sm:$0xff] %v5945_v6  ;;  %v6171_v37 = vld [vmem:[%s6091_s12 + $0x70] sm:$0xff]  ;;  %v6182_v40 = vld [vmem:[%s6091_s12 + $0x78] sm:$0xff] }
  0x18   : > { %401 = vst [vmem:[#allocation2 + $0x220] sm:$0xff] %v5945_v6  ;;  %402 = vst [vmem:[#allocation2 + $0x228] sm:$0xff] %v5945_v6  ;;  %4867 = vmatpush1.bf16.msra.mxu0 %v4866_v21  ;;  %v6186_v41 = vld [vmem:[%s6091_s12 + $0x80] sm:$0xff]  ;;  %v6190_v43 = vld [vmem:[%s6091_s12 + $0x88] sm:$0xff] }
  0x19   : > { %403 = vst [vmem:[#allocation2 + $0x230] sm:$0xff] %v5945_v6  ;;  %404 = vst [vmem:[#allocation2 + $0x238] sm:$0xff] %v5945_v6  ;;  %4868 = vmatprep.subr.bf16.mxu0 %v5944_v3  ;;  %v6201_v46 = vld [vmem:[%s6091_s12 + $0x90] sm:$0xff]  ;;  %v6205_v47 = vld [vmem:[%s6091_s12 + $0x98] sm:$0xff] }
  0x1a   : > { %511 = vst [vmem:[#allocation2 + $0x28] sm:$0xff] %v6101_v16  ;;  %512 = vst [vmem:[#allocation2 + $0x30] sm:$0xff] %v6105_v17  ;;  %v6208_v48 = vld [vmem:[%s6091_s12 + $0xa0] sm:$0xff]  ;;  %v6213_v50 = vld [vmem:[%s6091_s12 + $0xa8] sm:$0xff] }
  0x1b   : > { %513 = vst [vmem:[#allocation2 + $0x48] sm:$0xff] %v6108_v18  ;;  %514 = vst [vmem:[#allocation2 + $0x50] sm:$0xff] %v6113_v19  ;;  %v6216_v51 = vld [vmem:[%s6091_s12 + $0xb0] sm:$0xff]  ;;  %v6228_v54 = vld [vmem:[%s6091_s12 + $0xb8] sm:$0xff] }
  0x1c   : > { %515 = vst [vmem:[#allocation2 + $0x68] sm:$0xff] %v6116_v20  ;;  %516 = vst [vmem:[#allocation2 + $0x70] sm:$0xff] %v6121_v22  ;;  %4870 = vmatpush1.bf16.msra.mxu0 %v4869_v30  ;;  %v6232_v55 = vld [vmem:[%s6091_s12 + $0xc0] sm:$0xff]  ;;  %v6243_v59 = vld [vmem:[%s6091_s12 + $0xc8] sm:$0xff] }
  0x1d   : > { %517 = vst [vmem:[#allocation2 + $0x88] sm:$0xff] %v6132_v25  ;;  %518 = vst [vmem:[#allocation2 + $0x90] sm:$0xff] %v6136_v26  ;;  %4871 = vmatprep.subr.bf16.mxu0 %v5944_v3  ;;  %v855_v62 = vld [vmem:[%s8418_s1 + $0xb8] sm:$0xff]  ;;  %v6254_v63 = vld [vmem:[%s6091_s12 + $0xd0] sm:$0xff] }
  0x1e   : > { %519 = vst [vmem:[#allocation2 + $0xa8] sm:$0xff] %v6139_v27  ;;  %520 = vst [vmem:[#allocation2 + $0xb0] sm:$0xff] %v6144_v28  ;;  %v4887_v0 = vpack.c.bf16 %v855_v62, %v854_v61  ;;  %v856_v1 = vld [vmem:[%s8418_s1 + $0xc0] sm:$0xff]  ;;  %v857_v2 = vld [vmem:[%s8418_s1 + $0xc8] sm:$0xff] }
  0x1f   : > { %521 = vst [vmem:[#allocation2 + $0xc8] sm:$0xff] %v6147_v29  ;;  %522 = vst [vmem:[#allocation2 + $0xd0] sm:$0xff] %v6152_v31  ;;  %v6265_v4 = vld [vmem:[%s6091_s12 + $0xd8] sm:$0xff]  ;;  %v4890_v5 = vpack.c.bf16 %v857_v2, %v856_v1  ;;  %v858_v7 = vld [vmem:[%s8418_s1 + $0xd0] sm:$0xff] }
  0x20   : > { %523 = vst [vmem:[#allocation2 + $0xe8] sm:$0xff] %v6163_v34  ;;  %524 = vst [vmem:[#allocation2 + $0xf0] sm:$0xff] %v6167_v35  ;;  %4873 = vmatpush1.bf16.msra.mxu0 %v4872_v36  ;;  %v859_v8 = vld [vmem:[%s8418_s1 + $0xd8] sm:$0xff]  ;;  %v6276_v9 = vld [vmem:[%s6091_s12 + $0xe0] sm:$0xff] }
  0x21   : > { %525 = vst [vmem:[#allocation2 + $0x108] sm:$0xff] %v6171_v37  ;;  %526 = vst [vmem:[#allocation2 + $0x110] sm:$0xff] %v6182_v40  ;;  %4874 = vmatprep.subr.bf16.mxu0 %v5944_v3  ;;  %v4893_v10 = vpack.c.bf16 %v859_v8, %v858_v7  ;;  %v860_v11 = vld [vmem:[%s8418_s1 + $0xe0] sm:$0xff]  ;;  %v861_v12 = vld [vmem:[%s8418_s1 + $0xe8] sm:$0xff] }
  0x22   : > { %527 = vst [vmem:[#allocation2 + $0x128] sm:$0xff] %v6186_v41  ;;  %528 = vst [vmem:[#allocation2 + $0x130] sm:$0xff] %v6190_v43  ;;  %v6287_v13 = vld [vmem:[%s6091_s12 + $0xe8] sm:$0xff]  ;;  %v4896_v14 = vpack.c.bf16 %v861_v12, %v860_v11  ;;  %v862_v15 = vld [vmem:[%s8418_s1 + $0xf0] sm:$0xff] }
  0x23   : > { %529 = vst [vmem:[#allocation2 + $0x148] sm:$0xff] %v6201_v46  ;;  %530 = vst [vmem:[#allocation2 + $0x150] sm:$0xff] %v6205_v47  ;;  %v863_v21 = vld [vmem:[%s8418_s1 + $0xf8] sm:$0xff]  ;;  %v864_v24 = vld [vmem:[%s8418_s1 + $0x100] sm:$0xff] }
  0x24   : > { %531 = vst [vmem:[#allocation2 + $0x168] sm:$0xff] %v6208_v48  ;;  %4876 = vmatpush1.bf16.msra.mxu0 %v4875_v42  ;;  %532 = vst [vmem:[#allocation2 + $0x170] sm:$0xff] %v6213_v50  ;;  %v4899_v23 = vpack.c.bf16 %v863_v21, %v862_v15  ;;  %v865_v30 = vld [vmem:[%s8418_s1 + $0x108] sm:$0xff]  ;;  %v866_v36 = vld [vmem:[%s8418_s1 + $0x110] sm:$0xff] }
  0x25   : > { %4877 = vmatprep.subr.bf16.mxu0 %v5944_v3  ;;  %533 = vst [vmem:[#allocation2 + $0x188] sm:$0xff] %v6216_v51  ;;  %534 = vst [vmem:[#allocation2 + $0x190] sm:$0xff] %v6228_v54  ;;  %v543_v32 = vld [vmem:[#allocation2 + $0x7] sm:$0xff]  ;;  %v4902_v33 = vpack.c.bf16 %v865_v30, %v864_v24  ;;  %v867_v38 = vld [vmem:[%s8418_s1 + $0x118] sm:$0xff] }
  0x26   : > { %535 = vst [vmem:[#allocation2 + $0x1a8] sm:$0xff] %v6232_v55  ;;  %536 = vst [vmem:[#allocation2 + $0x1b0] sm:$0xff] %v6243_v59  ;;  %v544_v39 = vld [vmem:[#allocation2 + $0xf] sm:$0xff]  ;;  %v4905_v42 = vpack.c.bf16 %v867_v38, %v866_v36  ;;  %v868_v44 = vld [vmem:[%s8418_s1 + $0x120] sm:$0xff] }
  0x27   : > { %537 = vst [vmem:[#allocation2 + $0x1c8] sm:$0xff] %v6254_v63  ;;  %538 = vst [vmem:[#allocation2 + $0x1d0] sm:$0xff] %v6265_v4  ;;  %v869_v45 = vld [vmem:[%s8418_s1 + $0x128] sm:$0xff]  ;;  %v871_v53 = vld [vmem:[%s8418_s1 + $0x138] sm:$0xff] }
  0x28   : > { %4879 = vmatpush1.bf16.msra.mxu0 %v4878_v49  ;;  %539 = vst [vmem:[#allocation2 + $0x1e8] sm:$0xff] %v6276_v9  ;;  %540 = vst [vmem:[#allocation2 + $0x1f0] sm:$0xff] %v6287_v13  ;;  %v6320_v49 = vld [vmem:[#allocation2 + $0x27] sm:$0xff]  ;;  %v4908_v52 = vpack.c.bf16 %v869_v45, %v868_v44  ;;  %v874_v62 = vld [vmem:[%s8418_s1 + $0x150] sm:$0xff] }
  0x29   : > { %4880 = vmatprep.subr.bf16.mxu0 %v5944_v3  ;;  %v872_v57 = vld [vmem:[%s8418_s1 + $0x140] sm:$0xff]  ;;  %v873_v58 = vld [vmem:[%s8418_s1 + $0x148] sm:$0xff]  ;;  %v878_v8 = vld [vmem:[%s8418_s1 + $0x170] sm:$0xff] }
  0x2a   : > { %v6344_v61 = vld [vmem:[#allocation2 + $0x49] sm:$0xff]  ;;  %v876_v2 = vld [vmem:[%s8418_s1 + $0x160] sm:$0xff]  ;;  %v887_v38 = vld [vmem:[%s8418_s1 + $0x1b8] sm:$0xff] }
  0x2b   : > { %4725 = vmatprep.mubr.f32.mxu1 %v6344_v61  ;;  %v6367_v7 = vld [vmem:[#allocation2 + $0x67] sm:$0xff]  ;;  %v6378_v11 = vld [vmem:[#allocation2 + $0x6f] sm:$0xff]  ;;  %vm8342_vm4 = vmpackc.low %vm3984_vm2, %vm3984_vm2 }
  0x2c   : > { %4882 = vmatpush1.bf16.msra.mxu0 %v4881_v56  ;;  %v6331_v56 = vld [vmem:[#allocation2 + $0x2f] sm:$0xff]  ;;  %v880_v12 = vld [vmem:[%s8418_s1 + $0x180] sm:$0xff] }
  0x2d   : > { %4883 = vmatprep.subr.bf16.mxu0 %v5944_v3  ;;  %v6389_v15 = vld [vmem:[#allocation2 + $0x87] sm:$0xff]  ;;  %v882_v21 = vld [vmem:[%s8418_s1 + $0x190] sm:$0xff] }
  0x2e   : > { %v6400_v24 = vld [vmem:[#allocation2 + $0x8f] sm:$0xff]  ;;  %v884_v30 = vld [vmem:[%s8418_s1 + $0x1a0] sm:$0xff] }
  0x2f   : > { %v886_v36 = vld [vmem:[%s8418_s1 + $0x1b0] sm:$0xff]  ;;  %v889_v44 = vld [vmem:[%s8418_s1 + $0x1c8] sm:$0xff] }
  0x30   : > { %4885 = vmatpush1.bf16.msra.mxu0 %v4884_v60  ;;  %v6342_v60 = vld [vmem:[#allocation2 + $0x47] sm:$0xff] }
  0x31   : > { %4886 = vmatprep.subr.bf16.mxu0 %v5944_v3  ;;  %v6433_v45 = vld [vmem:[#allocation2 + $0xc7] sm:$0xff] }
  0x34   : > { %4888 = vmatpush1.bf16.msra.mxu0 %v4887_v0  ;;  %v875_v0 = vld [vmem:[%s8418_s1 + $0x158] sm:$0xff] }
  0x35   : > { %4889 = vmatprep.subr.bf16.mxu0 %v5944_v3  ;;  %v4917_v1 = vpack.c.bf16 %v875_v0, %v874_v62  ;;  %v895_v62 = vld [vmem:[%s8418_s1 + $0x1f8] sm:$0xff]  ;;  %v6466_v0 = vld [vmem:[#allocation2 + $0xef] sm:$0xff] }
  0x38   : > { %4891 = vmatpush1.bf16.msra.mxu0 %v4890_v5  ;;  %v877_v5 = vld [vmem:[%s8418_s1 + $0x168] sm:$0xff] }
  0x39   : > { %4892 = vmatprep.subr.bf16.mxu0 %v5944_v3 }
  0x3c   : > { %4894 = vmatpush1.bf16.msra.mxu0 %v4893_v10  ;;  %v879_v10 = vld [vmem:[%s8418_s1 + $0x178] sm:$0xff] }
  0x3d   : > { %4895 = vmatprep.subr.bf16.mxu0 %v5944_v3 }
  0x40   : > { %4897 = vmatpush1.bf16.msra.mxu0 %v4896_v14  ;;  %v881_v14 = vld [vmem:[%s8418_s1 + $0x188] sm:$0xff] }
  0x41   : > { %4898 = vmatprep.subr.bf16.mxu0 %v5944_v3 }
  0x44   : > { %4900 = vmatpush1.bf16.msra.mxu0 %v4899_v23  ;;  %v883_v23 = vld [vmem:[%s8418_s1 + $0x198] sm:$0xff] }
  0x45   : > { %4901 = vmatprep.subr.bf16.mxu0 %v5944_v3 }
  0x47   : > { %1048 = vmatmul.mubr.f32.vlgmr.msra.gmra.mrb[0].mxu0 %v543_v32  ;;  %v885_v32 = vld [vmem:[%s8418_s1 + $0x1a8] sm:$0xff] }
  0x48   : > { %4903 = vmatpush1.bf16.msra.mxu0 %v4902_v33  ;;  %1052 = vmatprep.mubr.f32.mxu0 %v5945_v6  ;;  %v870_v6 = vld [vmem:[%s8418_s1 + $0x130] sm:$0xff]  ;;  %v6411_v33 = vld [vmem:[#allocation2 + $0xa7] sm:$0xff] }
  0x49   : > { %4904 = vmatprep.subr.bf16.mxu0 %v5944_v3 }
  0x4b   : > { %1053 = vmatmul.mubr.f32.gmra.mrb[2].mxu0 %v544_v39  ;;  %v6422_v39 = vld [vmem:[#allocation2 + $0xaf] sm:$0xff] }
  0x4c   : > { %1057 = vmatprep.mubr.f32.mxu0 %v6101_v16  ;;  %4906 = vmatpush1.bf16.msra.mxu0 %v4905_v42  ;;  %v4911_v16 = vpack.c.bf16 %v871_v53, %v870_v6  ;;  %v888_v42 = vld [vmem:[%s8418_s1 + $0x1c0] sm:$0xff]  ;;  %v891_v6 = vld [vmem:[%s8418_s1 + $0x1d8] sm:$0xff]  ;;  %v6444_v53 = vld [vmem:[#allocation2 + $0xcf] sm:$0xff] }
  0x4d   : > { %4907 = vmatprep.subr.bf16.mxu0 %v5944_v3 }
  0x4f   : > { %1058 = vmatmul.mubr.f32.gmra.mrb[4].mxu0 %v6320_v49 }
  0x50   : > { %1062 = vmatprep.mubr.f32.mxu0 %v6105_v17  ;;  %4909 = vmatpush1.bf16.msra.mxu0 %v4908_v52  ;;  %v4914_v17 = vpack.c.bf16 %v873_v58, %v872_v57  ;;  %v890_v52 = vld [vmem:[%s8418_s1 + $0x1d0] sm:$0xff]  ;;  %v893_v57 = vld [vmem:[%s8418_s1 + $0x1e8] sm:$0xff] }
  0x51   : > { %4910 = vmatprep.subr.bf16.mxu0 %v5944_v3  ;;  %v6455_v58 = vld [vmem:[#allocation2 + $0xe7] sm:$0xff] }
  0x53   : > { %1063 = vmatmul.mubr.f32.gmra.mrb[6].mxu0 %v6331_v56 }
  0x54   : > { %1067 = vmatprep.mubr.f32.mxu0 %v6108_v18  ;;  %4912 = vmatpush1.bf16.msra.mxu0 %v4911_v16  ;;  %v6356_v18 = vld [vmem:[#allocation2 + $0x4f] sm:$0xff]  ;;  %v892_v16 = vld [vmem:[%s8418_s1 + $0x1e0] sm:$0xff] }
  0x55   : > { %4913 = vmatprep.subr.bf16.mxu0 %v5944_v3 }
  0x57   : > { %1068 = vmatmul.mubr.f32.gmra.mrb[8].mxu0 %v6342_v60 }
  0x58   : > { %1072 = vmatprep.mubr.f32.mxu0 %v6113_v19  ;;  %4915 = vmatpush1.bf16.msra.mxu0 %v4914_v17  ;;  %v4920_v19 = vpack.c.bf16 %v877_v5, %v876_v2  ;;  %v894_v17 = vld [vmem:[%s8418_s1 + $0x1f0] sm:$0xff]  ;;  %v6480_v2 = vld [vmem:[#allocation2 + $0x127] sm:$0xff] }
  0x59   : > { %4916 = vmatprep.subr.bf16.mxu0 %v5944_v3  ;;  %v6488_v5 = vld [vmem:[#allocation2 + $0x147] sm:$0xff] }
  0x5b   : > { %1073 = vmatmul.mubr.f32.gmra.mrb[10].mxu0 %v6356_v18 }
  0x5c   : > { %1077 = vmatprep.mubr.f32.mxu0 %v6116_v20  ;;  %4918 = vmatpush1.bf16.msra.mxu0 %v4917_v1  ;;  %v4923_v20 = vpack.c.bf16 %v879_v10, %v878_v8  ;;  %v6471_v1 = vld [vmem:[#allocation2 + $0x107] sm:$0xff] }
  0x5d   : > { %4919 = vmatprep.subr.bf16.mxu0 %v5944_v3  ;;  %v897_v8 = vld [vmem:[%s8418_s1 + $0x208] sm:$0xff] }
  0x5f   : > { %1078 = vmatmul.mubr.f32.gmra.mrb[12].mxu0 %v6367_v7 }
  0x60   : > { %1082 = vmatprep.mubr.f32.mxu0 %v6121_v22  ;;  %4921 = vmatpush1.bf16.msra.mxu0 %v4920_v19  ;;  %v4926_v22 = vpack.c.bf16 %v881_v14, %v880_v12  ;;  %v6531_v19 = vld [vmem:[%s6091_s12 + $0xf8] sm:$0xff] }
  0x61   : > { %4922 = vmatprep.subr.bf16.mxu0 %v5944_v3  ;;  %542 = vst [vmem:[#allocation2 + $0x210] sm:$0xff] %v6531_v19  ;;  %v608_v12 = vld [vmem:[#allocation2 + $0x11] sm:$0xff] }
  0x63   : > { %1083 = vmatmul.mubr.f32.gmra.mrb[14].mxu0 %v6378_v11 }
  0x64   : > { %1087 = vmatprep.mubr.f32.mxu0 %v6132_v25  ;;  %4924 = vmatpush1.bf16.msra.mxu0 %v4923_v20  ;;  %v4929_v25 = vpack.c.bf16 %v883_v23, %v882_v21  ;;  %v899_v20 = vld [vmem:[%s8418_s1 + $0x218] sm:$0xff]  ;;  %v6565_v21 = vld [vmem:[#allocation2 + $0x29] sm:$0xff] }
  0x65   : > { %4925 = vmatprep.subr.bf16.mxu0 %v5944_v3 }
  0x67   : > { %1088 = vmatmul.mubr.f32.gmra.mrb[16].mxu0 %v6389_v15 }
  0x68   : > { %1092 = vmatprep.mubr.f32.mxu0 %v6136_v26  ;;  %4927 = vmatpush1.bf16.msra.mxu0 %v4926_v22  ;;  %v4932_v26 = vpack.c.bf16 %v885_v32, %v884_v30  ;;  %v901_v22 = vld [vmem:[%s8418_s1 + $0x228] sm:$0xff]  ;;  %v6576_v30 = vld [vmem:[#allocation2 + $0x31] sm:$0xff]  ;;  %v904_v32 = vld [vmem:[%s8418_s1 + $0x240] sm:$0xff] }
  0x69   : > { %4928 = vmatprep.subr.bf16.mxu0 %v5944_v3 }
  0x6b   : > { %1093 = vmatmul.mubr.f32.gmra.mrb[18].mxu0 %v6400_v24 }
  0x6c   : > { %1097 = vmatprep.mubr.f32.mxu0 %v6139_v27  ;;  %4930 = vmatpush1.bf16.msra.mxu0 %v4929_v25  ;;  %v4935_v27 = vpack.c.bf16 %v887_v38, %v886_v36  ;;  %v903_v25 = vld [vmem:[%s8418_s1 + $0x238] sm:$0xff]  ;;  %v906_v36 = vld [vmem:[%s8418_s1 + $0x250] sm:$0xff] }
  0x6d   : > { %4931 = vmatprep.subr.bf16.mxu0 %v5944_v3  ;;  %v907_v38 = vld [vmem:[%s8418_s1 + $0x258] sm:$0xff] }
  0x6f   : > { %1098 = vmatmul.mubr.f32.gmra.mrb[20].mxu0 %v6411_v33 }
  0x70   : > { %1102 = vmatprep.mubr.f32.mxu0 %v6144_v28  ;;  %4933 = vmatpush1.bf16.msra.mxu0 %v4932_v26  ;;  %v4938_v28 = vpack.c.bf16 %v889_v44, %v888_v42  ;;  %v905_v26 = vld [vmem:[%s8418_s1 + $0x248] sm:$0xff]  ;;  %v908_v42 = vld [vmem:[%s8418_s1 + $0x260] sm:$0xff] }
  0x71   : > { %4934 = vmatprep.subr.bf16.mxu0 %v5944_v3  ;;  %v909_v44 = vld [vmem:[%s8418_s1 + $0x268] sm:$0xff] }
  0x73   : > { %1103 = vmatmul.mubr.f32.gmra.mrb[22].mxu0 %v6422_v39 }
  0x74   : > { %1107 = vmatprep.mubr.f32.mxu0 %v6147_v29  ;;  %4936 = vmatpush1.bf16.msra.mxu0 %v4935_v27  ;;  %v4941_v29 = vpack.c.bf16 %v891_v6, %v890_v52  ;;  %v6596_v27 = vld [vmem:[#allocation2 + $0x51] sm:$0xff] }
  0x75   : > { %4937 = vmatprep.subr.bf16.mxu0 %v5944_v3  ;;  %v910_v52 = vld [vmem:[%s8418_s1 + $0x270] sm:$0xff]  ;;  %v911_v6 = vld [vmem:[%s8418_s1 + $0x278] sm:$0xff] }
  0x77   : > { %1108 = vmatmul.mubr.f32.gmra.mrb[24].mxu0 %v6433_v45 }
  0x78   : > { %1112 = vmatprep.mubr.f32.mxu0 %v6152_v31  ;;  %4939 = vmatpush1.bf16.msra.mxu0 %v4938_v28  ;;  %v4944_v31 = vpack.c.bf16 %v893_v57, %v892_v16  ;;  %v6607_v28 = vld [vmem:[#allocation2 + $0x69] sm:$0xff]  ;;  %v912_v16 = vld [vmem:[%s8418_s1 + $0x280] sm:$0xff] }
  0x79   : > { %4940 = vmatprep.subr.bf16.mxu0 %v5944_v3  ;;  %v913_v57 = vld [vmem:[%s8418_s1 + $0x288] sm:$0xff] }
  0x7b   : > { %1113 = vmatmul.mubr.f32.gmra.mrb[26].mxu0 %v6444_v53 }
  0x7c   : > { %1117 = vmatprep.mubr.f32.mxu0 %v6163_v34  ;;  %4942 = vmatpush1.bf16.msra.mxu0 %v4941_v29  ;;  %v4947_v34 = vpack.c.bf16 %v895_v62, %v894_v17  ;;  %v6618_v29 = vld [vmem:[#allocation2 + $0x71] sm:$0xff] }
  0x7d   : > { %4943 = vmatprep.subr.bf16.mxu0 %v5944_v3  ;;  %v914_v17 = vld [vmem:[%s8418_s1 + $0x290] sm:$0xff]  ;;  %v915_v62 = vld [vmem:[%s8418_s1 + $0x298] sm:$0xff] }
  0x7f   : > { %1118 = vmatmul.mubr.f32.gmra.mrb[28].mxu0 %v6455_v58 }
  0x80   : > { %1122 = vmatprep.mubr.f32.mxu0 %v6167_v35  ;;  %4945 = vmatpush1.bf16.msra.mxu0 %v4944_v31  ;;  %v6476_v35 = vld [vmem:[#allocation2 + $0x10f] sm:$0xff] }
  0x81   : > { %4946 = vmatprep.subr.bf16.mxu0 %v5944_v3  ;;  %v6629_v31 = vld [vmem:[#allocation2 + $0x89] sm:$0xff] }
  0x83   : > { %1123 = vmatmul.mubr.f32.gmra.mrb[30].mxu0 %v6466_v0 }
  0x84   : > { %1127 = vmatprep.mubr.f32.mxu0 %v6171_v37  ;;  %4948 = vmatpush1.bf16.msra.mxu0 %v4947_v34  ;;  %v6484_v37 = vld [vmem:[#allocation2 + $0x12f] sm:$0xff] }
  0x85   : > { %4949 = vmatprep.subr.bf16.mxu0 %v5944_v3  ;;  %v6640_v34 = vld [vmem:[#allocation2 + $0x91] sm:$0xff] }
  0x87   : > { %1128 = vmatmul.mubr.f32.gmra.mrb[32].mxu0 %v6471_v1 }
  0x88   : > { %1132 = vmatprep.mubr.f32.mxu0 %v6182_v40  ;;  %v6492_v40 = vld [vmem:[#allocation2 + $0x14f] sm:$0xff] }
  0x8b   : > { %1133 = vmatmul.mubr.f32.gmra.mrb[34].mxu0 %v6476_v35 }
  0x8c   : > { %1137 = vmatprep.mubr.f32.mxu0 %v6186_v41  ;;  %v6496_v41 = vld [vmem:[#allocation2 + $0x167] sm:$0xff] }
  0x8f   : > { %1138 = vmatmul.mubr.f32.gmra.mrb[36].mxu0 %v6480_v2 }
  0x90   : > { %1142 = vmatprep.mubr.f32.mxu0 %v6190_v43  ;;  %v6500_v43 = vld [vmem:[#allocation2 + $0x16f] sm:$0xff] }
  0x93   : > { %1143 = vmatmul.mubr.f32.gmra.mrb[38].mxu0 %v6484_v37 }
  0x94   : > { %1147 = vmatprep.mubr.f32.mxu0 %v6201_v46  ;;  %v6504_v46 = vld [vmem:[#allocation2 + $0x187] sm:$0xff] }
  0x97   : > { %1148 = vmatmul.mubr.f32.gmra.mrb[40].mxu0 %v6488_v5 }
  0x98   : > { %1152 = vmatprep.mubr.f32.mxu0 %v6205_v47  ;;  %v6508_v47 = vld [vmem:[#allocation2 + $0x18f] sm:$0xff] }
  0x9b   : > { %1153 = vmatmul.mubr.f32.gmra.mrb[42].mxu0 %v6492_v40 }
  0x9c   : > { %1157 = vmatprep.mubr.f32.mxu0 %v6208_v48  ;;  %v6512_v48 = vld [vmem:[#allocation2 + $0x1a7] sm:$0xff] }
  0x9f   : > { %1158 = vmatmul.mubr.f32.gmra.mrb[44].mxu0 %v6496_v41 }
  0xa0   : > { %1162 = vmatprep.mubr.f32.mxu0 %v6213_v50  ;;  %v6516_v50 = vld [vmem:[#allocation2 + $0x1af] sm:$0xff] }
  0xa3   : > { %1163 = vmatmul.mubr.f32.gmra.mrb[46].mxu0 %v6500_v43 }
  0xa4   : > { %1167 = vmatprep.mubr.f32.mxu0 %v6216_v51  ;;  %v6520_v51 = vld [vmem:[#allocation2 + $0x1c7] sm:$0xff] }
  0xa7   : > { %1168 = vmatmul.mubr.f32.gmra.mrb[48].mxu0 %v6504_v46 }
  0xa8   : > { %1172 = vmatprep.mubr.f32.mxu0 %v6228_v54  ;;  %v6523_v54 = vld [vmem:[%s6091_s12 + $0xf0] sm:$0xff] }
  0xa9   : > { %541 = vst [vmem:[#allocation2 + $0x208] sm:$0xff] %v6523_v54 }
  0xab   : > { %1173 = vmatmul.mubr.f32.gmra.mrb[50].mxu0 %v6508_v47 }
  0xac   : > { %1177 = vmatprep.mubr.f32.mxu0 %v6232_v55  ;;  %v6528_v55 = vld [vmem:[#allocation2 + $0x1cf] sm:$0xff] }
  0xaf   : > { %1178 = vmatmul.mubr.f32.gmra.mrb[52].mxu0 %v6512_v48 }
  0xb0   : > { %1182 = vmatprep.mubr.f32.mxu0 %v6243_v59  ;;  %v6536_v59 = vld [vmem:[#allocation2 + $0x1e7] sm:$0xff] }
  0xb3   : > { %1183 = vmatmul.mubr.f32.gmra.mrb[54].mxu0 %v6516_v50 }
  0xb4   : > { %1187 = vmatprep.mubr.f32.mxu0 %v6254_v63  ;;  %v6540_v63 = vld [vmem:[#allocation2 + $0x1ef] sm:$0xff] }
  0xb7   : > { %1188 = vmatmul.mubr.f32.gmra.mrb[56].mxu0 %v6520_v51 }
  0xb8   : > { %1192 = vmatprep.mubr.f32.mxu0 %v6265_v4  ;;  %v896_v4 = vld [vmem:[%s8418_s1 + $0x200] sm:$0xff] }
  0xb9   : > { %v4950_v10 = vpack.c.bf16 %v897_v8, %v896_v4  ;;  %v916_v4 = vld [vmem:[%s8418_s1 + $0x2a0] sm:$0xff]  ;;  %v917_v8 = vld [vmem:[%s8418_s1 + $0x2a8] sm:$0xff] }
  0xbb   : > { %1193 = vmatmul.mubr.f32.gmra.mrb[58].mxu0 %v6528_v55 }
  0xbc   : > { %1197 = vmatprep.mubr.f32.mxu0 %v6276_v9  ;;  %v607_v9 = vld [vmem:[#allocation2 + $0x9] sm:$0xff] }
  0xbf   : > { %1198 = vmatmul.mubr.f32.gmra.mrb[60].mxu0 %v6536_v59 }
  0xc0   : > { %1202 = vmatprep.mubr.f32.mxu0 %v6287_v13  ;;  %v898_v13 = vld [vmem:[%s8418_s1 + $0x210] sm:$0xff] }
  0xc1   : > { %v4953_v14 = vpack.c.bf16 %v899_v20, %v898_v13  ;;  %v919_v13 = vld [vmem:[%s8418_s1 + $0x2b8] sm:$0xff] }
  0xc2   : > { %v6662_v20 = vld [vmem:[#allocation2 + $0xb1] sm:$0xff] }
  0xc3   : > { %1203 = vmatmul.mubr.f32.gmra.mrb[62].mxu0 %v6540_v63 }
  0xc4   : > { %1272 = vmatprep.mubr.f32.mxu0 %v6320_v49  ;;  %v900_v49 = vld [vmem:[%s8418_s1 + $0x220] sm:$0xff] }
  0xc5   : > { %v4956_v23 = vpack.c.bf16 %v901_v22, %v900_v49  ;;  %v6673_v49 = vld [vmem:[#allocation2 + $0xc9] sm:$0xff] }
  0xc6   : > { %v922_v22 = vld [vmem:[%s8418_s1 + $0x2d0] sm:$0xff] }
  0xc7   : > { %1273 = vmatmul.mubr.f32.vlgmr.msra.gmra.mrb[0].mxu0 %v607_v9  ;;  %v6651_v9 = vld [vmem:[#allocation2 + $0xa9] sm:$0xff] }
  0xc8   : > { %4951 = vmatpush1.bf16.msra.mxu0 %v4950_v10  ;;  %1277 = vmatprep.mubr.f32.mxu0 %v6331_v56  ;;  %v902_v56 = vld [vmem:[%s8418_s1 + $0x230] sm:$0xff] }
  0xc9   : > { %4952 = vmatprep.subr.bf16.mxu0 %v5944_v3  ;;  %v918_v10 = vld [vmem:[%s8418_s1 + $0x2b0] sm:$0xff] }
  0xcb   : > { %1278 = vmatmul.mubr.f32.gmra.mrb[2].mxu0 %v608_v12  ;;  %v920_v12 = vld [vmem:[%s8418_s1 + $0x2c0] sm:$0xff] }
  0xcc   : > { %1282 = vmatprep.mubr.f32.mxu0 %v6342_v60  ;;  %4954 = vmatpush1.bf16.msra.mxu0 %v4953_v14  ;;  %v4959_v60 = vpack.c.bf16 %v903_v25, %v902_v56  ;;  %v921_v14 = vld [vmem:[%s8418_s1 + $0x2c8] sm:$0xff]  ;;  %v6684_v56 = vld [vmem:[#allocation2 + $0xd1] sm:$0xff]  ;;  %v924_v25 = vld [vmem:[%s8418_s1 + $0x2e0] sm:$0xff] }
  0xcd   : > { %4955 = vmatprep.subr.bf16.mxu0 %v5944_v3 }
  0xcf   : > { %1283 = vmatmul.mubr.f32.gmra.mrb[4].mxu0 %v6565_v21 }
  0xd0   : > { %1287 = vmatprep.mubr.f32.mxu0 %v6356_v18  ;;  %4957 = vmatpush1.bf16.msra.mxu0 %v4956_v23  ;;  %v4962_v18 = vpack.c.bf16 %v905_v26, %v904_v32  ;;  %v923_v23 = vld [vmem:[%s8418_s1 + $0x2d8] sm:$0xff]  ;;  %v6695_v32 = vld [vmem:[#allocation2 + $0xe9] sm:$0xff] }
  0xd1   : > { %4958 = vmatprep.subr.bf16.mxu0 %v5944_v3  ;;  %v926_v26 = vld [vmem:[%s8418_s1 + $0x2f0] sm:$0xff] }
  0xd3   : > { %1288 = vmatmul.mubr.f32.gmra.mrb[6].mxu0 %v6576_v30 }
  0xd4   : > { %1292 = vmatprep.mubr.f32.mxu0 %v6367_v7  ;;  %4960 = vmatpush1.bf16.msra.mxu0 %v4959_v60  ;;  %v4965_v7 = vpack.c.bf16 %v907_v38, %v906_v36  ;;  %v925_v60 = vld [vmem:[%s8418_s1 + $0x2e8] sm:$0xff]  ;;  %v6706_v36 = vld [vmem:[#allocation2 + $0xf1] sm:$0xff] }
  0xd5   : > { %4961 = vmatprep.subr.bf16.mxu0 %v5944_v3  ;;  %v6711_v38 = vld [vmem:[#allocation2 + $0x109] sm:$0xff] }
  0xd7   : > { %1293 = vmatmul.mubr.f32.gmra.mrb[8].mxu0 %v6344_v61 }
  0xd8   : > { %1297 = vmatprep.mubr.f32.mxu0 %v6378_v11  ;;  %4963 = vmatpush1.bf16.msra.mxu0 %v4962_v18  ;;  %v4968_v11 = vpack.c.bf16 %v909_v44, %v908_v42  ;;  %v927_v18 = vld [vmem:[%s8418_s1 + $0x2f8] sm:$0xff]  ;;  %v6728_v42 = vld [vmem:[#allocation2 + $0x149] sm:$0xff] }
  0xd9   : > { %4964 = vmatprep.subr.bf16.mxu0 %v5944_v3 }
  0xdb   : > { %1298 = vmatmul.mubr.f32.gmra.mrb[10].mxu0 %v6596_v27 }
  0xdc   : > { %1302 = vmatprep.mubr.f32.mxu0 %v6389_v15  ;;  %4966 = vmatpush1.bf16.msra.mxu0 %v4965_v7  ;;  %v4971_v15 = vpack.c.bf16 %v911_v6, %v910_v52  ;;  %v6720_v7 = vld [vmem:[#allocation2 + $0x129] sm:$0xff] }
  0xdd   : > { %4967 = vmatprep.subr.bf16.mxu0 %v5944_v3  ;;  %v6764_v6 = vld [vmem:[#allocation2 + $0x1a9] sm:$0xff] }
  0xdf   : > { %1303 = vmatmul.mubr.f32.gmra.mrb[12].mxu0 %v6607_v28 }
  0xe0   : > { %1307 = vmatprep.mubr.f32.mxu0 %v6400_v24  ;;  %4969 = vmatpush1.bf16.msra.mxu0 %v4968_v11  ;;  %v4974_v24 = vpack.c.bf16 %v913_v57, %v912_v16  ;;  %v963_v11 = vld [vmem:[%s8418_s1 + $0x418] sm:$0xff] }
  0xe1   : > { %4970 = vmatprep.subr.bf16.mxu0 %v5944_v3  ;;  %v6774_v57 = vld [vmem:[#allocation2 + $0x1b1] sm:$0xff] }
  0xe3   : > { %1308 = vmatmul.mubr.f32.gmra.mrb[14].mxu0 %v6618_v29 }
  0xe4   : > { %1312 = vmatprep.mubr.f32.mxu0 %v6411_v33  ;;  %4972 = vmatpush1.bf16.msra.mxu0 %v4971_v15  ;;  %v4977_v33 = vpack.c.bf16 %v915_v62, %v914_v17  ;;  %v965_v15 = vld [vmem:[%s8418_s1 + $0x428] sm:$0xff] }
  0xe5   : > { %4973 = vmatprep.subr.bf16.mxu0 %v5944_v3  ;;  %v6784_v62 = vld [vmem:[#allocation2 + $0x1c9] sm:$0xff] }
  0xe7   : > { %1313 = vmatmul.mubr.f32.gmra.mrb[16].mxu0 %v6629_v31 }
  0xe8   : > { %1317 = vmatprep.mubr.f32.mxu0 %v6422_v39  ;;  %4975 = vmatpush1.bf16.msra.mxu0 %v4974_v24  ;;  %v4980_v39 = vpack.c.bf16 %v917_v8, %v916_v4  ;;  %v967_v24 = vld [vmem:[%s8418_s1 + $0x438] sm:$0xff] }
  0xe9   : > { %4976 = vmatprep.subr.bf16.mxu0 %v5944_v3  ;;  %v6794_v8 = vld [vmem:[#allocation2 + $0x1d1] sm:$0xff] }
  0xeb   : > { %1318 = vmatmul.mubr.f32.gmra.mrb[18].mxu0 %v6640_v34 }
  0xec   : > { %1322 = vmatprep.mubr.f32.mxu0 %v6433_v45  ;;  %4978 = vmatpush1.bf16.msra.mxu0 %v4977_v33  ;;  %v4983_v45 = vpack.c.bf16 %v919_v13, %v918_v10  ;;  %v969_v33 = vld [vmem:[%s8418_s1 + $0x448] sm:$0xff] }
  0xed   : > { %4979 = vmatprep.subr.bf16.mxu0 %v5944_v3  ;;  %v6802_v10 = vld [vmem:[#allocation2 + $0x207] sm:$0xff] }
  0xef   : > { %1323 = vmatmul.mubr.f32.gmra.mrb[20].mxu0 %v6651_v9 }
  0xf0   : > { %1327 = vmatprep.mubr.f32.mxu0 %v6444_v53  ;;  %4981 = vmatpush1.bf16.msra.mxu0 %v4980_v39  ;;  %v4986_v53 = vpack.c.bf16 %v921_v14, %v920_v12  ;;  %v971_v39 = vld [vmem:[%s8418_s1 + $0x458] sm:$0xff]  ;;  %v973_v12 = vld [vmem:[%s8418_s1 + $0x468] sm:$0xff] }
  0xf1   : > { %4982 = vmatprep.subr.bf16.mxu0 %v5944_v3  ;;  %v6814_v14 = vld [vmem:[#allocation2 + $0x20f] sm:$0xff] }
  0xf3   : > { %1328 = vmatmul.mubr.f32.gmra.mrb[22].mxu0 %v6662_v20 }
  0xf4   : > { %1332 = vmatprep.mubr.f32.mxu0 %v6455_v58  ;;  %4984 = vmatpush1.bf16.msra.mxu0 %v4983_v45  ;;  %v4989_v58 = vpack.c.bf16 %v923_v23, %v922_v22  ;;  %v972_v45 = vld [vmem:[%s8418_s1 + $0x460] sm:$0xff]  ;;  %v6818_v22 = vld [vmem:[#allocation2 + $0x1f1] sm:$0xff] }
  0xf5   : > { %4985 = vmatprep.subr.bf16.mxu0 %v5944_v3  ;;  %v974_v23 = vld [vmem:[%s8418_s1 + $0x470] sm:$0xff] }
  0xf7   : > { %1333 = vmatmul.mubr.f32.gmra.mrb[24].mxu0 %v6673_v49 }
  0xf8   : > { %1337 = vmatprep.mubr.f32.mxu0 %v6466_v0  ;;  %4987 = vmatpush1.bf16.msra.mxu0 %v4986_v53  ;;  %v4992_v0 = vpack.c.bf16 %v925_v60, %v924_v25  ;;  %v5069_v53 = vpack.c.bf16 %v973_v12, %v972_v45  ;;  %v928_v25 = vld [vmem:[%s8418_s1 + $0x300] sm:$0xff]  ;;  %v929_v60 = vld [vmem:[%s8418_s1 + $0x308] sm:$0xff] }
  0xf9   : > { %4988 = vmatprep.subr.bf16.mxu0 %v5944_v3  ;;  %v5908_v45 = vld [vmem:[#allocation2 + $0x88] sm:$0xff]  ;;  %v944_v12 = vld [vmem:[%s8418_s1 + $0x380] sm:$0xff] }
  0xfb   : > { %1338 = vmatmul.mubr.f32.gmra.mrb[26].mxu0 %v6684_v56 }
  0xfc   : > { %1342 = vmatprep.mubr.f32.mxu0 %v6471_v1  ;;  %4990 = vmatpush1.bf16.msra.mxu0 %v4989_v58  ;;  %v4995_v1 = vpack.c.bf16 %v927_v18, %v926_v26  ;;  %v975_v58 = vld [vmem:[%s8418_s1 + $0x478] sm:$0xff]  ;;  %v4998_v26 = vpack.c.bf16 %v929_v60, %v928_v25  ;;  %v930_v18 = vld [vmem:[%s8418_s1 + $0x310] sm:$0xff]  ;;  %v5910_v60 = vld [vmem:[#allocation2 + $0xa8] sm:$0xff] }
  0xfd   : > { %4991 = vmatprep.subr.bf16.mxu0 %v5944_v3  ;;  %v947_v25 = vld [vmem:[%s8418_s1 + $0x398] sm:$0xff] }
  0xff   : > { %1343 = vmatmul.mubr.f32.gmra.mrb[28].mxu0 %v6695_v32 }
 0x100   : > { %1347 = vmatprep.mubr.f32.mxu0 %v6476_v35  ;;  %4993 = vmatpush1.bf16.msra.mxu0 %v4992_v0  ;;  %v6716_v35 = vld [vmem:[#allocation2 + $0x111] sm:$0xff]  ;;  %v5073_v0 = vpack.c.bf16 %v975_v58, %v974_v23 }
 0x101   : > { %4994 = vmatprep.subr.bf16.mxu0 %v5944_v3  ;;  %v5909_v23 = vld [vmem:[#allocation2 + $0x90] sm:$0xff] }
 0x102   : > { %v946_v58 = vld [vmem:[%s8418_s1 + $0x390] sm:$0xff] }
 0x103   : > { %1348 = vmatmul.mubr.f32.gmra.mrb[30].mxu0 %v6706_v36 }
 0x104   : > { %1352 = vmatprep.mubr.f32.mxu0 %v6480_v2  ;;  %4996 = vmatpush1.bf16.msra.mxu0 %v4995_v1  ;;  %v6724_v2 = vld [vmem:[#allocation2 + $0x131] sm:$0xff] }
 0x105   : > { %4997 = vmatprep.subr.bf16.mxu0 %v5944_v3  ;;  %v931_v1 = vld [vmem:[%s8418_s1 + $0x318] sm:$0xff] }
 0x107   : > { %1353 = vmatmul.mubr.f32.gmra.mrb[32].mxu0 %v6711_v38 }
 0x108   : > { %1357 = vmatprep.mubr.f32.mxu0 %v6484_v37  ;;  %v6732_v37 = vld [vmem:[#allocation2 + $0x151] sm:$0xff] }
 0x10b   : > { %1358 = vmatmul.mubr.f32.gmra.mrb[34].mxu0 %v6716_v35 }
 0x10c   : > { %1362 = vmatprep.mubr.f32.mxu0 %v6488_v5  ;;  %v6736_v5 = vld [vmem:[#allocation2 + $0x169] sm:$0xff] }
 0x10f   : > { %1363 = vmatmul.mubr.f32.gmra.mrb[36].mxu0 %v6720_v7 }
 0x110   : > { %1367 = vmatprep.mubr.f32.mxu0 %v6492_v40  ;;  %v6740_v40 = vld [vmem:[#allocation2 + $0x171] sm:$0xff] }
 0x113   : > { %1368 = vmatmul.mubr.f32.gmra.mrb[38].mxu0 %v6724_v2 }
 0x114   : > { %1372 = vmatprep.mubr.f32.mxu0 %v6496_v41  ;;  %v6744_v41 = vld [vmem:[#allocation2 + $0x189] sm:$0xff] }
 0x117   : > { %1373 = vmatmul.mubr.f32.gmra.mrb[40].mxu0 %v6728_v42 }
 0x118   : > { %1377 = vmatprep.mubr.f32.mxu0 %v6500_v43  ;;  %v960_v43 = vld [vmem:[%s8418_s1 + $0x400] sm:$0xff] }
 0x11b   : > { %1378 = vmatmul.mubr.f32.gmra.mrb[42].mxu0 %v6732_v37 }
 0x11c   : > { %1382 = vmatprep.mubr.f32.mxu0 %v6504_v46  ;;  %v961_v46 = vld [vmem:[%s8418_s1 + $0x408] sm:$0xff] }
 0x11d   : > { %v5045_v44 = vpack.c.bf16 %v961_v46, %v960_v43  ;;  %v5902_v43 = vld [vmem:[#allocation2 + $0x28] sm:$0xff]  ;;  %v932_v46 = vld [vmem:[%s8418_s1 + $0x320] sm:$0xff] }
 0x11f   : > { %1383 = vmatmul.mubr.f32.gmra.mrb[44].mxu0 %v6736_v5  ;;  %5046 = vmatprep.subr.bf16.mxu1 %v5045_v44 }
 0x120   : > { %1387 = vmatprep.mubr.f32.mxu0 %v6508_v47  ;;  %v6754_v47 = vld [vmem:[#allocation2 + $0x191] sm:$0xff]  ;;  %5048 = vmatpush3.bf16.msra.mxu1 %v5045_v44  ;;  %v933_v44 = vld [vmem:[%s8418_s1 + $0x328] sm:$0xff] }
 0x123   : > { %1388 = vmatmul.mubr.f32.gmra.mrb[46].mxu0 %v6740_v40 }
 0x124   : > { %1392 = vmatprep.mubr.f32.mxu0 %v6512_v48  ;;  %v962_v48 = vld [vmem:[%s8418_s1 + $0x410] sm:$0xff] }
 0x125   : > { %v5049_v52 = vpack.c.bf16 %v963_v11, %v962_v48  ;;  %v5903_v48 = vld [vmem:[#allocation2 + $0x30] sm:$0xff] }
 0x126   : > { %v934_v11 = vld [vmem:[%s8418_s1 + $0x330] sm:$0xff] }
 0x127   : > { %1393 = vmatmul.mubr.f32.gmra.mrb[48].mxu0 %v6744_v41  ;;  %5050 = vmatprep.subr.bf16.mxu1 %v5049_v52 }
 0x128   : > { %1397 = vmatprep.mubr.f32.mxu0 %v6516_v50  ;;  %5052 = vmatpush3.bf16.msra.mxu1 %v5049_v52  ;;  %v964_v50 = vld [vmem:[%s8418_s1 + $0x420] sm:$0xff]  ;;  %v935_v52 = vld [vmem:[%s8418_s1 + $0x338] sm:$0xff] }
 0x129   : > { %v5053_v16 = vpack.c.bf16 %v965_v15, %v964_v50  ;;  %v5904_v50 = vld [vmem:[#allocation2 + $0x48] sm:$0xff]  ;;  %v936_v15 = vld [vmem:[%s8418_s1 + $0x340] sm:$0xff] }
 0x12b   : > { %1398 = vmatmul.mubr.f32.gmra.mrb[50].mxu0 %v6754_v47  ;;  %5054 = vmatprep.subr.bf16.mxu1 %v5053_v16 }
 0x12c   : > { %1402 = vmatprep.mubr.f32.mxu0 %v6520_v51  ;;  %5056 = vmatpush3.bf16.msra.mxu1 %v5053_v16  ;;  %v966_v51 = vld [vmem:[%s8418_s1 + $0x430] sm:$0xff]  ;;  %v937_v16 = vld [vmem:[%s8418_s1 + $0x348] sm:$0xff] }
 0x12d   : > { %v5057_v17 = vpack.c.bf16 %v967_v24, %v966_v51  ;;  %v5905_v51 = vld [vmem:[#allocation2 + $0x50] sm:$0xff] }
 0x12e   : > { %v938_v24 = vld [vmem:[%s8418_s1 + $0x350] sm:$0xff] }
 0x12f   : > { %1403 = vmatmul.mubr.f32.gmra.mrb[52].mxu0 %v6764_v6  ;;  %5058 = vmatprep.subr.bf16.mxu1 %v5057_v17 }
 0x130   : > { %1407 = vmatprep.mubr.f32.mxu0 %v6528_v55  ;;  %5060 = vmatpush3.bf16.msra.mxu1 %v5057_v17  ;;  %v968_v55 = vld [vmem:[%s8418_s1 + $0x440] sm:$0xff]  ;;  %v939_v17 = vld [vmem:[%s8418_s1 + $0x358] sm:$0xff] }
 0x131   : > { %v5061_v4 = vpack.c.bf16 %v969_v33, %v968_v55  ;;  %v5906_v55 = vld [vmem:[#allocation2 + $0x68] sm:$0xff]  ;;  %v940_v33 = vld [vmem:[%s8418_s1 + $0x360] sm:$0xff] }
 0x133   : > { %1408 = vmatmul.mubr.f32.gmra.mrb[54].mxu0 %v6774_v57  ;;  %5062 = vmatprep.subr.bf16.mxu1 %v5061_v4 }
 0x134   : > { %1412 = vmatprep.mubr.f32.mxu0 %v6536_v59  ;;  %5064 = vmatpush3.bf16.msra.mxu1 %v5061_v4  ;;  %v970_v59 = vld [vmem:[%s8418_s1 + $0x450] sm:$0xff]  ;;  %v941_v4 = vld [vmem:[%s8418_s1 + $0x368] sm:$0xff] }
 0x135   : > { %v5065_v13 = vpack.c.bf16 %v971_v39, %v970_v59  ;;  %v5907_v59 = vld [vmem:[#allocation2 + $0x70] sm:$0xff] }
 0x136   : > { %v942_v39 = vld [vmem:[%s8418_s1 + $0x370] sm:$0xff] }
 0x137   : > { %1413 = vmatmul.mubr.f32.gmra.mrb[56].mxu0 %v6784_v62  ;;  %5066 = vmatprep.subr.bf16.mxu1 %v5065_v13 }
 0x138   : > { %1417 = vmatprep.mubr.f32.mxu0 %v6540_v63  ;;  %v6806_v63 = vld [vmem:[#allocation2 + $0x1e9] sm:$0xff]  ;;  %5068 = vmatpush3.bf16.msra.mxu1 %v5065_v13  ;;  %v943_v13 = vld [vmem:[%s8418_s1 + $0x378] sm:$0xff] }
 0x139   : > { %5070 = vmatprep.subr.bf16.mxu1 %v5069_v53 }
 0x13b   : > { %1418 = vmatmul.mubr.f32.gmra.mrb[58].mxu0 %v6794_v8 }
 0x13c   : > { %1422 = vmatprep.mubr.f32.mxu0 %v6802_v10  ;;  %5072 = vmatpush3.bf16.msra.mxu1 %v5069_v53  ;;  %v945_v53 = vld [vmem:[%s8418_s1 + $0x388] sm:$0xff] }
 0x13d   : > { %5074 = vmatprep.subr.bf16.mxu1 %v5073_v0 }
 0x13f   : > { %1423 = vmatmul.mubr.f32.gmra.mrb[60].mxu0 %v6806_v63 }
 0x140   : > { %1427 = vmatprep.mubr.f32.mxu0 %v6814_v14  ;;  %5076 = vmatpush3.bf16.msra.mxu1 %v5073_v0  ;;  %v948_v0 = vld [vmem:[%s8418_s1 + $0x3a0] sm:$0xff] }
 0x141   : > { %5077 = vmatprep.subr.bf16.mxu1 %v5944_v3 }
 0x143   : > { %1428 = vmatmul.mubr.f32.gmra.mrb[62].mxu0 %v6818_v22  ;;  %4726 = vmatmul.mubr.f32.vlgmr.msra.gmra.mrb[0].mxu1 %v6596_v27 }
 0x144   : > { %1497 = vmatprep.mubr.f32.mxu0 %v6565_v21  ;;  %v5001_v21 = vpack.c.bf16 %v931_v1, %v930_v18  ;;  %4728 = vmatprep.mubr.f32.mxu1 %v6607_v28  ;;  %v5911_v18 = vld [vmem:[#allocation2 + $0xb0] sm:$0xff] }
 0x145   : > { %v950_v1 = vld [vmem:[%s8418_s1 + $0x3b0] sm:$0xff] }
 0x147   : > { %1498 = vmatmul.mubr.f32.vlgmr.msra.gmra.mrb[0].mxu0 %v5902_v43  ;;  %4729 = vmatmul.mubr.f32.gmra.mrb[2].mxu1 %v6618_v29  ;;  %v951_v43 = vld [vmem:[%s8418_s1 + $0x3b8] sm:$0xff] }
 0x148   : > { %4999 = vmatpush1.bf16.msra.mxu0 %v4998_v26  ;;  %1502 = vmatprep.mubr.f32.mxu0 %v6576_v30  ;;  %v5004_v30 = vpack.c.bf16 %v933_v44, %v932_v46  ;;  %v949_v26 = vld [vmem:[%s8418_s1 + $0x3a8] sm:$0xff]  ;;  %v952_v46 = vld [vmem:[%s8418_s1 + $0x3c0] sm:$0xff] }
 0x149   : > { %5000 = vmatprep.subr.bf16.mxu0 %v5944_v3  ;;  %4731 = vmatprep.mubr.f32.mxu1 %v6629_v31  ;;  %v953_v44 = vld [vmem:[%s8418_s1 + $0x3c8] sm:$0xff] }
 0x14b   : > { %1503 = vmatmul.mubr.f32.gmra.mrb[2].mxu0 %v5903_v48  ;;  %4732 = vmatmul.mubr.f32.gmra.mrb[4].mxu1 %v6640_v34  ;;  %v5913_v48 = vld [vmem:[#allocation2 + $0xd0] sm:$0xff] }
 0x14c   : > { %1507 = vmatprep.mubr.f32.mxu0 %v6344_v61  ;;  %5002 = vmatpush1.bf16.msra.mxu0 %v5001_v21  ;;  %v5007_v61 = vpack.c.bf16 %v935_v52, %v934_v11  ;;  %v5912_v21 = vld [vmem:[#allocation2 + $0xc8] sm:$0xff]  ;;  %v955_v11 = vld [vmem:[%s8418_s1 + $0x3d8] sm:$0xff] }
 0x14d   : > { %5003 = vmatprep.subr.bf16.mxu0 %v5944_v3  ;;  %4734 = vmatprep.mubr.f32.mxu1 %v6651_v9  ;;  %v5914_v52 = vld [vmem:[#allocation2 + $0xe8] sm:$0xff] }
 0x14f   : > { %1508 = vmatmul.mubr.f32.gmra.mrb[4].mxu0 %v5904_v50  ;;  %4735 = vmatmul.mubr.f32.gmra.mrb[6].mxu1 %v6662_v20  ;;  %v956_v50 = vld [vmem:[%s8418_s1 + $0x3e0] sm:$0xff] }
 0x150   : > { %1512 = vmatprep.mubr.f32.mxu0 %v6596_v27  ;;  %5005 = vmatpush1.bf16.msra.mxu0 %v5004_v30  ;;  %v5010_v27 = vpack.c.bf16 %v937_v16, %v936_v15  ;;  %v954_v30 = vld [vmem:[%s8418_s1 + $0x3d0] sm:$0xff] }
 0x151   : > { %5006 = vmatprep.subr.bf16.mxu0 %v5944_v3  ;;  %4737 = vmatprep.mubr.f32.mxu1 %v6673_v49  ;;  %v5915_v15 = vld [vmem:[#allocation2 + $0xf0] sm:$0xff] }
 0x152   : > { %v733_v16 = vld [vmem:[#allocation2 + $0x209] sm:$0xff] }
 0x153   : > { %1513 = vmatmul.mubr.f32.gmra.mrb[6].mxu0 %v5905_v51  ;;  %4738 = vmatmul.mubr.f32.gmra.mrb[8].mxu1 %v6684_v56  ;;  %v958_v51 = vld [vmem:[%s8418_s1 + $0x3f0] sm:$0xff] }
 0x154   : > { %1517 = vmatprep.mubr.f32.mxu0 %v6607_v28  ;;  %5008 = vmatpush1.bf16.msra.mxu0 %v5007_v61  ;;  %v5013_v28 = vpack.c.bf16 %v939_v17, %v938_v24  ;;  %v957_v61 = vld [vmem:[%s8418_s1 + $0x3e8] sm:$0xff]  ;;  %v734_v24 = vld [vmem:[#allocation2 + $0x211] sm:$0xff] }
 0x155   : > { %5009 = vmatprep.subr.bf16.mxu0 %v5944_v3  ;;  %4740 = vmatprep.mubr.f32.mxu1 %v6695_v32  ;;  %v5916_v17 = vld [vmem:[#allocation2 + $0x108] sm:$0xff] }
 0x157   : > { %1518 = vmatmul.mubr.f32.gmra.mrb[8].mxu0 %v5906_v55  ;;  %4741 = vmatmul.mubr.f32.gmra.mrb[10].mxu1 %v6706_v36  ;;  %v5917_v55 = vld [vmem:[#allocation2 + $0x110] sm:$0xff] }
 0x158   : > { %1522 = vmatprep.mubr.f32.mxu0 %v6618_v29  ;;  %5011 = vmatpush1.bf16.msra.mxu0 %v5010_v27  ;;  %v5016_v29 = vpack.c.bf16 %v941_v4, %v940_v33  ;;  %v959_v27 = vld [vmem:[%s8418_s1 + $0x3f8] sm:$0xff]  ;;  %v5919_v33 = vld [vmem:[#allocation2 + $0x130] sm:$0xff]  ;;  %v5920_v4 = vld [vmem:[#allocation2 + $0x148] sm:$0xff] }
 0x159   : > { %5012 = vmatprep.subr.bf16.mxu0 %v5944_v3  ;;  %4743 = vmatprep.mubr.f32.mxu1 %v6711_v38 }
 0x15b   : > { %1523 = vmatmul.mubr.f32.gmra.mrb[10].mxu0 %v5907_v59  ;;  %4744 = vmatmul.mubr.f32.gmra.mrb[12].mxu1 %v6716_v35  ;;  %v5922_v59 = vld [vmem:[#allocation2 + $0x168] sm:$0xff] }
 0x15c   : > { %1527 = vmatprep.mubr.f32.mxu0 %v6629_v31  ;;  %5014 = vmatpush1.bf16.msra.mxu0 %v5013_v28  ;;  %v5019_v31 = vpack.c.bf16 %v943_v13, %v942_v39  ;;  %v5918_v28 = vld [vmem:[#allocation2 + $0x128] sm:$0xff] }
 0x15d   : > { %5015 = vmatprep.subr.bf16.mxu0 %v5944_v3  ;;  %4746 = vmatprep.mubr.f32.mxu1 %v6720_v7  ;;  %v737_v39 = vld [vmem:[#allocation2 + $0x4f] sm:$0xff]  ;;  %v738_v13 = vld [vmem:[#allocation2 + $0x67] sm:$0xff] }
 0x15f   : > { %1528 = vmatmul.mubr.f32.gmra.mrb[12].mxu0 %v5908_v45  ;;  %4747 = vmatmul.mubr.f32.gmra.mrb[14].mxu1 %v6724_v2  ;;  %v771_v45 = vld [vmem:[#allocation2 + $0x70] sm:$0xff] }
 0x160   : > { %1532 = vmatprep.mubr.f32.mxu0 %v6640_v34  ;;  %5017 = vmatpush1.bf16.msra.mxu0 %v5016_v29  ;;  %v5022_v34 = vpack.c.bf16 %v945_v53, %v944_v12  ;;  %v831_v29 = vld [vmem:[#allocation2 + $0x231] sm:$0xff]  ;;  %v740_v12 = vld [vmem:[#allocation2 + $0x87] sm:$0xff] }
 0x161   : > { %5018 = vmatprep.subr.bf16.mxu0 %v5944_v3  ;;  %4749 = vmatprep.mubr.f32.mxu1 %v6728_v42  ;;  %v773_v53 = vld [vmem:[#allocation2 + $0x90] sm:$0xff] }
 0x163   : > { %1533 = vmatmul.mubr.f32.gmra.mrb[14].mxu0 %v5909_v23  ;;  %4750 = vmatmul.mubr.f32.gmra.mrb[16].mxu1 %v6732_v37  ;;  %v774_v23 = vld [vmem:[#allocation2 + $0xa8] sm:$0xff] }
 0x164   : > { %1537 = vmatprep.mubr.f32.mxu0 %v6651_v9  ;;  %5020 = vmatpush1.bf16.msra.mxu0 %v5019_v31  ;;  %v5025_v9 = vpack.c.bf16 %v947_v25, %v946_v58  ;;  %v739_v31 = vld [vmem:[#allocation2 + $0x6f] sm:$0xff] }
 0x165   : > { %5021 = vmatprep.subr.bf16.mxu0 %v5944_v3  ;;  %4752 = vmatprep.mubr.f32.mxu1 %v6736_v5  ;;  %v775_v58 = vld [vmem:[#allocation2 + $0xb0] sm:$0xff] }
 0x166   : > { %v743_v25 = vld [vmem:[#allocation2 + $0xaf] sm:$0xff] }
 0x167   : > { %1538 = vmatmul.mubr.f32.gmra.mrb[16].mxu0 %v5910_v60  ;;  %4753 = vmatmul.mubr.f32.gmra.mrb[18].mxu1 %v6740_v40  ;;  %v776_v60 = vld [vmem:[#allocation2 + $0xc8] sm:$0xff] }
 0x168   : > { %1542 = vmatprep.mubr.f32.mxu0 %v6662_v20  ;;  %5023 = vmatpush1.bf16.msra.mxu0 %v5022_v34  ;;  %v5028_v20 = vpack.c.bf16 %v949_v26, %v948_v0  ;;  %v742_v34 = vld [vmem:[#allocation2 + $0xa7] sm:$0xff]  ;;  %v777_v0 = vld [vmem:[#allocation2 + $0xd0] sm:$0xff] }
 0x169   : > { %5024 = vmatprep.subr.bf16.mxu0 %v5944_v3  ;;  %4755 = vmatprep.mubr.f32.mxu1 %v6744_v41  ;;  %v745_v26 = vld [vmem:[#allocation2 + $0xcf] sm:$0xff] }
 0x16b   : > { %1543 = vmatmul.mubr.f32.gmra.mrb[18].mxu0 %v5911_v18  ;;  %4756 = vmatmul.mubr.f32.gmra.mrb[20].mxu1 %v6754_v47  ;;  %v778_v18 = vld [vmem:[#allocation2 + $0xe8] sm:$0xff] }
 0x16c   : > { %1547 = vmatprep.mubr.f32.mxu0 %v6673_v49  ;;  %5026 = vmatpush1.bf16.msra.mxu0 %v5025_v9  ;;  %v5031_v49 = vpack.c.bf16 %v951_v43, %v950_v1  ;;  %v744_v9 = vld [vmem:[#allocation2 + $0xc7] sm:$0xff]  ;;  %v779_v1 = vld [vmem:[#allocation2 + $0xf0] sm:$0xff] }
 0x16d   : > { %5027 = vmatprep.subr.bf16.mxu0 %v5944_v3  ;;  %4758 = vmatprep.mubr.f32.mxu1 %v6764_v6  ;;  %v747_v43 = vld [vmem:[#allocation2 + $0xef] sm:$0xff] }
 0x16f   : > { %1548 = vmatmul.mubr.f32.gmra.mrb[20].mxu0 %v5912_v21  ;;  %4759 = vmatmul.mubr.f32.gmra.mrb[22].mxu1 %v6774_v57  ;;  %v780_v21 = vld [vmem:[#allocation2 + $0x108] sm:$0xff] }
 0x170   : > { %1552 = vmatprep.mubr.f32.mxu0 %v6684_v56  ;;  %5029 = vmatpush1.bf16.msra.mxu0 %v5028_v20  ;;  %v5034_v56 = vpack.c.bf16 %v953_v44, %v952_v46  ;;  %v746_v20 = vld [vmem:[#allocation2 + $0xe7] sm:$0xff]  ;;  %v781_v46 = vld [vmem:[#allocation2 + $0x110] sm:$0xff] }
 0x171   : > { %5030 = vmatprep.subr.bf16.mxu0 %v5944_v3  ;;  %4761 = vmatprep.mubr.f32.mxu1 %v6784_v62  ;;  %v749_v44 = vld [vmem:[#allocation2 + $0x10f] sm:$0xff] }
 0x173   : > { %1553 = vmatmul.mubr.f32.gmra.mrb[22].mxu0 %v5913_v48  ;;  %4762 = vmatmul.mubr.f32.gmra.mrb[24].mxu1 %v6794_v8  ;;  %v782_v48 = vld [vmem:[#allocation2 + $0x128] sm:$0xff] }
 0x174   : > { %1557 = vmatprep.mubr.f32.mxu0 %v6695_v32  ;;  %5032 = vmatpush1.bf16.msra.mxu0 %v5031_v49  ;;  %v5037_v32 = vpack.c.bf16 %v955_v11, %v954_v30  ;;  %v748_v49 = vld [vmem:[#allocation2 + $0x107] sm:$0xff]  ;;  %v783_v30 = vld [vmem:[#allocation2 + $0x130] sm:$0xff] }
 0x175   : > { %5033 = vmatprep.subr.bf16.mxu0 %v5944_v3  ;;  %4764 = vmatprep.mubr.f32.mxu1 %v6806_v63  ;;  %v751_v11 = vld [vmem:[#allocation2 + $0x12f] sm:$0xff] }
 0x177   : > { %1558 = vmatmul.mubr.f32.gmra.mrb[24].mxu0 %v5914_v52  ;;  %4765 = vmatmul.mubr.f32.gmra.mrb[26].mxu1 %v6818_v22  ;;  %v784_v52 = vld [vmem:[#allocation2 + $0x148] sm:$0xff] }
 0x178   : > { %1562 = vmatprep.mubr.f32.mxu0 %v6706_v36  ;;  %5035 = vmatpush1.bf16.msra.mxu0 %v5034_v56  ;;  %v5040_v36 = vpack.c.bf16 %v957_v61, %v956_v50  ;;  %v750_v56 = vld [vmem:[#allocation2 + $0x127] sm:$0xff]  ;;  %v785_v50 = vld [vmem:[#allocation2 + $0x150] sm:$0xff] }
 0x179   : > { %5036 = vmatprep.subr.bf16.mxu0 %v5944_v3  ;;  %4767 = vmatprep.mubr.f32.mxu1 %v733_v16  ;;  %v753_v61 = vld [vmem:[#allocation2 + $0x14f] sm:$0xff] }
 0x17b   : > { %1563 = vmatmul.mubr.f32.gmra.mrb[26].mxu0 %v5915_v15  ;;  %4768 = vmatmul.mubr.f32.gmra.mrb[28].mxu1 %v734_v24  ;;  %v786_v15 = vld [vmem:[#allocation2 + $0x168] sm:$0xff] }
 0x17c   : > { %1567 = vmatprep.mubr.f32.mxu0 %v6711_v38  ;;  %5038 = vmatpush1.bf16.msra.mxu0 %v5037_v32  ;;  %v5043_v38 = vpack.c.bf16 %v959_v27, %v958_v51  ;;  %v752_v32 = vld [vmem:[#allocation2 + $0x147] sm:$0xff]  ;;  %v755_v51 = vld [vmem:[#allocation2 + $0x16f] sm:$0xff] }
 0x17d   : > { %5039 = vmatprep.subr.bf16.mxu0 %v5944_v3  ;;  %v788_v27 = vld [vmem:[#allocation2 + $0x188] sm:$0xff] }
 0x17f   : > { %1568 = vmatmul.mubr.f32.gmra.mrb[28].mxu0 %v5916_v17  ;;  %v789_v17 = vld [vmem:[#allocation2 + $0x190] sm:$0xff] }
 0x180   : > { %1572 = vmatprep.mubr.f32.mxu0 %v6716_v35  ;;  %5041 = vmatpush1.bf16.msra.mxu0 %v5040_v36  ;;  %v5921_v35 = vld [vmem:[#allocation2 + $0x150] sm:$0xff]  ;;  %v754_v36 = vld [vmem:[#allocation2 + $0x167] sm:$0xff] }
 0x181   : > { %5042 = vmatprep.subr.bf16.mxu0 %v5944_v3 }
 0x183   : > { %1573 = vmatmul.mubr.f32.gmra.mrb[30].mxu0 %v5917_v55  ;;  %v790_v55 = vld [vmem:[#allocation2 + $0x1a8] sm:$0xff] }
 0x184   : > { %1577 = vmatprep.mubr.f32.mxu0 %v6720_v7  ;;  %5044 = vmatpush1.bf16.msra.mxu0 %v5043_v38  ;;  %v5923_v7 = vld [vmem:[#allocation2 + $0x170] sm:$0xff] }
 0x185   : > { %v757_v38 = vld [vmem:[#allocation2 + $0x18f] sm:$0xff] }
 0x187   : > { %1578 = vmatmul.mubr.f32.gmra.mrb[32].mxu0 %v5918_v28 }
 0x188   : > { %1582 = vmatprep.mubr.f32.mxu0 %v6724_v2  ;;  %v5924_v2 = vld [vmem:[#allocation2 + $0x188] sm:$0xff] }
 0x18b   : > { %1583 = vmatmul.mubr.f32.gmra.mrb[34].mxu0 %v5919_v33 }
 0x18c   : > { %1587 = vmatprep.mubr.f32.mxu0 %v6728_v42  ;;  %v5925_v42 = vld [vmem:[#allocation2 + $0x190] sm:$0xff] }
 0x18f   : > { %1588 = vmatmul.mubr.f32.gmra.mrb[36].mxu0 %v5920_v4  ;;  %v7002_v4 = vld [vmem:[#allocation2 + $0x1a7] sm:$0xff] }
 0x190   : > { %1592 = vmatprep.mubr.f32.mxu0 %v6732_v37  ;;  %v5926_v37 = vld [vmem:[#allocation2 + $0x1a8] sm:$0xff] }
 0x193   : > { %1593 = vmatmul.mubr.f32.gmra.mrb[38].mxu0 %v5921_v35  ;;  %v7004_v35 = vld [vmem:[#allocation2 + $0x8] sm:$0xff] }
 0x194   : > { %1597 = vmatprep.mubr.f32.mxu0 %v6736_v5  ;;  %v5927_v5 = vld [vmem:[#allocation2 + $0x1b0] sm:$0xff]  ;;  %411 = vst.msk [vmem:[#allocation3 + $0x28] sm:$0xff] %vm405_vm0, %v7004_v35  ;;  %406 = vst.msk [vmem:[#allocation3] sm:$0xff] %vm405_vm0, %v7004_v35 }
 0x195   : > { %407 = vst.msk [vmem:[#allocation3 + $0x8] sm:$0xff] %vm405_vm0, %v7004_v35  ;;  %408 = vst.msk [vmem:[#allocation3 + $0x10] sm:$0xff] %vm405_vm0, %v7004_v35 }
 0x196   : > { %409 = vst.msk [vmem:[#allocation3 + $0x18] sm:$0xff] %vm405_vm0, %v7004_v35  ;;  %410 = vst.msk [vmem:[#allocation3 + $0x20] sm:$0xff] %vm405_vm0, %v7004_v35 }
 0x197   : > { %1598 = vmatmul.mubr.f32.gmra.mrb[40].mxu0 %v5922_v59  ;;  %412 = vst.msk [vmem:[#allocation3 + $0x30] sm:$0xff] %vm405_vm0, %v7004_v35  ;;  %413 = vst.msk [vmem:[#allocation3 + $0x38] sm:$0xff] %vm405_vm0, %v7004_v35  ;;  %v791_v59 = vld [vmem:[#allocation2 + $0x1b0] sm:$0xff] }
 0x198   : > { %1602 = vmatprep.mubr.f32.mxu0 %v6740_v40  ;;  %v5928_v40 = vld [vmem:[#allocation2 + $0x1c8] sm:$0xff]  ;;  %414 = vst.msk [vmem:[#allocation3 + $0x40] sm:$0xff] %vm405_vm0, %v7004_v35  ;;  %415 = vst.msk [vmem:[#allocation3 + $0x48] sm:$0xff] %vm405_vm0, %v7004_v35 }
 0x199   : > { %416 = vst.msk [vmem:[#allocation3 + $0x50] sm:$0xff] %vm405_vm0, %v7004_v35  ;;  %417 = vst.msk [vmem:[#allocation3 + $0x58] sm:$0xff] %vm405_vm0, %v7004_v35 }
 0x19a   : > { %418 = vst.msk [vmem:[#allocation3 + $0x60] sm:$0xff] %vm405_vm0, %v7004_v35  ;;  %419 = vst.msk [vmem:[#allocation3 + $0x68] sm:$0xff] %vm405_vm0, %v7004_v35 }
 0x19b   : > { %1603 = vmatmul.mubr.f32.gmra.mrb[42].mxu0 %v5923_v7  ;;  %420 = vst.msk [vmem:[#allocation3 + $0x70] sm:$0xff] %vm405_vm0, %v7004_v35  ;;  %421 = vst.msk [vmem:[#allocation3 + $0x78] sm:$0xff] %vm405_vm0, %v7004_v35  ;;  %v759_v7 = vld [vmem:[#allocation2 + $0x1af] sm:$0xff] }
 0x19c   : > { %1607 = vmatprep.mubr.f32.mxu0 %v6744_v41  ;;  %v5929_v41 = vld [vmem:[#allocation2 + $0x1d0] sm:$0xff]  ;;  %422 = vst.msk [vmem:[#allocation3 + $0x80] sm:$0xff] %vm405_vm0, %v7004_v35  ;;  %423 = vst.msk [vmem:[#allocation3 + $0x88] sm:$0xff] %vm405_vm0, %v7004_v35 }
 0x19d   : > { %424 = vst.msk [vmem:[#allocation3 + $0x90] sm:$0xff] %vm405_vm0, %v7004_v35  ;;  %425 = vst.msk [vmem:[#allocation3 + $0x98] sm:$0xff] %vm405_vm0, %v7004_v35 }
 0x19e   : > { %426 = vst.msk [vmem:[#allocation3 + $0xa0] sm:$0xff] %vm405_vm0, %v7004_v35  ;;  %427 = vst.msk [vmem:[#allocation3 + $0xa8] sm:$0xff] %vm405_vm0, %v7004_v35 }
 0x19f   : > { %1608 = vmatmul.mubr.f32.gmra.mrb[44].mxu0 %v5924_v2  ;;  %428 = vst.msk [vmem:[#allocation3 + $0xb0] sm:$0xff] %vm405_vm0, %v7004_v35  ;;  %429 = vst.msk [vmem:[#allocation3 + $0xb8] sm:$0xff] %vm405_vm0, %v7004_v35  ;;  %v792_v2 = vld [vmem:[#allocation2 + $0x1c8] sm:$0xff] }
 0x1a0   : > { %1612 = vmatprep.mubr.f32.mxu0 %v6754_v47  ;;  %v5930_v47 = vld [vmem:[#allocation2 + $0x1e8] sm:$0xff]  ;;  %430 = vst.msk [vmem:[#allocation3 + $0xc0] sm:$0xff] %vm405_vm0, %v7004_v35  ;;  %431 = vst.msk [vmem:[#allocation3 + $0xc8] sm:$0xff] %vm405_vm0, %v7004_v35 }
 0x1a1   : > { %432 = vst.msk [vmem:[#allocation3 + $0xd0] sm:$0xff] %vm405_vm0, %v7004_v35  ;;  %433 = vst.msk [vmem:[#allocation3 + $0xd8] sm:$0xff] %vm405_vm0, %v7004_v35 }
 0x1a2   : > { %434 = vst.msk [vmem:[#allocation3 + $0xe0] sm:$0xff] %vm405_vm0, %v7004_v35  ;;  %435 = vst.msk [vmem:[#allocation3 + $0xe8] sm:$0xff] %vm405_vm0, %v7004_v35 }
 0x1a3   : > { %1613 = vmatmul.mubr.f32.gmra.mrb[46].mxu0 %v5925_v42  ;;  %436 = vst.msk [vmem:[#allocation3 + $0xf0] sm:$0xff] %vm405_vm0, %v7004_v35  ;;  %437 = vst.msk [vmem:[#allocation3 + $0xf8] sm:$0xff] %vm405_vm0, %v7004_v35 }
 0x1a4   : > { %1617 = vmatprep.mubr.f32.mxu0 %v6764_v6  ;;  %v5931_v6 = vld [vmem:[#allocation2 + $0x1f0] sm:$0xff]  ;;  %438 = vst.msk [vmem:[#allocation3 + $0x100] sm:$0xff] %vm405_vm0, %v7004_v35  ;;  %439 = vst.msk [vmem:[#allocation3 + $0x108] sm:$0xff] %vm405_vm0, %v7004_v35 }
 0x1a5   : > { %440 = vst.msk [vmem:[#allocation3 + $0x110] sm:$0xff] %vm405_vm0, %v7004_v35  ;;  %441 = vst.msk [vmem:[#allocation3 + $0x118] sm:$0xff] %vm405_vm0, %v7004_v35 }
 0x1a6   : > { %442 = vst.msk [vmem:[#allocation3 + $0x120] sm:$0xff] %vm405_vm0, %v7004_v35  ;;  %443 = vst.msk [vmem:[#allocation3 + $0x128] sm:$0xff] %vm405_vm0, %v7004_v35 }
 0x1a7   : > { %1618 = vmatmul.mubr.f32.gmra.mrb[48].mxu0 %v5926_v37  ;;  %444 = vst.msk [vmem:[#allocation3 + $0x130] sm:$0xff] %vm405_vm0, %v7004_v35  ;;  %445 = vst.msk [vmem:[#allocation3 + $0x138] sm:$0xff] %vm405_vm0, %v7004_v35 }
 0x1a8   : > { %1622 = vmatprep.mubr.f32.mxu0 %v6774_v57  ;;  %v830_v57 = vld [vmem:[#allocation2 + $0x229] sm:$0xff]  ;;  %446 = vst.msk [vmem:[#allocation3 + $0x140] sm:$0xff] %vm405_vm0, %v7004_v35  ;;  %447 = vst.msk [vmem:[#allocation3 + $0x148] sm:$0xff] %vm405_vm0, %v7004_v35 }
 0x1a9   : > { %4770 = vmatprep.mubr.f32.mxu1 %v830_v57  ;;  %448 = vst.msk [vmem:[#allocation3 + $0x150] sm:$0xff] %vm405_vm0, %v7004_v35  ;;  %449 = vst.msk [vmem:[#allocation3 + $0x158] sm:$0xff] %vm405_vm0, %v7004_v35 }
 0x1aa   : > { %4771 = vmatmul.mubr.f32.gmra.mrb[30].mxu1 %v831_v29  ;;  %450 = vst.msk [vmem:[#allocation3 + $0x160] sm:$0xff] %vm405_vm0, %v7004_v35  ;;  %451 = vst.msk [vmem:[#allocation3 + $0x168] sm:$0xff] %vm405_vm0, %v7004_v35  ;;  %v762_v29 = vld [vmem:[#allocation2 + $0x1e7] sm:$0xff] }
 0x1ab   : > { %1623 = vmatmul.mubr.f32.gmra.mrb[50].mxu0 %v5927_v5  ;;  %452 = vst.msk [vmem:[#allocation3 + $0x170] sm:$0xff] %vm405_vm0, %v7004_v35  ;;  %453 = vst.msk [vmem:[#allocation3 + $0x178] sm:$0xff] %vm405_vm0, %v7004_v35  ;;  %v760_v5 = vld [vmem:[#allocation2 + $0x1c7] sm:$0xff] }
 0x1ac   : > { %1627 = vmatprep.mubr.f32.mxu0 %v6784_v62  ;;  %v768_v62 = vld [vmem:[#allocation2 + $0x48] sm:$0xff]  ;;  %454 = vst.msk [vmem:[#allocation3 + $0x180] sm:$0xff] %vm405_vm0, %v7004_v35  ;;  %455 = vst.msk [vmem:[#allocation3 + $0x188] sm:$0xff] %vm405_vm0, %v7004_v35 }
 0x1ad   : > { %456 = vst.msk [vmem:[#allocation3 + $0x190] sm:$0xff] %vm405_vm0, %v7004_v35  ;;  %457 = vst.msk [vmem:[#allocation3 + $0x198] sm:$0xff] %vm405_vm0, %v7004_v35 }
 0x1ae   : > { %458 = vst.msk [vmem:[#allocation3 + $0x1a0] sm:$0xff] %vm405_vm0, %v7004_v35  ;;  %459 = vst.msk [vmem:[#allocation3 + $0x1a8] sm:$0xff] %vm405_vm0, %v7004_v35 }
 0x1af   : > { %1628 = vmatmul.mubr.f32.gmra.mrb[52].mxu0 %v5928_v40  ;;  %460 = vst.msk [vmem:[#allocation3 + $0x1b0] sm:$0xff] %vm405_vm0, %v7004_v35  ;;  %461 = vst.msk [vmem:[#allocation3 + $0x1b8] sm:$0xff] %vm405_vm0, %v7004_v35  ;;  %v793_v40 = vld [vmem:[#allocation2 + $0x1d0] sm:$0xff] }
 0x1b0   : > { %1632 = vmatprep.mubr.f32.mxu0 %v6794_v8  ;;  %v736_v8 = vld [vmem:[#allocation2 + $0x47] sm:$0xff]  ;;  %462 = vst.msk [vmem:[#allocation3 + $0x1c0] sm:$0xff] %vm405_vm0, %v7004_v35  ;;  %463 = vst.msk [vmem:[#allocation3 + $0x1c8] sm:$0xff] %vm405_vm0, %v7004_v35 }
 0x1b1   : > { %464 = vst.msk [vmem:[#allocation3 + $0x1d0] sm:$0xff] %vm405_vm0, %v7004_v35  ;;  %465 = vst.msk [vmem:[#allocation3 + $0x1d8] sm:$0xff] %vm405_vm0, %v7004_v35 }
 0x1b2   : > { %466 = vst.msk [vmem:[#allocation3 + $0x1e0] sm:$0xff] %vm405_vm0, %v7004_v35  ;;  %467 = vst.msk [vmem:[#allocation3 + $0x1e8] sm:$0xff] %vm405_vm0, %v7004_v35 }
 0x1b3   : > { %1633 = vmatmul.mubr.f32.gmra.mrb[54].mxu0 %v5929_v41  ;;  %468 = vst.msk [vmem:[#allocation3 + $0x1f0] sm:$0xff] %vm405_vm0, %v7004_v35  ;;  %469 = vst.msk [vmem:[#allocation3 + $0x1f8] sm:$0xff] %vm405_vm0, %v7004_v35  ;;  %v761_v41 = vld [vmem:[#allocation2 + $0x1cf] sm:$0xff] }
 0x1b4   : > { %1637 = vmatprep.mubr.f32.mxu0 %v6806_v63  ;;  %v769_v63 = vld [vmem:[#allocation2 + $0x50] sm:$0xff]  ;;  %470 = vst.msk [vmem:[#allocation3 + $0x200] sm:$0xff] %vm405_vm0, %v7004_v35  ;;  %471 = vst.msk [vmem:[#allocation3 + $0x208] sm:$0xff] %vm405_vm0, %v7004_v35 }
 0x1b5   : > { %472 = vst.msk [vmem:[#allocation3 + $0x210] sm:$0xff] %vm405_vm0, %v7004_v35  ;;  %473 = vst.msk [vmem:[#allocation3 + $0x218] sm:$0xff] %vm405_vm0, %v7004_v35 }
 0x1b6   : > { %474 = vst.msk [vmem:[#allocation3 + $0x220] sm:$0xff] %vm405_vm0, %v7004_v35  ;;  %475 = vst.msk [vmem:[#allocation3 + $0x228] sm:$0xff] %vm405_vm0, %v7004_v35 }
 0x1b7   : > { %1638 = vmatmul.mubr.f32.gmra.mrb[56].mxu0 %v5930_v47  ;;  %476 = vst.msk [vmem:[#allocation3 + $0x230] sm:$0xff] %vm405_vm0, %v7004_v35  ;;  %477 = vst.msk [vmem:[#allocation3 + $0x238] sm:$0xff] %vm405_vm0, %v7004_v35  ;;  %v794_v47 = vld [vmem:[#allocation2 + $0x1e8] sm:$0xff] }
 0x1b8   : > { %1642 = vmatprep.mubr.f32.mxu0 %v6818_v22  ;;  %v770_v22 = vld [vmem:[#allocation2 + $0x68] sm:$0xff] }
 0x1bb   : > { %1643 = vmatmul.mubr.f32.gmra.mrb[58].mxu0 %v5931_v6 }
 0x1bc   : > { %1647 = vmatprep.mubr.f32.mxu0 %v733_v16  ;;  %v787_v16 = vld [vmem:[#allocation2 + $0x170] sm:$0xff] }
 0x1bf   : > { %1648 = vmatmul.mubr.f32.gmra.mrb[60].mxu0 %v6523_v54  ;;  %v772_v54 = vld [vmem:[#allocation2 + $0x88] sm:$0xff] }
 0x1c0   : > { %1652 = vmatprep.mubr.f32.mxu0 %v734_v24  ;;  %v756_v24 = vld [vmem:[#allocation2 + $0x187] sm:$0xff] }
 0x1c3   : > { %1653 = vmatmul.mubr.f32.gmra.mrb[62].mxu0 %v6531_v19  ;;  %v741_v19 = vld [vmem:[#allocation2 + $0x8f] sm:$0xff] }
 0x1c4   : > { %1722 = vmatprep.mubr.f32.mxu0 %v768_v62  ;;  %v795_v62 = vld [vmem:[#allocation2 + $0x1f0] sm:$0xff] }
 0x1c7   : > { %1723 = vmatmul.mubr.f32.vlgmr.msra.gmra.mrb[0].mxu0 %v736_v8  ;;  %v763_v8 = vld [vmem:[#allocation2 + $0x1ef] sm:$0xff] }
 0x1c8   : > { %1727 = vmatprep.mubr.f32.mxu0 %v769_v63 }
 0x1cb   : > { %1728 = vmatmul.mubr.f32.gmra.mrb[2].mxu0 %v737_v39 }
 0x1cc   : > { %1732 = vmatprep.mubr.f32.mxu0 %v770_v22  ;;  %v5933_v22 = vld [vmem:[#allocation2 + $0x208] sm:$0xff] }
 0x1cf   : > { %1733 = vmatmul.mubr.f32.gmra.mrb[4].mxu0 %v738_v13  ;;  %v5934_v13 = vld [vmem:[#allocation2 + $0x210] sm:$0xff] }
 0x1d0   : > { %1737 = vmatprep.mubr.f32.mxu0 %v771_v45 }
 0x1d3   : > { %1738 = vmatmul.mubr.f32.gmra.mrb[6].mxu0 %v739_v31 }
 0x1d4   : > { %1742 = vmatprep.mubr.f32.mxu0 %v772_v54  ;;  %v766_v54 = vld [vmem:[#allocation2 + $0x227] sm:$0xff] }
 0x1d7   : > { %1743 = vmatmul.mubr.f32.gmra.mrb[8].mxu0 %v740_v12  ;;  %v767_v12 = vld [vmem:[#allocation2 + $0x22f] sm:$0xff] }
 0x1d8   : > { %1747 = vmatprep.mubr.f32.mxu0 %v773_v53 }
 0x1db   : > { %1748 = vmatmul.mubr.f32.gmra.mrb[10].mxu0 %v741_v19 }
 0x1dc   : > { %1752 = vmatprep.mubr.f32.mxu0 %v774_v23 }
 0x1df   : > { %1753 = vmatmul.mubr.f32.gmra.mrb[12].mxu0 %v742_v34 }
 0x1e0   : > { %1757 = vmatprep.mubr.f32.mxu0 %v775_v58 }
 0x1e3   : > { %1758 = vmatmul.mubr.f32.gmra.mrb[14].mxu0 %v743_v25 }
 0x1e4   : > { %1762 = vmatprep.mubr.f32.mxu0 %v776_v60  ;;  %v3102_v60 = vld [vmem:[%s8420_s3] sm:$0xff] }
 0x1e7   : > { %1763 = vmatmul.mubr.f32.gmra.mrb[16].mxu0 %v744_v9  ;;  %v3103_v9 = vld [vmem:[%s8420_s3 + $0x8] sm:$0xff] }
 0x1e8   : > { %1767 = vmatprep.mubr.f32.mxu0 %v777_v0  ;;  %v5078_v0 = vpack.c.bf16 %v3103_v9, %v3102_v60  ;;  %v3124_v60 = vld [vmem:[%s8420_s3 + $0xb0] sm:$0xff]  ;;  %v3125_v9 = vld [vmem:[%s8420_s3 + $0xb8] sm:$0xff] }
 0x1ea   : > { %5079 = vmatpush1.bf16.msra.mxu1 %v5078_v0  ;;  %v5111_v0 = vpack.c.bf16 %v3125_v9, %v3124_v60 }
 0x1eb   : > { %1768 = vmatmul.mubr.f32.gmra.mrb[18].mxu0 %v745_v26  ;;  %5080 = vmatprep.subr.bf16.mxu1 %v5944_v3 }
 0x1ec   : > { %1772 = vmatprep.mubr.f32.mxu0 %v778_v18 }
 0x1ef   : > { %1773 = vmatmul.mubr.f32.gmra.mrb[20].mxu0 %v746_v20  ;;  %v3104_v20 = vld [vmem:[%s8420_s3 + $0x10] sm:$0xff] }
 0x1f0   : > { %1777 = vmatprep.mubr.f32.mxu0 %v779_v1  ;;  %v3105_v1 = vld [vmem:[%s8420_s3 + $0x18] sm:$0xff] }
 0x1f3   : > { %1778 = vmatmul.mubr.f32.gmra.mrb[22].mxu0 %v747_v43  ;;  %v5081_v43 = vpack.c.bf16 %v3105_v1, %v3104_v20  ;;  %v3126_v20 = vld [vmem:[%s8420_s3 + $0xc0] sm:$0xff]  ;;  %v3127_v1 = vld [vmem:[%s8420_s3 + $0xc8] sm:$0xff] }
 0x1f4   : > { %1782 = vmatprep.mubr.f32.mxu0 %v780_v21  ;;  %v3106_v21 = vld [vmem:[%s8420_s3 + $0x20] sm:$0xff] }
 0x1f5   : > { %5082 = vmatpush1.bf16.msra.mxu1 %v5081_v43  ;;  %v5114_v43 = vpack.c.bf16 %v3127_v1, %v3126_v20 }
 0x1f6   : > { %5083 = vmatprep.subr.bf16.mxu1 %v5944_v3 }
 0x1f7   : > { %1783 = vmatmul.mubr.f32.gmra.mrb[24].mxu0 %v748_v49  ;;  %v3107_v49 = vld [vmem:[%s8420_s3 + $0x28] sm:$0xff] }
 0x1f8   : > { %1787 = vmatprep.mubr.f32.mxu0 %v781_v46  ;;  %v5084_v46 = vpack.c.bf16 %v3107_v49, %v3106_v21 }
 0x1fa   : > { %5085 = vmatpush1.bf16.msra.mxu1 %v5084_v46  ;;  %v3128_v46 = vld [vmem:[%s8420_s3 + $0xd0] sm:$0xff] }
 0x1fb   : > { %1788 = vmatmul.mubr.f32.gmra.mrb[26].mxu0 %v749_v44  ;;  %5086 = vmatprep.subr.bf16.mxu1 %v5944_v3 }
 0x1fc   : > { %1792 = vmatprep.mubr.f32.mxu0 %v782_v48 }
 0x1ff   : > { %1793 = vmatmul.mubr.f32.gmra.mrb[28].mxu0 %v750_v56  ;;  %v3108_v56 = vld [vmem:[%s8420_s3 + $0x30] sm:$0xff] }
 0x200   : > { %1797 = vmatprep.mubr.f32.mxu0 %v783_v30  ;;  %v3109_v30 = vld [vmem:[%s8420_s3 + $0x38] sm:$0xff] }
 0x203   : > { %1798 = vmatmul.mubr.f32.gmra.mrb[30].mxu0 %v751_v11  ;;  %v5087_v11 = vpack.c.bf16 %v3109_v30, %v3108_v56  ;;  %v3129_v56 = vld [vmem:[%s8420_s3 + $0xd8] sm:$0xff] }
 0x204   : > { %1802 = vmatprep.mubr.f32.mxu0 %v784_v52  ;;  %v3110_v52 = vld [vmem:[%s8420_s3 + $0x40] sm:$0xff]  ;;  %v5117_v30 = vpack.c.bf16 %v3129_v56, %v3128_v46  ;;  %v2206_v46 = vld [vmem:[#allocation3 + $0x10] sm:$0xff] }
 0x205   : > { %5088 = vmatpush1.bf16.msra.mxu1 %v5087_v11  ;;  %v7315_v11 = vld [vmem:[%s8419_s2] ss:$0 sm:$0xff] }
 0x206   : > { %5089 = vmatprep.subr.bf16.mxu1 %v5944_v3 }
 0x207   : > { %1803 = vmatmul.mubr.f32.gmra.mrb[32].mxu0 %v752_v32  ;;  %v3111_v32 = vld [vmem:[%s8420_s3 + $0x48] sm:$0xff] }
 0x208   : > { %1807 = vmatprep.mubr.f32.mxu0 %v785_v50  ;;  %v5090_v50 = vpack.c.bf16 %v3111_v32, %v3110_v52  ;;  %v3130_v52 = vld [vmem:[%s8420_s3 + $0xe0] sm:$0xff]  ;;  %v3131_v32 = vld [vmem:[%s8420_s3 + $0xe8] sm:$0xff] }
 0x20a   : > { %5091 = vmatpush1.bf16.msra.mxu1 %v5090_v50  ;;  %v5120_v50 = vpack.c.bf16 %v3131_v32, %v3130_v52 }
 0x20b   : > { %1808 = vmatmul.mubr.f32.gmra.mrb[34].mxu0 %v753_v61  ;;  %5092 = vmatprep.subr.bf16.mxu1 %v5944_v3 }
 0x20c   : > { %1812 = vmatprep.mubr.f32.mxu0 %v786_v15 }
 0x20f   : > { %1813 = vmatmul.mubr.f32.gmra.mrb[36].mxu0 %v754_v36  ;;  %v3112_v36 = vld [vmem:[%s8420_s3 + $0x50] sm:$0xff] }
 0x210   : > { %1817 = vmatprep.mubr.f32.mxu0 %v787_v16  ;;  %v3113_v16 = vld [vmem:[%s8420_s3 + $0x58] sm:$0xff] }
 0x213   : > { %1818 = vmatmul.mubr.f32.gmra.mrb[38].mxu0 %v755_v51  ;;  %v5093_v51 = vpack.c.bf16 %v3113_v16, %v3112_v36 }
 0x214   : > { %1822 = vmatprep.mubr.f32.mxu0 %v788_v27  ;;  %v3114_v27 = vld [vmem:[%s8420_s3 + $0x60] sm:$0xff] }
 0x215   : > { %5094 = vmatpush1.bf16.msra.mxu1 %v5093_v51 }
 0x216   : > { %v6998_v28 = vpop.f32.mrb[0].mxu1  ;;  %5095 = vmatprep.subr.bf16.mxu1 %v5944_v3 }
 0x217   : > { %1823 = vmatmul.mubr.f32.gmra.mrb[40].mxu0 %v756_v24  ;;  %v7000_v33 = vpop.f32.mrb[1].mxu1  ;;  %v3115_v24 = vld [vmem:[%s8420_s3 + $0x68] sm:$0xff] }
 0x218   : > { %1827 = vmatprep.mubr.f32.mxu0 %v789_v17  ;;  %v5096_v17 = vpack.c.bf16 %v3115_v24, %v3114_v27  ;;  %v3132_v27 = vld [vmem:[%s8420_s3 + $0xf0] sm:$0xff]  ;;  %v3133_v24 = vld [vmem:[%s8420_s3 + $0xf8] sm:$0xff] }
 0x21a   : > { %v7151_v42 = vpop.f32.mrb[2].mxu1  ;;  %5097 = vmatpush1.bf16.msra.mxu1 %v5096_v17 }
 0x21b   : > { %1828 = vmatmul.mubr.f32.gmra.mrb[42].mxu0 %v757_v38  ;;  %v7153_v37 = vpop.f32.mrb[3].mxu1  ;;  %5098 = vmatprep.subr.bf16.mxu1 %v5944_v3 }
 0x21c   : > { %1832 = vmatprep.mubr.f32.mxu0 %v790_v55 }
 0x21e   : > { %v7155_v6 = vpop.f32.mrb[4].mxu1 }
 0x21f   : > { %1833 = vmatmul.mubr.f32.gmra.mrb[44].mxu0 %v7002_v4  ;;  %v7157_v57 = vpop.f32.mrb[5].mxu1  ;;  %v3116_v4 = vld [vmem:[%s8420_s3 + $0x70] sm:$0xff] }
 0x220   : > { %1837 = vmatprep.mubr.f32.mxu0 %v791_v59 }
 0x222   : > { %v7159_v63 = vpop.f32.mrb[6].mxu1 }
 0x223   : > { %1838 = vmatmul.mubr.f32.gmra.mrb[46].mxu0 %v759_v7  ;;  %v7161_v39 = vpop.f32.mrb[7].mxu1  ;;  %v3118_v7 = vld [vmem:[%s8420_s3 + $0x80] sm:$0xff] }
 0x224   : > { %1842 = vmatprep.mubr.f32.mxu0 %v792_v2  ;;  %v3119_v2 = vld [vmem:[%s8420_s3 + $0x88] sm:$0xff] }
 0x226   : > { %v7164_v45 = vpop.f32.mrb[8].mxu1 }
 0x227   : > { %1843 = vmatmul.mubr.f32.gmra.mrb[48].mxu0 %v760_v5  ;;  %v7167_v31 = vpop.f32.mrb[9].mxu1  ;;  %v5102_v5 = vpack.c.bf16 %v3119_v2, %v3118_v7 }
 0x228   : > { %1847 = vmatprep.mubr.f32.mxu0 %v793_v40 }
 0x22a   : > { %v7171_v53 = vpop.f32.mrb[10].mxu1 }
 0x22b   : > { %1848 = vmatmul.mubr.f32.gmra.mrb[50].mxu0 %v761_v41  ;;  %v7173_v19 = vpop.f32.mrb[11].mxu1 }
 0x22c   : > { %1852 = vmatprep.mubr.f32.mxu0 %v794_v47  ;;  %v3120_v47 = vld [vmem:[%s8420_s3 + $0x90] sm:$0xff] }
 0x22f   : > { %1853 = vmatmul.mubr.f32.gmra.mrb[52].mxu0 %v762_v29  ;;  %v3121_v29 = vld [vmem:[%s8420_s3 + $0x98] sm:$0xff] }
 0x230   : > { %1857 = vmatprep.mubr.f32.mxu0 %v795_v62  ;;  %v5105_v62 = vpack.c.bf16 %v3121_v29, %v3120_v47 }
 0x233   : > { %1858 = vmatmul.mubr.f32.gmra.mrb[54].mxu0 %v763_v8  ;;  %v3122_v8 = vld [vmem:[%s8420_s3 + $0xa0] sm:$0xff] }
 0x234   : > { %1862 = vmatprep.mubr.f32.mxu0 %v5933_v22  ;;  %v3123_v22 = vld [vmem:[%s8420_s3 + $0xa8] sm:$0xff] }
 0x237   : > { %1863 = vmatmul.mubr.f32.gmra.mrb[56].mxu0 %v6802_v10  ;;  %v7175_v10 = vpop.f32.mrb[12].mxu1 }
 0x238   : > { %1867 = vmatprep.mubr.f32.mxu0 %v5934_v13  ;;  %v7177_v23 = vpop.f32.mrb[13].mxu1  ;;  %v5108_v13 = vpack.c.bf16 %v3123_v22, %v3122_v8 }
 0x239   : > { %v7179_v34 = vpop.f32.mrb[14].mxu1 }
 0x23b   : > { %1868 = vmatmul.mubr.f32.gmra.mrb[58].mxu0 %v6814_v14  ;;  %v7181_v14 = vpop.f32.mrb[15].mxu1 }
 0x23c   : > { %1872 = vmatprep.mubr.f32.mxu0 %v7004_v35  ;;  %v7183_v58 = vpop.f32.mrb[16].mxu1 }
 0x23d   : > { %v7185_v25 = vpop.f32.mrb[17].mxu1 }
 0x23e   : > { %v7193_v26 = vpop.f32.mrb[18].mxu1 }
 0x23f   : > { %1873 = vmatmul.mubr.f32.gmra.mrb[60].mxu0 %v766_v54  ;;  %v7195_v18 = vpop.f32.mrb[19].mxu1 }
 0x240   : > { %1877 = vmatprep.mubr.f32.mxu0 %v7004_v35  ;;  %v7211_v44 = vpop.f32.mrb[20].mxu1  ;;  %v3117_v35 = vld [vmem:[%s8420_s3 + $0x78] sm:$0xff] }
 0x241   : > { %v7213_v48 = vpop.f32.mrb[21].mxu1  ;;  %v5099_v59 = vpack.c.bf16 %v3117_v35, %v3116_v4  ;;  %v5123_v4 = vpack.c.bf16 %v3133_v24, %v3132_v27 }
 0x242   : > { %v7229_v61 = vpop.f32.mrb[22].mxu1 }
 0x243   : > { %1878 = vmatmul.mubr.f32.gmra.mrb[62].mxu0 %v767_v12  ;;  %v7231_v15 = vpop.f32.mrb[23].mxu1  ;;  %5100 = vmatpush1.bf16.msra.mxu1 %v5099_v59 }
 0x244   : > { %5101 = vmatprep.subr.bf16.mxu1 %v5944_v3 }
 0x246   : > { %v7247_v38 = vpop.f32.mrb[24].mxu1 }
 0x247   : > { %v7249_v55 = vpop.f32.mrb[25].mxu1  ;;  %5103 = vmatpush1.bf16.msra.mxu1 %v5102_v5 }
 0x248   : > { %5104 = vmatprep.subr.bf16.mxu1 %v5944_v3 }
 0x24a   : > { %v7265_v40 = vpop.f32.mrb[26].mxu1 }
 0x24b   : > { %v7267_v41 = vpop.f32.mrb[27].mxu1  ;;  %5106 = vmatpush1.bf16.msra.mxu1 %v5105_v62 }
 0x24c   : > { %5107 = vmatprep.subr.bf16.mxu1 %v5944_v3 }
 0x24e   : > { %v7283_v54 = vpop.f32.mrb[28].mxu1 }
 0x24f   : > { %5109 = vmatpush1.bf16.msra.mxu1 %v5108_v13  ;;  %v7285_v12 = vpop.f32.mrb[29].mxu1  ;;  %v2205_v13 = vld [vmem:[#allocation3 + $0x8] sm:$0xff] }
 0x250   : > { %5110 = vmatprep.subr.bf16.mxu1 %v5944_v3 }
 0x253   : > { %5112 = vmatpush1.bf16.msra.mxu1 %v5111_v0 }
 0x254   : > { %5113 = vmatprep.subr.bf16.mxu1 %v5944_v3 }
 0x257   : > { %5115 = vmatpush1.bf16.msra.mxu1 %v5114_v43 }
 0x258   : > { %5116 = vmatprep.subr.bf16.mxu1 %v5944_v3 }
 0x25b   : > { %5118 = vmatpush1.bf16.msra.mxu1 %v5117_v30 }
 0x25c   : > { %5119 = vmatprep.subr.bf16.mxu1 %v5944_v3 }
 0x25f   : > { %5121 = vmatpush1.bf16.msra.mxu1 %v5120_v50 }
 0x260   : > { %5122 = vmatprep.subr.bf16.mxu1 %v5944_v3 }
 0x263   : > { %5124 = vmatpush1.bf16.msra.mxu1 %v5123_v4 }
 0x264   : > { %5125 = vmatprep.subr.bf16.mxu1 %v5944_v3 }
 0x27d   : > { %v7301_v21 = vpop.f32.mrb[30].mxu1 }
 0x27e   : > { %v7303_v49 = vpop.f32.mrb[31].mxu1 }
 0x29a   : > { %v1724_v36 = vpop.f32.mrb[0].mxu0 }
 0x29b   : > { %v5243_v16 = vadd.f32 %v7315_v11, %v1724_v36  ;;  %v1726_v51 = vpop.f32.mrb[1].mxu0 }
 0x29d   : > { %v1950_v17 = vadd.f32 %v5243_v16, %v7000_v33 }
 0x29e   : > { %v1729_v35 = vpop.f32.mrb[2].mxu0 }
 0x29f   : > { %v2108_v59 = vmax.f32 %v1950_v17, 0.0  ;;  %v5244_v7 = vadd.f32 %v7315_v11, %v1729_v35  ;;  %v1731_v2 = vpop.f32.mrb[3].mxu0 }
 0x2a1   : > { %2141 = vst.msk [vmem:[#allocation3 + $0x28] sm:$0xff] %vm405_vm0, %v2108_v59  ;;  %v1955_v5 = vadd.f32 %v5244_v7, %v6998_v28 }
 0x2a2   : > { %v1734_v47 = vpop.f32.mrb[4].mxu0 }
 0x2a3   : > { %v2109_v29 = vmax.f32 %v1955_v5, 0.0  ;;  %v5245_v62 = vadd.f32 %v7315_v11, %v1734_v47  ;;  %v1736_v8 = vpop.f32.mrb[5].mxu0 }
 0x2a5   : > { %2142 = vst.msk [vmem:[#allocation3 + $0x30] sm:$0xff] %vm405_vm0, %v2109_v29  ;;  %v1960_v33 = vadd.f32 %v5245_v62, %v7153_v37 }
 0x2a6   : > { %v1739_v22 = vpop.f32.mrb[6].mxu0 }
 0x2a7   : > { %v2110_v60 = vmax.f32 %v1960_v33, 0.0  ;;  %v5246_v9 = vadd.f32 %v7315_v11, %v1739_v22  ;;  %v1741_v0 = vpop.f32.mrb[7].mxu0 }
 0x2a8   : > { %v7341_v20 = vld [vmem:[#allocation3 + $0x27] sm:$0xff] }
 0x2a9   : > { %2143 = vst.msk [vmem:[#allocation3 + $0x48] sm:$0xff] %vm405_vm0, %v2110_v60  ;;  %v1965_v28 = vadd.f32 %v5246_v9, %v7151_v42  ;;  %v5576_v1 = vpack.i.bf16 %v2205_v13, %v7341_v20  ;;  %v2207_v27 = vld [vmem:[#allocation3 + $0x28] sm:$0xff] }
 0x2aa   : > { %v1744_v43 = vpop.f32.mrb[8].mxu0 }
 0x2ab   : > { %v2111_v56 = vmax.f32 %v1965_v28, 0.0  ;;  %v5247_v30 = vadd.f32 %v7315_v11, %v1744_v43  ;;  %v1746_v37 = vpop.f32.mrb[9].mxu0  ;;  %5577 = vrot.lane.b32.xlu0 %v5576_v1, %s5946_s15 }
 0x2ac   : > { %v7348_v52 = vld [vmem:[#allocation3 + $0x2f] sm:$0xff] }
 0x2ad   : > { %2144 = vst.msk [vmem:[#allocation3 + $0x50] sm:$0xff] %vm405_vm0, %v2111_v56  ;;  %v1970_v32 = vadd.f32 %v5247_v30, %v7157_v57  ;;  %v5581_v50 = vpack.i.bf16 %v2206_v46, %v7348_v52  ;;  %v2208_v2 = vld [vmem:[#allocation3 + $0x30] sm:$0xff] }
 0x2ae   : > { %v1749_v42 = vpop.f32.mrb[10].mxu0 }
 0x2af   : > { %v2112_v36 = vmax.f32 %v1970_v32, 0.0  ;;  %v5248_v16 = vadd.f32 %v7315_v11, %v1749_v42  ;;  %v1751_v51 = vpop.f32.mrb[11].mxu0  ;;  %5582 = vrot.lane.b32.xlu0 %v5581_v50, %s5946_s15 }
 0x2b0   : > { %v7355_v24 = vld [vmem:[#allocation3 + $0x47] sm:$0xff] }
 0x2b1   : > { %2145 = vst.msk [vmem:[#allocation3 + $0x68] sm:$0xff] %vm405_vm0, %v2112_v36  ;;  %v1975_v17 = vadd.f32 %v5248_v16, %v7155_v6  ;;  %v5586_v4 = vpack.i.bf16 %v2207_v27, %v7355_v24  ;;  %v7369_v22 = vld [vmem:[#allocation3 + $0x48] sm:$0xff] }
 0x2b2   : > { %v1754_v35 = vpop.f32.mrb[12].mxu0 }
 0x2b3   : > { %v2113_v57 = vmax.f32 %v1975_v17, 0.0  ;;  %v5249_v59 = vadd.f32 %v7315_v11, %v1754_v35  ;;  %v1756_v7 = vpop.f32.mrb[13].mxu0  ;;  %5587 = vrot.lane.b32.xlu1 %v5586_v4, %s5946_s15 }
 0x2b4   : > { %v7362_v5 = vld [vmem:[#allocation3 + $0x4f] sm:$0xff] }
 0x2b5   : > { %2146 = vst.msk [vmem:[#allocation3 + $0x70] sm:$0xff] %vm405_vm0, %v2113_v57  ;;  %v1980_v47 = vadd.f32 %v5249_v59, %v7161_v39  ;;  %v5591_v29 = vpack.i.bf16 %v2208_v2, %v7362_v5  ;;  %v7379_v43 = vld [vmem:[#allocation3 + $0x50] sm:$0xff] }
 0x2b6   : > { %v1759_v62 = vpop.f32.mrb[14].mxu0 }
 0x2b7   : > { %v2114_v6 = vmax.f32 %v1980_v47, 0.0  ;;  %v5250_v8 = vadd.f32 %v7315_v11, %v1759_v62  ;;  %v1761_v33 = vpop.f32.mrb[15].mxu0  ;;  %5592 = vrot.lane.b32.xlu1 %v5591_v29, %s5946_s15 }
 0x2b8   : > { %v7371_v13 = vld [vmem:[#allocation3 + $0x67] sm:$0xff] }
 0x2b9   : > { %2147 = vst.msk [vmem:[#allocation3 + $0x88] sm:$0xff] %vm405_vm0, %v2114_v6  ;;  %v1985_v60 = vadd.f32 %v5250_v8, %v7159_v63  ;;  %v5596_v39 = vpack.i.bf16 %v7369_v22, %v7371_v13  ;;  %v7389_v42 = vld [vmem:[#allocation3 + $0x68] sm:$0xff] }
 0x2ba   : > { %v1764_v9 = vpop.f32.mrb[16].mxu0 }
 0x2bb   : > { %v2115_v0 = vmax.f32 %v1985_v60, 0.0  ;;  %v5251_v28 = vadd.f32 %v7315_v11, %v1764_v9  ;;  %v1766_v1 = vpop.f32.mrb[17].mxu0  ;;  %5597 = vrot.lane.b32.xlu0 %v5596_v39, %s5946_s15 }
 0x2bc   : > { %v7381_v46 = vld [vmem:[#allocation3 + $0x6f] sm:$0xff] }
 0x2bd   : > { %2148 = vst.msk [vmem:[#allocation3 + $0x90] sm:$0xff] %vm405_vm0, %v2115_v0  ;;  %v1990_v56 = vadd.f32 %v5251_v28, %v7167_v31  ;;  %v5601_v63 = vpack.i.bf16 %v7379_v43, %v7381_v46  ;;  %v7399_v35 = vld [vmem:[#allocation3 + $0x70] sm:$0xff] }
 0x2be   : > { %v1769_v30 = vpop.f32.mrb[18].mxu0 }
 0x2bf   : > { %v2116_v37 = vmax.f32 %v1990_v56, 0.0  ;;  %v5252_v32 = vadd.f32 %v7315_v11, %v1769_v30  ;;  %v1771_v50 = vpop.f32.mrb[19].mxu0  ;;  %5602 = vrot.lane.b32.xlu1 %v5601_v63, %s5946_s15 }
 0x2c0   : > { %v7391_v36 = vld [vmem:[#allocation3 + $0x87] sm:$0xff] }
 0x2c1   : > { %2149 = vst.msk [vmem:[#allocation3 + $0xa8] sm:$0xff] %vm405_vm0, %v2116_v37  ;;  %v1995_v16 = vadd.f32 %v5252_v32, %v7164_v45  ;;  %v5606_v31 = vpack.i.bf16 %v7389_v42, %v7391_v36  ;;  %v7409_v62 = vld [vmem:[#allocation3 + $0x88] sm:$0xff] }
 0x2c2   : > { %v1774_v51 = vpop.f32.mrb[20].mxu0 }
 0x2c3   : > { %v2117_v27 = vmax.f32 %v1995_v16, 0.0  ;;  %v5253_v17 = vadd.f32 %v7315_v11, %v1774_v51  ;;  %v1776_v4 = vpop.f32.mrb[21].mxu0  ;;  %5607 = vrot.lane.b32.xlu0 %v5606_v31, %s5946_s15 }
 0x2c4   : > { %v7401_v57 = vld [vmem:[#allocation3 + $0x8f] sm:$0xff] }
 0x2c5   : > { %2150 = vst.msk [vmem:[#allocation3 + $0xb0] sm:$0xff] %vm405_vm0, %v2117_v27  ;;  %v2000_v59 = vadd.f32 %v5253_v17, %v7173_v19  ;;  %v5611_v45 = vpack.i.bf16 %v7399_v35, %v7401_v57  ;;  %v7419_v0 = vld [vmem:[#allocation3 + $0x90] sm:$0xff] }
 0x2c6   : > { %v1779_v7 = vpop.f32.mrb[22].mxu0 }
 0x2c7   : > { %v2118_v2 = vmax.f32 %v2000_v59, 0.0  ;;  %v5254_v47 = vadd.f32 %v7315_v11, %v1779_v7  ;;  %v1781_v29 = vpop.f32.mrb[23].mxu0  ;;  %5612 = vrot.lane.b32.xlu1 %v5611_v45, %s5946_s15 }
 0x2c8   : > { %v7411_v6 = vld [vmem:[#allocation3 + $0xa7] sm:$0xff] }
 0x2c9   : > { %2151 = vst.msk [vmem:[#allocation3 + $0xc8] sm:$0xff] %vm405_vm0, %v2118_v2  ;;  %v2005_v8 = vadd.f32 %v5254_v47, %v7171_v53  ;;  %v5616_v19 = vpack.i.bf16 %v7409_v62, %v7411_v6  ;;  %v7429_v32 = vld [vmem:[#allocation3 + $0xa8] sm:$0xff] }
 0x2ca   : > { %v1784_v33 = vpop.f32.mrb[24].mxu0 }
 0x2cb   : > { %v2119_v60 = vmax.f32 %v2005_v8, 0.0  ;;  %v5255_v39 = vadd.f32 %v7315_v11, %v1784_v33  ;;  %v1786_v9 = vpop.f32.mrb[25].mxu0  ;;  %5617 = vrot.lane.b32.xlu0 %v5616_v19, %s5946_s15 }
 0x2cc   : > { %v7421_v28 = vld [vmem:[#allocation3 + $0xaf] sm:$0xff] }
 0x2cd   : > { %2152 = vst.msk [vmem:[#allocation3 + $0xd0] sm:$0xff] %vm405_vm0, %v2119_v60  ;;  %v2010_v1 = vadd.f32 %v5255_v39, %v7177_v23  ;;  %v5621_v53 = vpack.i.bf16 %v7419_v0, %v7421_v28  ;;  %v7436_v4 = vld [vmem:[#allocation3 + $0xb0] sm:$0xff] }
 0x2ce   : > { %v1789_v56 = vpop.f32.mrb[26].mxu0 }
 0x2cf   : > { %v2120_v63 = vmax.f32 %v2010_v1, 0.0  ;;  %v5256_v30 = vadd.f32 %v7315_v11, %v1789_v56  ;;  %v1791_v37 = vpop.f32.mrb[27].mxu0  ;;  %5622 = vrot.lane.b32.xlu1 %v5621_v53, %s5946_s15 }
 0x2d0   : > { %v2279_v50 = vld [vmem:[#allocation3 + $0xc7] sm:$0xff] }
 0x2d1   : > { %2153 = vst.msk [vmem:[#allocation3 + $0xe8] sm:$0xff] %vm405_vm0, %v2120_v63  ;;  %v2015_v16 = vadd.f32 %v5256_v30, %v7175_v10  ;;  %v5626_v31 = vpack.i.bf16 %v7429_v32, %v2279_v50  ;;  %v7443_v8 = vld [vmem:[#allocation3 + $0xc8] sm:$0xff] }
 0x2d2   : > { %v1794_v23 = vpop.f32.mrb[28].mxu0 }
 0x2d3   : > { %v2121_v51 = vmax.f32 %v2015_v16, 0.0  ;;  %v5257_v27 = vadd.f32 %v7315_v11, %v1794_v23  ;;  %v1796_v17 = vpop.f32.mrb[29].mxu0  ;;  %5627 = vrot.lane.b32.xlu0 %v5626_v31, %s5946_s15 }
 0x2d4   : > { %v2280_v59 = vld [vmem:[#allocation3 + $0xcf] sm:$0xff] }
 0x2d5   : > { %2154 = vst.msk [vmem:[#allocation3 + $0xf0] sm:$0xff] %vm405_vm0, %v2121_v51  ;;  %v2020_v45 = vadd.f32 %v5257_v27, %v7181_v14  ;;  %v5631_v7 = vpack.i.bf16 %v7436_v4, %v2280_v59  ;;  %v7450_v53 = vld [vmem:[#allocation3 + $0xd0] sm:$0xff] }
 0x2d6   : > { %v1799_v2 = vpop.f32.mrb[30].mxu0 }
 0x2d7   : > { %v2122_v10 = vmax.f32 %v2020_v45, 0.0  ;;  %v5258_v47 = vadd.f32 %v7315_v11, %v1799_v2  ;;  %v1801_v29 = vpop.f32.mrb[31].mxu0  ;;  %5632 = vrot.lane.b32.xlu1 %v5631_v7, %s5946_s15 }
 0x2d8   : > { %v2281_v19 = vld [vmem:[#allocation3 + $0xe7] sm:$0xff] }
 0x2d9   : > { %2155 = vst.msk [vmem:[#allocation3 + $0x108] sm:$0xff] %vm405_vm0, %v2122_v10  ;;  %v2025_v33 = vadd.f32 %v5258_v47, %v7179_v34  ;;  %v5636_v60 = vpack.i.bf16 %v7443_v8, %v2281_v19  ;;  %v7457_v31 = vld [vmem:[#allocation3 + $0xe8] sm:$0xff] }
 0x2da   : > { %v1804_v39 = vpop.f32.mrb[32].mxu0 }
 0x2db   : > { %v2123_v14 = vmax.f32 %v2025_v33, 0.0  ;;  %v5259_v9 = vadd.f32 %v7315_v11, %v1804_v39  ;;  %v1806_v1 = vpop.f32.mrb[33].mxu0  ;;  %5637 = vrot.lane.b32.xlu0 %v5636_v60, %s5946_s15 }
 0x2dc   : > { %v2282_v56 = vld [vmem:[#allocation3 + $0xef] sm:$0xff] }
 0x2dd   : > { %2156 = vst.msk [vmem:[#allocation3 + $0x110] sm:$0xff] %vm405_vm0, %v2123_v14  ;;  %v2030_v63 = vadd.f32 %v5259_v9, %v7185_v25  ;;  %v5641_v30 = vpack.i.bf16 %v7450_v53, %v2282_v56  ;;  %v7464_v7 = vld [vmem:[#allocation3 + $0xf0] sm:$0xff] }
 0x2de   : > { %v1809_v37 = vpop.f32.mrb[34].mxu0 }
 0x2df   : > { %v2124_v34 = vmax.f32 %v2030_v63, 0.0  ;;  %v5260_v50 = vadd.f32 %v7315_v11, %v1809_v37  ;;  %v1811_v16 = vpop.f32.mrb[35].mxu0  ;;  %5642 = vrot.lane.b32.xlu1 %v5641_v30, %s5946_s15 }
 0x2e0   : > { %v2283_v23 = vld [vmem:[#allocation3 + $0x107] sm:$0xff] }
 0x2e1   : > { %2157 = vst.msk [vmem:[#allocation3 + $0x128] sm:$0xff] %vm405_vm0, %v2124_v34  ;;  %v2035_v51 = vadd.f32 %v5260_v50, %v7183_v58  ;;  %v5646_v27 = vpack.i.bf16 %v7457_v31, %v2283_v23  ;;  %v7471_v60 = vld [vmem:[#allocation3 + $0x108] sm:$0xff] }
 0x2e2   : > { %v1814_v17 = vpop.f32.mrb[36].mxu0 }
 0x2e3   : > { %v2125_v25 = vmax.f32 %v2035_v51, 0.0  ;;  %v5261_v59 = vadd.f32 %v7315_v11, %v1814_v17  ;;  %v1816_v45 = vpop.f32.mrb[37].mxu0  ;;  %5647 = vrot.lane.b32.xlu0 %v5646_v27, %s5946_s15 }
 0x2e4   : > { %v2284_v2 = vld [vmem:[#allocation3 + $0x10f] sm:$0xff] }
 0x2e5   : > { %2158 = vst.msk [vmem:[#allocation3 + $0x130] sm:$0xff] %vm405_vm0, %v2125_v25  ;;  %v2040_v10 = vadd.f32 %v5261_v59, %v7195_v18  ;;  %v5651_v47 = vpack.i.bf16 %v7464_v7, %v2284_v2  ;;  %v7478_v30 = vld [vmem:[#allocation3 + $0x110] sm:$0xff] }
 0x2e6   : > { %v1819_v29 = vpop.f32.mrb[38].mxu0 }
 0x2e7   : > { %v2126_v58 = vmax.f32 %v2040_v10, 0.0  ;;  %v5262_v19 = vadd.f32 %v7315_v11, %v1819_v29  ;;  %v1821_v33 = vpop.f32.mrb[39].mxu0  ;;  %5652 = vrot.lane.b32.xlu1 %v5651_v47, %s5946_s15 }
 0x2e8   : > { %v2285_v39 = vld [vmem:[#allocation3 + $0x127] sm:$0xff] }
 0x2e9   : > { %2159 = vst.msk [vmem:[#allocation3 + $0x148] sm:$0xff] %vm405_vm0, %v2126_v58  ;;  %v2045_v14 = vadd.f32 %v5262_v19, %v7193_v26  ;;  %v5656_v9 = vpack.i.bf16 %v7471_v60, %v2285_v39  ;;  %v7485_v27 = vld [vmem:[#allocation3 + $0x128] sm:$0xff] }
 0x2ea   : > { %v1824_v1 = vpop.f32.mrb[40].mxu0 }
 0x2eb   : > { %v2127_v18 = vmax.f32 %v2045_v14, 0.0  ;;  %v5263_v56 = vadd.f32 %v7315_v11, %v1824_v1  ;;  %v1826_v63 = vpop.f32.mrb[41].mxu0  ;;  %5657 = vrot.lane.b32.xlu0 %v5656_v9, %s5946_s15 }
 0x2ec   : > { %v2286_v37 = vld [vmem:[#allocation3 + $0x12f] sm:$0xff] }
 0x2ed   : > { %2160 = vst.msk [vmem:[#allocation3 + $0x150] sm:$0xff] %vm405_vm0, %v2127_v18  ;;  %v2050_v34 = vadd.f32 %v5263_v56, %v7213_v48  ;;  %v5661_v50 = vpack.i.bf16 %v7478_v30, %v2286_v37  ;;  %v7492_v47 = vld [vmem:[#allocation3 + $0x130] sm:$0xff] }
 0x2ee   : > { %v1829_v16 = vpop.f32.mrb[42].mxu0 }
 0x2ef   : > { %v2128_v26 = vmax.f32 %v2050_v34, 0.0  ;;  %v5264_v23 = vadd.f32 %v7315_v11, %v1829_v16  ;;  %v1831_v51 = vpop.f32.mrb[43].mxu0  ;;  %5662 = vrot.lane.b32.xlu1 %v5661_v50, %s5946_s15 }
 0x2f0   : > { %v2287_v17 = vld [vmem:[#allocation3 + $0x147] sm:$0xff] }
 0x2f1   : > { %2161 = vst.msk [vmem:[#allocation3 + $0x168] sm:$0xff] %vm405_vm0, %v2128_v26  ;;  %v2055_v25 = vadd.f32 %v5264_v23, %v7211_v44  ;;  %v5666_v59 = vpack.i.bf16 %v7485_v27, %v2287_v17  ;;  %v7499_v9 = vld [vmem:[#allocation3 + $0x148] sm:$0xff] }
 0x2f2   : > { %v1834_v45 = vpop.f32.mrb[44].mxu0 }
 0x2f3   : > { %v2129_v48 = vmax.f32 %v2055_v25, 0.0  ;;  %v5265_v2 = vadd.f32 %v7315_v11, %v1834_v45  ;;  %v1836_v10 = vpop.f32.mrb[45].mxu0  ;;  %5667 = vrot.lane.b32.xlu0 %v5666_v59, %s5946_s15 }
 0x2f4   : > { %v2288_v29 = vld [vmem:[#allocation3 + $0x14f] sm:$0xff] }
 0x2f5   : > { %2162 = vst.msk [vmem:[#allocation3 + $0x170] sm:$0xff] %vm405_vm0, %v2129_v48  ;;  %v2060_v58 = vadd.f32 %v5265_v2, %v7231_v15  ;;  %v5671_v19 = vpack.i.bf16 %v7492_v47, %v2288_v29  ;;  %v7506_v50 = vld [vmem:[#allocation3 + $0x150] sm:$0xff] }
 0x2f6   : > { %v1839_v33 = vpop.f32.mrb[46].mxu0 }
 0x2f7   : > { %v2130_v44 = vmax.f32 %v2060_v58, 0.0  ;;  %v5266_v39 = vadd.f32 %v7315_v11, %v1839_v33  ;;  %v1841_v14 = vpop.f32.mrb[47].mxu0  ;;  %5672 = vrot.lane.b32.xlu1 %v5671_v19, %s5946_s15 }
 0x2f8   : > { %v2289_v1 = vld [vmem:[#allocation3 + $0x167] sm:$0xff] }
 0x2f9   : > { %2163 = vst.msk [vmem:[#allocation3 + $0x188] sm:$0xff] %vm405_vm0, %v2130_v44  ;;  %v2065_v18 = vadd.f32 %v5266_v39, %v7229_v61  ;;  %v5676_v56 = vpack.i.bf16 %v7499_v9, %v2289_v1  ;;  %v7513_v59 = vld [vmem:[#allocation3 + $0x168] sm:$0xff] }
 0x2fa   : > { %v1844_v63 = vpop.f32.mrb[48].mxu0 }
 0x2fb   : > { %v2131_v15 = vmax.f32 %v2065_v18, 0.0  ;;  %v5267_v37 = vadd.f32 %v7315_v11, %v1844_v63  ;;  %v1846_v34 = vpop.f32.mrb[49].mxu0  ;;  %5677 = vrot.lane.b32.xlu0 %v5676_v56, %s5946_s15 }
 0x2fc   : > { %v2290_v16 = vld [vmem:[#allocation3 + $0x16f] sm:$0xff] }
 0x2fd   : > { %2164 = vst.msk [vmem:[#allocation3 + $0x190] sm:$0xff] %vm405_vm0, %v2131_v15  ;;  %v2070_v26 = vadd.f32 %v5267_v37, %v7249_v55  ;;  %v5681_v23 = vpack.i.bf16 %v7506_v50, %v2290_v16  ;;  %v7520_v19 = vld [vmem:[#allocation3 + $0x170] sm:$0xff] }
 0x2fe   : > { %v1849_v51 = vpop.f32.mrb[50].mxu0 }
 0x2ff   : > { %v2132_v61 = vmax.f32 %v2070_v26, 0.0  ;;  %v5268_v17 = vadd.f32 %v7315_v11, %v1849_v51  ;;  %v1851_v25 = vpop.f32.mrb[51].mxu0  ;;  %5682 = vrot.lane.b32.xlu1 %v5681_v23, %s5946_s15 }
 0x300   : > { %v2291_v45 = vld [vmem:[#allocation3 + $0x187] sm:$0xff] }
 0x301   : > { %2165 = vst.msk [vmem:[#allocation3 + $0x1a8] sm:$0xff] %vm405_vm0, %v2132_v61  ;;  %v2075_v48 = vadd.f32 %v5268_v17, %v7247_v38  ;;  %v5686_v2 = vpack.i.bf16 %v7513_v59, %v2291_v45  ;;  %v7527_v56 = vld [vmem:[#allocation3 + $0x188] sm:$0xff] }
 0x302   : > { %v1854_v10 = vpop.f32.mrb[52].mxu0 }
 0x303   : > { %v2133_v55 = vmax.f32 %v2075_v48, 0.0  ;;  %v5269_v29 = vadd.f32 %v7315_v11, %v1854_v10  ;;  %v1856_v58 = vpop.f32.mrb[53].mxu0  ;;  %5687 = vrot.lane.b32.xlu0 %v5686_v2, %s5946_s15 }
 0x304   : > { %v2292_v33 = vld [vmem:[#allocation3 + $0x18f] sm:$0xff] }
 0x305   : > { %2166 = vst.msk [vmem:[#allocation3 + $0x1b0] sm:$0xff] %vm405_vm0, %v2133_v55  ;;  %v2080_v44 = vadd.f32 %v5269_v29, %v7267_v41  ;;  %v5691_v39 = vpack.i.bf16 %v7520_v19, %v2292_v33  ;;  %v7534_v23 = vld [vmem:[#allocation3 + $0x190] sm:$0xff] }
 0x306   : > { %v1859_v14 = vpop.f32.mrb[54].mxu0 }
 0x307   : > { %v2134_v38 = vmax.f32 %v2080_v44, 0.0  ;;  %v5270_v1 = vadd.f32 %v7315_v11, %v1859_v14  ;;  %v1861_v18 = vpop.f32.mrb[55].mxu0  ;;  %5692 = vrot.lane.b32.xlu1 %v5691_v39, %s5946_s15 }
 0x308   : > { %v2293_v63 = vld [vmem:[#allocation3 + $0x1a7] sm:$0xff] }
 0x309   : > { %2167 = vst.msk [vmem:[#allocation3 + $0x1c8] sm:$0xff] %vm405_vm0, %v2134_v38  ;;  %v2085_v15 = vadd.f32 %v5270_v1, %v7265_v40  ;;  %v5696_v37 = vpack.i.bf16 %v7527_v56, %v2293_v63  ;;  %v7544_v2 = vld [vmem:[#allocation3 + $0x1a8] sm:$0xff] }
 0x30a   : > { %v1864_v34 = vpop.f32.mrb[56].mxu0 }
 0x30b   : > { %v2135_v41 = vmax.f32 %v2085_v15, 0.0  ;;  %v5271_v16 = vadd.f32 %v7315_v11, %v1864_v34  ;;  %v1866_v26 = vpop.f32.mrb[57].mxu0  ;;  %5697 = vrot.lane.b32.xlu0 %v5696_v37, %s5946_s15 }
 0x30c   : > { %v7536_v51 = vld [vmem:[#allocation3 + $0x1af] sm:$0xff] }
 0x30d   : > { %2168 = vst.msk [vmem:[#allocation3 + $0x1d0] sm:$0xff] %vm405_vm0, %v2135_v41  ;;  %v2090_v61 = vadd.f32 %v5271_v16, %v7285_v12  ;;  %v5701_v40 = vpack.i.bf16 %v7534_v23, %v7536_v51  ;;  %v7554_v39 = vld [vmem:[#allocation3 + $0x1b0] sm:$0xff] }
 0x30e   : > { %v1869_v17 = vpop.f32.mrb[58].mxu0 }
 0x30f   : > { %v2136_v25 = vmax.f32 %v2090_v61, 0.0  ;;  %v5272_v45 = vadd.f32 %v7315_v11, %v1869_v17  ;;  %v1871_v48 = vpop.f32.mrb[59].mxu0  ;;  %5702 = vrot.lane.b32.xlu1 %v5701_v40, %s5946_s15  ;;  %v3135_v40 = vld [vmem:[%s8420_s3 + $0x108] sm:$0xff] }
 0x310   : > { %v7546_v10 = vld [vmem:[#allocation3 + $0x1c7] sm:$0xff] }
 0x311   : > { %2169 = vst.msk [vmem:[#allocation3 + $0x1e8] sm:$0xff] %vm405_vm0, %v2136_v25  ;;  %v2095_v55 = vadd.f32 %v5272_v45, %v7283_v54  ;;  %v5706_v12 = vpack.i.bf16 %v7544_v2, %v7546_v10  ;;  %v7564_v37 = vld [vmem:[#allocation3 + $0x1c8] sm:$0xff] }
 0x312   : > { %v1874_v29 = vpop.f32.mrb[60].mxu0  ;;  %v2237_v25 = vld [vmem:[#allocation3 + $0x9] sm:$0xff] }
 0x313   : > { %v2137_v58 = vmax.f32 %v2095_v55, 0.0  ;;  %v5273_v33 = vadd.f32 %v7315_v11, %v1874_v29  ;;  %v1876_v44 = vpop.f32.mrb[61].mxu0  ;;  %5707 = vrot.lane.b32.xlu0 %v5706_v12, %s5946_s15  ;;  %v2173_v45 = vld [vmem:[#allocation3 + $0x7] sm:$0xff] }
 0x314   : > { %v7556_v14 = vld [vmem:[#allocation3 + $0x1cf] sm:$0xff] }
 0x315   : > { %2170 = vst.msk [vmem:[#allocation3 + $0x1f0] sm:$0xff] %vm405_vm0, %v2137_v58  ;;  %v2100_v38 = vadd.f32 %v5273_v33, %v7303_v49  ;;  %v5711_v54 = vpack.i.bf16 %v7554_v39, %v7556_v14  ;;  %v7576_v26 = vld [vmem:[#allocation3 + $0x1d0] sm:$0xff] }
 0x316   : > { %v1879_v1 = vpop.f32.mrb[62].mxu0 }
 0x317   : > { %v2138_v18 = vmax.f32 %v2100_v38, 0.0  ;;  %v5274_v63 = vadd.f32 %v7315_v11, %v1879_v1  ;;  %v1881_v15 = vpop.f32.mrb[63].mxu0  ;;  %5712 = vrot.lane.b32.xlu1 %v5711_v54, %s5946_s15  ;;  %v3134_v11 = vld [vmem:[%s8420_s3 + $0x100] sm:$0xff]  ;;  %v2238_v38 = vld [vmem:[#allocation3 + $0x11] sm:$0xff] }
 0x318   : > { %v7566_v34 = vld [vmem:[#allocation3 + $0x1e7] sm:$0xff]  ;;  %v5126_v12 = vpack.c.bf16 %v3135_v40, %v3134_v11  ;;  %v3137_v15 = vld [vmem:[%s8420_s3 + $0x118] sm:$0xff] }
 0x319   : > { %2171 = vst.msk [vmem:[#allocation3 + $0x208] sm:$0xff] %vm405_vm0, %v2138_v18  ;;  %v2105_v41 = vadd.f32 %v5274_v63, %v7301_v21  ;;  %v5716_v49 = vpack.i.bf16 %v7564_v37, %v7566_v34  ;;  %v7589_v33 = vld [vmem:[#allocation3 + $0x1e8] sm:$0xff]  ;;  %v3136_v63 = vld [vmem:[%s8420_s3 + $0x110] sm:$0xff] }
 0x31a   : > { %v2174_v18 = vld [vmem:[#allocation3 + $0xf] sm:$0xff] }
 0x31b   : > { %v2139_v16 = vmax.f32 %v2105_v41, 0.0  ;;  %5717 = vrot.lane.b32.xlu0 %v5716_v49, %s5946_s15  ;;  %v2333_v40 = vld [vmem:[#allocation3 + $0x29] sm:$0xff] }
 0x31c   : > { %v7578_v61 = vld [vmem:[#allocation3 + $0x1ef] sm:$0xff] }
 0x31d   : > { %2172 = vst.msk [vmem:[#allocation3 + $0x210] sm:$0xff] %vm405_vm0, %v2139_v16  ;;  %v5578_v21 = vpop.permute.xlu0 %5577  ;;  %v5721_v17 = vpack.i.bf16 %v7576_v26, %v7578_v61 }
 0x31e   : > { %v5580_v48 = vunpack.i.h.bf16 %v5578_v21  ;;  %v5579_v55 = vunpack.i.l.bf16 %v5578_v21  ;;  %v7601_v21 = vld [vmem:[#allocation3 + $0x1f0] sm:$0xff] }
 0x31f   : > { %5722 = vrot.lane.b32.xlu1 %v5721_v17, %s5946_s15 }
 0x320   : > { %v3006_v29 = vsel %vm405_vm0, %v2237_v25, %v5579_v55  ;;  %v2974_v58 = vsel %vm405_vm0, %v2173_v45, %v5580_v48  ;;  %v2299_v44 = vld [vmem:[#allocation3 + $0x207] sm:$0xff]  ;;  %v5129_v25 = vpack.c.bf16 %v3137_v15, %v3136_v63  ;;  %v5736_v48 = vpack.i.bf16 %v2333_v40, %v7369_v22 }
 0x321   : > { %v5583_v54 = vpop.permute.xlu0 %5582  ;;  %3341 = vmatprep.mubr.f32.mxu1 %v3006_v29  ;;  %v5726_v1 = vpack.i.bf16 %v7589_v33, %v2299_v44  ;;  %v3139_v29 = vld [vmem:[%s8420_s3 + $0x128] sm:$0xff] }
 0x322   : > { %v5585_v41 = vunpack.i.h.bf16 %v5583_v54  ;;  %v5584_v49 = vunpack.i.l.bf16 %v5583_v54  ;;  %3342 = vmatmul.mubr.f32.vlgmr.msra.gmra.mrb[32].mxu1 %v2974_v58  ;;  %v2335_v54 = vld [vmem:[#allocation3 + $0x49] sm:$0xff] }
 0x323   : > { %5727 = vrot.lane.b32.xlu0 %v5726_v1, %s5946_s15  ;;  %5127 = vmatpush1.bf16.msra.mxu1 %v5126_v12  ;;  %v3138_v12 = vld [vmem:[%s8420_s3 + $0x120] sm:$0xff]  ;;  %v2334_v1 = vld [vmem:[#allocation3 + $0x31] sm:$0xff]  ;;  %v5746_v15 = vpack.i.bf16 %v2335_v54, %v7389_v42 }
 0x324   : > { %v3007_v16 = vsel %vm405_vm0, %v2238_v38, %v5584_v49  ;;  %v2975_v11 = vsel %vm405_vm0, %v2174_v18, %v5585_v41  ;;  %v2300_v17 = vld [vmem:[#allocation3 + $0x20f] sm:$0xff]  ;;  %5128 = vmatprep.subr.bf16.mxu1 %v5944_v3  ;;  %v5132_v18 = vpack.c.bf16 %v3139_v29, %v3138_v12  ;;  %v5741_v41 = vpack.i.bf16 %v2334_v1, %v7379_v43  ;;  %v3142_v12 = vld [vmem:[%s8420_s3 + $0x140] sm:$0xff] }
 0x325   : > { %3346 = vmatprep.mubr.f32.mxu1 %v3007_v16  ;;  %v5588_v45 = vpop.permute.xlu1 %5587  ;;  %v5731_v55 = vpack.i.bf16 %v7601_v21, %v2300_v17  ;;  %v3140_v49 = vld [vmem:[%s8420_s3 + $0x130] sm:$0xff] }
 0x326   : > { %v5590_v58 = vunpack.i.h.bf16 %v5588_v45  ;;  %v5589_v44 = vunpack.i.l.bf16 %v5588_v45  ;;  %3347 = vmatmul.mubr.f32.gmra.mrb[34].mxu1 %v2975_v11  ;;  %v2336_v17 = vld [vmem:[#allocation3 + $0x51] sm:$0xff] }
 0x327   : > { %5737 = vrot.lane.b32.xlu0 %v5736_v48, %s5946_s15  ;;  %5732 = vrot.lane.b32.xlu1 %v5731_v55, %s5946_s15  ;;  %v5751_v55 = vpack.i.bf16 %v2336_v17, %v7399_v35 }
 0x328   : > { %v3008_v38 = vsel %vm405_vm0, %v2333_v40, %v5589_v44  ;;  %v2976_v22 = vsel %vm405_vm0, %v7341_v20, %v5590_v58  ;;  %5130 = vmatpush1.bf16.msra.mxu1 %v5129_v25  ;;  %v3141_v20 = vld [vmem:[%s8420_s3 + $0x138] sm:$0xff]  ;;  %v2337_v40 = vld [vmem:[#allocation3 + $0x69] sm:$0xff] }
 0x329   : > { %v5593_v63 = vpop.permute.xlu1 %5592  ;;  %3351 = vmatprep.mubr.f32.mxu1 %v3008_v38  ;;  %5131 = vmatprep.subr.bf16.mxu1 %v5944_v3  ;;  %v5135_v25 = vpack.c.bf16 %v3141_v20, %v3140_v49  ;;  %v5756_v48 = vpack.i.bf16 %v2337_v40, %v7409_v62  ;;  %v7645_v44 = vld [vmem:[#allocation3 + $0x89] sm:$0xff]  ;;  %v2338_v38 = vld [vmem:[#allocation3 + $0x71] sm:$0xff] }
 0x32a   : > { %v5595_v16 = vunpack.i.h.bf16 %v5593_v63  ;;  %v5594_v11 = vunpack.i.l.bf16 %v5593_v63  ;;  %3352 = vmatmul.mubr.f32.gmra.mrb[36].mxu1 %v2976_v22  ;;  %v5761_v63 = vpack.i.bf16 %v2338_v38, %v7419_v0  ;;  %v7662_v49 = vld [vmem:[#allocation3 + $0xa9] sm:$0xff]  ;;  %v7664_v20 = vld [vmem:[#allocation3 + $0x91] sm:$0xff] }
 0x32b   : > { %5747 = vrot.lane.b32.xlu0 %v5746_v15, %s5946_s15  ;;  %5742 = vrot.lane.b32.xlu1 %v5741_v41, %s5946_s15 }
 0x32c   : > { %v3009_v42 = vsel %vm405_vm0, %v2334_v1, %v5594_v11  ;;  %v2977_v43 = vsel %vm405_vm0, %v7348_v52, %v5595_v16  ;;  %5133 = vmatpush1.bf16.msra.mxu1 %v5132_v18  ;;  %v3143_v52 = vld [vmem:[%s8420_s3 + $0x148] sm:$0xff]  ;;  %v5766_v18 = vpack.i.bf16 %v7645_v44, %v7429_v32 }
 0x32d   : > { %v5598_v45 = vpop.permute.xlu0 %5597  ;;  %3356 = vmatprep.mubr.f32.mxu1 %v3009_v42  ;;  %5134 = vmatprep.subr.bf16.mxu1 %v5944_v3  ;;  %v5138_v22 = vpack.c.bf16 %v3143_v52, %v3142_v12  ;;  %v5776_v42 = vpack.i.bf16 %v7662_v49, %v7443_v8 }
 0x32e   : > { %v5600_v29 = vunpack.i.h.bf16 %v5598_v45  ;;  %v5599_v58 = vunpack.i.l.bf16 %v5598_v45  ;;  %3357 = vmatmul.mubr.f32.gmra.mrb[38].mxu1 %v2977_v43  ;;  %v5771_v43 = vpack.i.bf16 %v7664_v20, %v7436_v4 }
 0x32f   : > { %5757 = vrot.lane.b32.xlu0 %v5756_v48, %s5946_s15  ;;  %5752 = vrot.lane.b32.xlu1 %v5751_v55, %s5946_s15  ;;  %v7682_v48 = vld [vmem:[#allocation3 + $0xc9] sm:$0xff]  ;;  %v7684_v55 = vld [vmem:[#allocation3 + $0xb1] sm:$0xff] }
 0x330   : > { %v3010_v62 = vsel %vm405_vm0, %v2335_v54, %v5599_v58  ;;  %v2978_v35 = vsel %vm405_vm0, %v7355_v24, %v5600_v29  ;;  %5136 = vmatpush1.bf16.msra.mxu1 %v5135_v25  ;;  %v3144_v54 = vld [vmem:[%s8420_s3 + $0x150] sm:$0xff]  ;;  %v3145_v24 = vld [vmem:[%s8420_s3 + $0x158] sm:$0xff]  ;;  %v5786_v29 = vpack.i.bf16 %v7682_v48, %v7457_v31  ;;  %v5781_v58 = vpack.i.bf16 %v7684_v55, %v7450_v53 }
 0x331   : > { %v5603_v1 = vpop.permute.xlu1 %5602  ;;  %3361 = vmatprep.mubr.f32.mxu1 %v3010_v62  ;;  %5137 = vmatprep.subr.bf16.mxu1 %v5944_v3  ;;  %v5141_v16 = vpack.c.bf16 %v3145_v24, %v3144_v54 }
 0x332   : > { %v5605_v15 = vunpack.i.h.bf16 %v5603_v1  ;;  %v5604_v41 = vunpack.i.l.bf16 %v5603_v1  ;;  %3362 = vmatmul.mubr.f32.gmra.mrb[40].mxu1 %v2978_v35  ;;  %v7704_v1 = vld [vmem:[#allocation3 + $0xd1] sm:$0xff] }
 0x333   : > { %5767 = vrot.lane.b32.xlu0 %v5766_v18, %s5946_s15  ;;  %5762 = vrot.lane.b32.xlu1 %v5761_v63, %s5946_s15  ;;  %v5791_v24 = vpack.i.bf16 %v7704_v1, %v7464_v7 }
 0x334   : > { %v3011_v32 = vsel %vm405_vm0, %v2336_v17, %v5604_v41  ;;  %v2979_v0 = vsel %vm405_vm0, %v7362_v5, %v5605_v15  ;;  %5139 = vmatpush1.bf16.msra.mxu1 %v5138_v22  ;;  %v3146_v5 = vld [vmem:[%s8420_s3 + $0x160] sm:$0xff]  ;;  %v3147_v17 = vld [vmem:[%s8420_s3 + $0x168] sm:$0xff] }
 0x335   : > { %v5608_v11 = vpop.permute.xlu0 %5607  ;;  %3366 = vmatprep.mubr.f32.mxu1 %v3011_v32  ;;  %5140 = vmatprep.subr.bf16.mxu1 %v5944_v3  ;;  %v5144_v12 = vpack.c.bf16 %v3147_v17, %v3146_v5  ;;  %v7702_v22 = vld [vmem:[#allocation3 + $0xe9] sm:$0xff] }
 0x336   : > { %v5610_v25 = vunpack.i.h.bf16 %v5608_v11  ;;  %v5609_v45 = vunpack.i.l.bf16 %v5608_v11  ;;  %3367 = vmatmul.mubr.f32.gmra.mrb[42].mxu1 %v2979_v0  ;;  %v5796_v54 = vpack.i.bf16 %v7702_v22, %v7471_v60  ;;  %v7723_v32 = vld [vmem:[#allocation3 + $0x109] sm:$0xff]  ;;  %v7725_v0 = vld [vmem:[#allocation3 + $0xf1] sm:$0xff] }
 0x337   : > { %5777 = vrot.lane.b32.xlu0 %v5776_v42, %s5946_s15  ;;  %5772 = vrot.lane.b32.xlu1 %v5771_v43, %s5946_s15  ;;  %v5806_v42 = vpack.i.bf16 %v7723_v32, %v7485_v27  ;;  %v5801_v43 = vpack.i.bf16 %v7725_v0, %v7478_v30 }
 0x338   : > { %v3012_v8 = vsel %vm405_vm0, %v2337_v40, %v5609_v45  ;;  %v2980_v4 = vsel %vm405_vm0, %v7371_v13, %v5610_v25  ;;  %5142 = vmatpush1.bf16.msra.mxu1 %v5141_v16  ;;  %v3148_v13 = vld [vmem:[%s8420_s3 + $0x170] sm:$0xff]  ;;  %v3149_v40 = vld [vmem:[%s8420_s3 + $0x178] sm:$0xff] }
 0x339   : > { %v5613_v52 = vpop.permute.xlu1 %5612  ;;  %3371 = vmatprep.mubr.f32.mxu1 %v3012_v8  ;;  %5143 = vmatprep.subr.bf16.mxu1 %v5944_v3  ;;  %v5147_v18 = vpack.c.bf16 %v3149_v40, %v3148_v13  ;;  %v7744_v25 = vld [vmem:[#allocation3 + $0x129] sm:$0xff]  ;;  %v7746_v45 = vld [vmem:[#allocation3 + $0x111] sm:$0xff] }
 0x33a   : > { %v5615_v62 = vunpack.i.h.bf16 %v5613_v52  ;;  %v5614_v35 = vunpack.i.l.bf16 %v5613_v52  ;;  %3372 = vmatmul.mubr.f32.gmra.mrb[44].mxu1 %v2980_v4  ;;  %v5811_v52 = vpack.i.bf16 %v7746_v45, %v7492_v47  ;;  %v7765_v13 = vld [vmem:[#allocation3 + $0x149] sm:$0xff]  ;;  %v7767_v40 = vld [vmem:[#allocation3 + $0x131] sm:$0xff] }
 0x33b   : > { %5787 = vrot.lane.b32.xlu0 %v5786_v29, %s5946_s15  ;;  %5782 = vrot.lane.b32.xlu1 %v5781_v58, %s5946_s15 }
 0x33c   : > { %v3013_v31 = vsel %vm405_vm0, %v2338_v38, %v5614_v35  ;;  %v2981_v53 = vsel %vm405_vm0, %v7381_v46, %v5615_v62  ;;  %5145 = vmatpush1.bf16.msra.mxu1 %v5144_v12  ;;  %v3150_v46 = vld [vmem:[%s8420_s3 + $0x180] sm:$0xff]  ;;  %v3151_v38 = vld [vmem:[%s8420_s3 + $0x188] sm:$0xff]  ;;  %v5816_v12 = vpack.i.bf16 %v7744_v25, %v7499_v9 }
 0x33d   : > { %v5618_v63 = vpop.permute.xlu0 %5617  ;;  %3376 = vmatprep.mubr.f32.mxu1 %v3013_v31  ;;  %5146 = vmatprep.subr.bf16.mxu1 %v5944_v3  ;;  %v5150_v16 = vpack.c.bf16 %v3151_v38, %v3150_v46  ;;  %v5826_v31 = vpack.i.bf16 %v7765_v13, %v7513_v59 }
 0x33e   : > { %v5620_v15 = vunpack.i.h.bf16 %v5618_v63  ;;  %v5619_v41 = vunpack.i.l.bf16 %v5618_v63  ;;  %3377 = vmatmul.mubr.f32.gmra.mrb[46].mxu1 %v2981_v53  ;;  %v5821_v53 = vpack.i.bf16 %v7767_v40, %v7506_v50 }
 0x33f   : > { %5797 = vrot.lane.b32.xlu0 %v5796_v54, %s5946_s15  ;;  %5792 = vrot.lane.b32.xlu1 %v5791_v24, %s5946_s15  ;;  %v7786_v54 = vld [vmem:[#allocation3 + $0x169] sm:$0xff]  ;;  %v7788_v24 = vld [vmem:[#allocation3 + $0x151] sm:$0xff] }
 0x340   : > { %v3014_v7 = vsel %vm405_vm0, %v7645_v44, %v5619_v41  ;;  %v2982_v60 = vsel %vm405_vm0, %v7391_v36, %v5620_v15  ;;  %5148 = vmatpush1.bf16.msra.mxu1 %v5147_v18  ;;  %v3152_v36 = vld [vmem:[%s8420_s3 + $0x190] sm:$0xff]  ;;  %v3153_v44 = vld [vmem:[%s8420_s3 + $0x198] sm:$0xff]  ;;  %v5836_v15 = vpack.i.bf16 %v7786_v54, %v7527_v56  ;;  %v5831_v41 = vpack.i.bf16 %v7788_v24, %v7520_v19  ;;  %v7803_v56 = vld [vmem:[#allocation3 + $0xc7] sm:$0xff] }
 0x341   : > { %v5623_v11 = vpop.permute.xlu1 %5622  ;;  %3381 = vmatprep.mubr.f32.mxu1 %v3014_v7  ;;  %5149 = vmatprep.subr.bf16.mxu1 %v5944_v3  ;;  %v5153_v8 = vpack.c.bf16 %v3153_v44, %v3152_v36 }
 0x342   : > { %v5625_v5 = vunpack.i.h.bf16 %v5623_v11  ;;  %v5624_v17 = vunpack.i.l.bf16 %v5623_v11  ;;  %3382 = vmatmul.mubr.f32.gmra.mrb[48].mxu1 %v2982_v60  ;;  %v7809_v11 = vld [vmem:[#allocation3 + $0x189] sm:$0xff] }
 0x343   : > { %5807 = vrot.lane.b32.xlu0 %v5806_v42, %s5946_s15  ;;  %5802 = vrot.lane.b32.xlu1 %v5801_v43, %s5946_s15  ;;  %v7811_v42 = vld [vmem:[#allocation3 + $0x171] sm:$0xff]  ;;  %v5846_v44 = vpack.i.bf16 %v7809_v11, %v7544_v2 }
 0x344   : > { %v3015_v30 = vsel %vm405_vm0, %v7664_v20, %v5624_v17  ;;  %v2983_v27 = vsel %vm405_vm0, %v7401_v57, %v5625_v5  ;;  %5151 = vmatpush1.bf16.msra.mxu1 %v5150_v16  ;;  %v3154_v57 = vld [vmem:[%s8420_s3 + $0x1a0] sm:$0xff]  ;;  %v3155_v20 = vld [vmem:[%s8420_s3 + $0x1a8] sm:$0xff]  ;;  %v5841_v5 = vpack.i.bf16 %v7811_v42, %v7534_v23  ;;  %v3161_v17 = vld [vmem:[%s8420_s3 + $0x1d8] sm:$0xff] }
 0x345   : > { %v5628_v4 = vpop.permute.xlu0 %5627  ;;  %3386 = vmatprep.mubr.f32.mxu1 %v3015_v30  ;;  %5152 = vmatprep.subr.bf16.mxu1 %v5944_v3  ;;  %v5156_v62 = vpack.c.bf16 %v3155_v20, %v3154_v57  ;;  %v7826_v2 = vld [vmem:[#allocation3 + $0xcf] sm:$0xff] }
 0x346   : > { %v5630_v29 = vunpack.i.h.bf16 %v5628_v4  ;;  %v5629_v58 = vunpack.i.l.bf16 %v5628_v4  ;;  %3387 = vmatmul.mubr.f32.gmra.mrb[50].mxu1 %v2983_v27  ;;  %v7832_v4 = vld [vmem:[#allocation3 + $0x1a9] sm:$0xff] }
 0x347   : > { %5817 = vrot.lane.b32.xlu0 %v5816_v12, %s5946_s15  ;;  %5812 = vrot.lane.b32.xlu1 %v5811_v52, %s5946_s15  ;;  %v7834_v12 = vld [vmem:[#allocation3 + $0x191] sm:$0xff]  ;;  %v5856_v20 = vpack.i.bf16 %v7832_v4, %v7564_v37  ;;  %v7849_v37 = vld [vmem:[#allocation3 + $0xe7] sm:$0xff] }
 0x348   : > { %v3016_v47 = vsel %vm405_vm0, %v7662_v49, %v5629_v58  ;;  %v2984_v9 = vsel %vm405_vm0, %v7411_v6, %v5630_v29  ;;  %5154 = vmatpush1.bf16.msra.mxu1 %v5153_v8  ;;  %v3156_v6 = vld [vmem:[%s8420_s3 + $0x1b0] sm:$0xff]  ;;  %v3157_v49 = vld [vmem:[%s8420_s3 + $0x1b8] sm:$0xff]  ;;  %v5851_v29 = vpack.i.bf16 %v7834_v12, %v7554_v39  ;;  %v3163_v58 = vld [vmem:[%s8420_s3 + $0x1e8] sm:$0xff] }
 0x349   : > { %v5633_v35 = vpop.permute.xlu1 %5632  ;;  %3391 = vmatprep.mubr.f32.mxu1 %v3016_v47  ;;  %5155 = vmatprep.subr.bf16.mxu1 %v5944_v3  ;;  %v5159_v46 = vpack.c.bf16 %v3157_v49, %v3156_v6 }
 0x34a   : > { %v5635_v18 = vunpack.i.h.bf16 %v5633_v35  ;;  %v5634_v63 = vunpack.i.l.bf16 %v5633_v35  ;;  %3392 = vmatmul.mubr.f32.gmra.mrb[52].mxu1 %v2984_v9  ;;  %v7855_v35 = vld [vmem:[#allocation3 + $0x1c9] sm:$0xff] }
 0x34b   : > { %5827 = vrot.lane.b32.xlu0 %v5826_v31, %s5946_s15  ;;  %5822 = vrot.lane.b32.xlu1 %v5821_v53, %s5946_s15  ;;  %v7857_v31 = vld [vmem:[#allocation3 + $0x1b1] sm:$0xff]  ;;  %v5866_v49 = vpack.i.bf16 %v7855_v35, %v7589_v33  ;;  %v3166_v33 = vld [vmem:[%s8420_s3 + $0x200] sm:$0xff] }
 0x34c   : > { %v3017_v50 = vsel %vm405_vm0, %v7684_v55, %v5634_v63  ;;  %v2985_v59 = vsel %vm405_vm0, %v7421_v28, %v5635_v18  ;;  %5157 = vmatpush1.bf16.msra.mxu1 %v5156_v62  ;;  %v3158_v28 = vld [vmem:[%s8420_s3 + $0x1c0] sm:$0xff]  ;;  %v3159_v55 = vld [vmem:[%s8420_s3 + $0x1c8] sm:$0xff]  ;;  %v5861_v18 = vpack.i.bf16 %v7857_v31, %v7576_v26  ;;  %v3165_v63 = vld [vmem:[%s8420_s3 + $0x1f8] sm:$0xff] }
 0x34d   : > { %v5638_v38 = vpop.permute.xlu0 %5637  ;;  %3396 = vmatprep.mubr.f32.mxu1 %v3017_v50  ;;  %5158 = vmatprep.subr.bf16.mxu1 %v5944_v3  ;;  %v5162_v43 = vpack.c.bf16 %v3159_v55, %v3158_v28  ;;  %v3167_v26 = vld [vmem:[%s8420_s3 + $0x208] sm:$0xff]  ;;  %v7888_v55 = vld [vmem:[#allocation3 + $0x1d1] sm:$0xff] }
 0x34e   : > { %v5640_v7 = vunpack.i.h.bf16 %v5638_v38  ;;  %v5639_v60 = vunpack.i.l.bf16 %v5638_v38  ;;  %3397 = vmatmul.mubr.f32.gmra.mrb[54].mxu1 %v2985_v59  ;;  %v7880_v38 = vld [vmem:[#allocation3 + $0xef] sm:$0xff] }
 0x34f   : > { %5837 = vrot.lane.b32.xlu0 %v5836_v15, %s5946_s15  ;;  %5832 = vrot.lane.b32.xlu1 %v5831_v41, %s5946_s15  ;;  %v7886_v28 = vld [vmem:[#allocation3 + $0x1e9] sm:$0xff] }
 0x350   : > { %v3018_v19 = vsel %vm405_vm0, %v7682_v48, %v5639_v60  ;;  %v2986_v16 = vsel %vm405_vm0, %v7803_v56, %v5640_v7  ;;  %5160 = vmatpush1.bf16.msra.mxu1 %v5159_v46  ;;  %v3160_v48 = vld [vmem:[%s8420_s3 + $0x1d0] sm:$0xff]  ;;  %v7870_v46 = vld [vmem:[#allocation3 + $0x208] sm:$0xff] }
 0x351   : > { %v5643_v36 = vpop.permute.xlu1 %5642  ;;  %3401 = vmatprep.mubr.f32.mxu1 %v3018_v19  ;;  %5161 = vmatprep.subr.bf16.mxu1 %v5944_v3  ;;  %v5165_v52 = vpack.c.bf16 %v3161_v17, %v3160_v48  ;;  %v5876_v19 = vpack.i.bf16 %v7886_v28, %v7870_v46  ;;  %v7897_v48 = vld [vmem:[#allocation3 + $0x210] sm:$0xff]  ;;  %v7901_v17 = vld [vmem:[#allocation3 + $0x107] sm:$0xff] }
 0x352   : > { %v5645_v30 = vunpack.i.h.bf16 %v5643_v36  ;;  %v5644_v27 = vunpack.i.l.bf16 %v5643_v36  ;;  %3402 = vmatmul.mubr.f32.gmra.mrb[56].mxu1 %v2986_v16  ;;  %v5871_v16 = vpack.i.bf16 %v7888_v55, %v7601_v21 }
 0x353   : > { %5847 = vrot.lane.b32.xlu0 %v5846_v44, %s5946_s15  ;;  %5842 = vrot.lane.b32.xlu1 %v5841_v5, %s5946_s15  ;;  %v2363_v44 = vld [vmem:[#allocation3 + $0x209] sm:$0xff] }
 0x354   : > { %v3019_v23 = vsel %vm405_vm0, %v7704_v1, %v5644_v27  ;;  %v2987_v8 = vsel %vm405_vm0, %v7826_v2, %v5645_v30  ;;  %5163 = vmatpush1.bf16.msra.mxu1 %v5162_v43  ;;  %v3162_v1 = vld [vmem:[%s8420_s3 + $0x1e0] sm:$0xff]  ;;  %v2428_v5 = vld [vmem:[#allocation3 + $0x228] sm:$0xff]  ;;  %v7907_v27 = vld [vmem:[#allocation3 + $0x1f1] sm:$0xff] }
 0x355   : > { %v5648_v57 = vpop.permute.xlu0 %5647  ;;  %3406 = vmatprep.mubr.f32.mxu1 %v3019_v23  ;;  %5164 = vmatprep.subr.bf16.mxu1 %v5944_v3  ;;  %v5168_v53 = vpack.c.bf16 %v3163_v58, %v3162_v1  ;;  %v2429_v1 = vld [vmem:[#allocation3 + $0x230] sm:$0xff] }
 0x356   : > { %v5650_v47 = vunpack.i.h.bf16 %v5648_v57  ;;  %v5649_v9 = vunpack.i.l.bf16 %v5648_v57  ;;  %3407 = vmatmul.mubr.f32.gmra.mrb[58].mxu1 %v2987_v8  ;;  %v5886_v8 = vpack.i.bf16 %v2363_v44, %v2428_v5 }
 0x357   : > { %5857 = vrot.lane.b32.xlu0 %v5856_v20, %s5946_s15  ;;  %5852 = vrot.lane.b32.xlu1 %v5851_v29, %s5946_s15  ;;  %v2364_v29 = vld [vmem:[#allocation3 + $0x211] sm:$0xff] }
 0x358   : > { %v3020_v39 = vsel %vm405_vm0, %v7702_v22, %v5649_v9  ;;  %v2988_v62 = vsel %vm405_vm0, %v7849_v37, %v5650_v47  ;;  %5166 = vmatpush1.bf16.msra.mxu1 %v5165_v52  ;;  %v3164_v22 = vld [vmem:[%s8420_s3 + $0x1f0] sm:$0xff]  ;;  %v5881_v52 = vpack.i.bf16 %v7907_v27, %v7897_v48 }
 0x359   : > { %v5653_v6 = vpop.permute.xlu1 %5652  ;;  %3411 = vmatprep.mubr.f32.mxu1 %v3020_v39  ;;  %5167 = vmatprep.subr.bf16.mxu1 %v5944_v3  ;;  %v5171_v7 = vpack.c.bf16 %v3165_v63, %v3164_v22  ;;  %v5891_v39 = vpack.i.bf16 %v2364_v29, %v2429_v1 }
 0x35a   : > { %v5655_v50 = vunpack.i.h.bf16 %v5653_v6  ;;  %v5654_v59 = vunpack.i.l.bf16 %v5653_v6  ;;  %3412 = vmatmul.mubr.f32.gmra.mrb[60].mxu1 %v2988_v62  ;;  %v7921_v6 = vld [vmem:[#allocation3 + $0x127] sm:$0xff] }
 0x35b   : > { %5867 = vrot.lane.b32.xlu0 %v5866_v49, %s5946_s15  ;;  %5862 = vrot.lane.b32.xlu1 %v5861_v18, %s5946_s15 }
 0x35c   : > { %v3021_v15 = vsel %vm405_vm0, %v7725_v0, %v5654_v59  ;;  %v2989_v41 = vsel %vm405_vm0, %v7880_v38, %v5655_v50  ;;  %5169 = vmatpush1.bf16.msra.mxu1 %v5168_v53  ;;  %v7895_v0 = vpack.c.bf16 %v3167_v26, %v3166_v33  ;;  %v7927_v50 = vld [vmem:[#allocation3 + $0x12f] sm:$0xff] }
 0x35d   : > { %v5658_v60 = vpop.permute.xlu0 %5657  ;;  %3416 = vmatprep.mubr.f32.mxu1 %v3021_v15  ;;  %5170 = vmatprep.subr.bf16.mxu1 %v5944_v3 }
 0x35e   : > { %v5660_v43 = vunpack.i.h.bf16 %v5658_v60  ;;  %v5659_v36 = vunpack.i.l.bf16 %v5658_v60  ;;  %3417 = vmatmul.mubr.f32.gmra.mrb[62].mxu1 %v2989_v41  ;;  %v7933_v41 = vld [vmem:[#allocation3 + $0x147] sm:$0xff] }
 0x35f   : > { %5877 = vrot.lane.b32.xlu0 %v5876_v19, %s5946_s15  ;;  %5872 = vrot.lane.b32.xlu1 %v5871_v16, %s5946_s15 }
 0x360   : > { %v3022_v21 = vsel %vm405_vm0, %v7723_v32, %v5659_v36  ;;  %v2990_v30 = vsel %vm405_vm0, %v7901_v17, %v5660_v43  ;;  %5172 = vmatpush1.bf16.msra.mxu1 %v5171_v7  ;;  %v7914_v32 = vld [vmem:[#allocation3 + $0x10f] sm:$0xff] }
 0x361   : > { %v5663_v23 = vpop.permute.xlu1 %5662  ;;  %3421 = vmatprep.mubr.f32.mxu1 %v3022_v21  ;;  %5174 = vmatprep.subr.bf16.mxu1 %v7895_v0  ;;  %v7939_v43 = vld [vmem:[#allocation3 + $0x14f] sm:$0xff] }
 0x362   : > { %v5665_v57 = vunpack.i.h.bf16 %v5663_v23  ;;  %v5664_v20 = vunpack.i.l.bf16 %v5663_v23  ;;  %3422 = vmatmul.mubr.f32.gmra.mrb[64].mxu1 %v2990_v30  ;;  %v7945_v30 = vld [vmem:[#allocation3 + $0x167] sm:$0xff] }
 0x363   : > { %5887 = vrot.lane.b32.xlu0 %v5886_v8, %s5946_s15  ;;  %5882 = vrot.lane.b32.xlu1 %v5881_v52, %s5946_s15 }
 0x364   : > { %v3023_v58 = vsel %vm405_vm0, %v7746_v45, %v5664_v20  ;;  %v2991_v47 = vsel %vm405_vm0, %v7914_v32, %v5665_v57  ;;  %v7951_v20 = vld [vmem:[#allocation3 + $0x16f] sm:$0xff] }
 0x365   : > { %v5668_v9 = vpop.permute.xlu0 %5667  ;;  %3426 = vmatprep.mubr.f32.mxu1 %v3023_v58 }
 0x366   : > { %v5670_v62 = vunpack.i.h.bf16 %v5668_v9  ;;  %v5669_v53 = vunpack.i.l.bf16 %v5668_v9  ;;  %3427 = vmatmul.mubr.f32.gmra.mrb[66].mxu1 %v2991_v47  ;;  %v7957_v9 = vld [vmem:[#allocation3 + $0x187] sm:$0xff] }
 0x367   : > { %5892 = vrot.lane.b32.xlu1 %v5891_v39, %s5946_s15 }
 0x368   : > { %v3024_v49 = vsel %vm405_vm0, %v7744_v25, %v5669_v53  ;;  %v2992_v18 = vsel %vm405_vm0, %v7921_v6, %v5670_v62 }
 0x369   : > { %v5673_v45 = vpop.permute.xlu1 %5672  ;;  %3431 = vmatprep.mubr.f32.mxu1 %v3024_v49 }
 0x36a   : > { %v5675_v22 = vunpack.i.h.bf16 %v5673_v45  ;;  %v5674_v63 = vunpack.i.l.bf16 %v5673_v45  ;;  %3432 = vmatmul.mubr.f32.gmra.mrb[68].mxu1 %v2992_v18  ;;  %v7963_v18 = vld [vmem:[#allocation3 + $0x18f] sm:$0xff] }
 0x36c   : > { %v3025_v59 = vsel %vm405_vm0, %v7767_v40, %v5674_v63  ;;  %v2993_v33 = vsel %vm405_vm0, %v7927_v50, %v5675_v22 }
 0x36d   : > { %v5678_v26 = vpop.permute.xlu0 %5677  ;;  %3436 = vmatprep.mubr.f32.mxu1 %v3025_v59 }
 0x36e   : > { %v5680_v15 = vunpack.i.h.bf16 %v5678_v26  ;;  %v5679_v25 = vunpack.i.l.bf16 %v5678_v26  ;;  %3437 = vmatmul.mubr.f32.gmra.mrb[70].mxu1 %v2993_v33  ;;  %v7969_v33 = vld [vmem:[#allocation3 + $0x1a7] sm:$0xff] }
 0x370   : > { %v3026_v7 = vsel %vm405_vm0, %v7765_v13, %v5679_v25  ;;  %v2994_v60 = vsel %vm405_vm0, %v7933_v41, %v5680_v15 }
 0x371   : > { %v5683_v19 = vpop.permute.xlu1 %5682  ;;  %3441 = vmatprep.mubr.f32.mxu1 %v3026_v7 }
 0x372   : > { %v5685_v16 = vunpack.i.h.bf16 %v5683_v19  ;;  %v5684_v40 = vunpack.i.l.bf16 %v5683_v19  ;;  %3442 = vmatmul.mubr.f32.gmra.mrb[72].mxu1 %v2994_v60 }
 0x374   : > { %v3027_v36 = vsel %vm405_vm0, %v7788_v24, %v5684_v40  ;;  %v2995_v44 = vsel %vm405_vm0, %v7939_v43, %v5685_v16 }
 0x375   : > { %v5688_v5 = vpop.permute.xlu0 %5687  ;;  %3446 = vmatprep.mubr.f32.mxu1 %v3027_v36 }
 0x376   : > { %v5690_v21 = vunpack.i.h.bf16 %v5688_v5  ;;  %v5689_v13 = vunpack.i.l.bf16 %v5688_v5  ;;  %3447 = vmatmul.mubr.f32.gmra.mrb[74].mxu1 %v2995_v44 }
 0x378   : > { %v3028_v23 = vsel %vm405_vm0, %v7786_v54, %v5689_v13  ;;  %v2996_v8 = vsel %vm405_vm0, %v7945_v30, %v5690_v21 }
 0x379   : > { %v5693_v52 = vpop.permute.xlu1 %5692  ;;  %3451 = vmatprep.mubr.f32.mxu1 %v3028_v23 }
 0x37a   : > { %v5695_v57 = vunpack.i.h.bf16 %v5693_v52  ;;  %v5694_v24 = vunpack.i.l.bf16 %v5693_v52  ;;  %3452 = vmatmul.mubr.f32.gmra.mrb[76].mxu1 %v2996_v8 }
 0x37c   : > { %v3029_v29 = vsel %vm405_vm0, %v7811_v42, %v5694_v24  ;;  %v2997_v1 = vsel %vm405_vm0, %v7951_v20, %v5695_v57 }
 0x37d   : > { %v5698_v58 = vpop.permute.xlu0 %5697  ;;  %3456 = vmatprep.mubr.f32.mxu1 %v3029_v29 }
 0x37e   : > { %v5700_v47 = vunpack.i.h.bf16 %v5698_v58  ;;  %v5699_v54 = vunpack.i.l.bf16 %v5698_v58  ;;  %3457 = vmatmul.mubr.f32.gmra.mrb[78].mxu1 %v2997_v1 }
 0x380   : > { %v3030_v39 = vsel %vm405_vm0, %v7809_v11, %v5699_v54  ;;  %v2998_v62 = vsel %vm405_vm0, %v7957_v9, %v5700_v47 }
 0x381   : > { %v5703_v53 = vpop.permute.xlu1 %5702  ;;  %3461 = vmatprep.mubr.f32.mxu1 %v3030_v39  ;;  %v3169_v39 = vld [vmem:[%s8420_s3 + $0x218] sm:$0xff] }
 0x382   : > { %v5705_v49 = vunpack.i.h.bf16 %v5703_v53  ;;  %v5704_v42 = vunpack.i.l.bf16 %v5703_v53  ;;  %3462 = vmatmul.mubr.f32.gmra.mrb[80].mxu1 %v2998_v62 }
 0x384   : > { %v3031_v45 = vsel %vm405_vm0, %v7834_v12, %v5704_v42  ;;  %v2999_v22 = vsel %vm405_vm0, %v7963_v18, %v5705_v49  ;;  %v2301_v49 = vld [vmem:[#allocation3 + $0x28] sm:$0xff] }
 0x385   : > { %v5708_v63 = vpop.permute.xlu0 %5707  ;;  %3466 = vmatprep.mubr.f32.mxu1 %v3031_v45 }
 0x386   : > { %v5710_v59 = vunpack.i.h.bf16 %v5708_v63  ;;  %v5709_v11 = vunpack.i.l.bf16 %v5708_v63  ;;  %3467 = vmatmul.mubr.f32.gmra.mrb[82].mxu1 %v2999_v22  ;;  %v2367_v22 = vld [vmem:[#allocation3 + $0x4f] sm:$0xff]  ;;  %v3170_v63 = vld [vmem:[%s8420_s3 + $0x220] sm:$0xff] }
 0x388   : > { %v3032_v26 = vsel %vm405_vm0, %v7832_v4, %v5709_v11  ;;  %v3000_v15 = vsel %vm405_vm0, %v7969_v33, %v5710_v59  ;;  %v3171_v59 = vld [vmem:[%s8420_s3 + $0x228] sm:$0xff] }
 0x389   : > { %v5713_v25 = vpop.permute.xlu1 %5712  ;;  %3471 = vmatprep.mubr.f32.mxu1 %v3032_v26 }
 0x38a   : > { %v5715_v7 = vunpack.i.h.bf16 %v5713_v25  ;;  %v5714_v12 = vunpack.i.l.bf16 %v5713_v25  ;;  %3472 = vmatmul.mubr.f32.gmra.mrb[84].mxu1 %v3000_v15  ;;  %v2302_v25 = vld [vmem:[#allocation3 + $0x30] sm:$0xff] }
 0x38c   : > { %v3033_v60 = vsel %vm405_vm0, %v7857_v31, %v5714_v12  ;;  %v3001_v19 = vsel %vm405_vm0, %v7536_v51, %v5715_v7  ;;  %v5181_v7 = vpack.c.bf16 %v3171_v59, %v3170_v63  ;;  %v2373_v59 = vld [vmem:[#allocation3 + $0xaf] sm:$0xff] }
 0x38d   : > { %v5718_v16 = vpop.permute.xlu0 %5717  ;;  %3476 = vmatprep.mubr.f32.mxu1 %v3033_v60 }
 0x38e   : > { %v5720_v40 = vunpack.i.h.bf16 %v5718_v16  ;;  %v5719_v36 = vunpack.i.l.bf16 %v5718_v16  ;;  %3477 = vmatmul.mubr.f32.gmra.mrb[86].mxu1 %v3001_v19  ;;  %v2368_v19 = vld [vmem:[#allocation3 + $0x67] sm:$0xff]  ;;  %v3172_v16 = vld [vmem:[%s8420_s3 + $0x230] sm:$0xff] }
 0x390   : > { %v3034_v4 = vsel %vm405_vm0, %v7855_v35, %v5719_v36  ;;  %v3002_v44 = vsel %vm405_vm0, %v7546_v10, %v5720_v40  ;;  %v3173_v40 = vld [vmem:[%s8420_s3 + $0x238] sm:$0xff] }
 0x391   : > { %v5723_v5 = vpop.permute.xlu1 %5722  ;;  %3481 = vmatprep.mubr.f32.mxu1 %v3034_v4 }
 0x392   : > { %v5725_v21 = vunpack.i.h.bf16 %v5723_v5  ;;  %v5724_v13 = vunpack.i.l.bf16 %v5723_v5  ;;  %3482 = vmatmul.mubr.f32.gmra.mrb[88].mxu1 %v3002_v44  ;;  %v2303_v44 = vld [vmem:[#allocation3 + $0x48] sm:$0xff]  ;;  %v5185_v5 = vpack.c.bf16 %v3173_v40, %v3172_v16 }
 0x393   : > { %v2309_v40 = vld [vmem:[#allocation3 + $0xa8] sm:$0xff] }
 0x394   : > { %v3035_v31 = vsel %vm405_vm0, %v7888_v55, %v5724_v13  ;;  %v3003_v51 = vsel %vm405_vm0, %v7556_v14, %v5725_v21 }
 0x395   : > { %v5728_v23 = vpop.permute.xlu0 %5727  ;;  %3486 = vmatprep.mubr.f32.mxu1 %v3035_v31  ;;  %v2369_v31 = vld [vmem:[#allocation3 + $0x6f] sm:$0xff] }
 0x396   : > { %v5730_v8 = vunpack.i.h.bf16 %v5728_v23  ;;  %v5729_v52 = vunpack.i.l.bf16 %v5728_v23  ;;  %3487 = vmatmul.mubr.f32.gmra.mrb[90].mxu1 %v3003_v51 }
 0x398   : > { %v3036_v35 = vsel %vm405_vm0, %v7886_v28, %v5729_v52  ;;  %v3004_v10 = vsel %vm405_vm0, %v7566_v34, %v5730_v8  ;;  %v2366_v28 = vld [vmem:[#allocation3 + $0x47] sm:$0xff]  ;;  %v3168_v34 = vld [vmem:[%s8420_s3 + $0x210] sm:$0xff] }
 0x399   : > { %v5738_v57 = vpop.permute.xlu0 %5737  ;;  %v5733_v24 = vpop.permute.xlu1 %5732  ;;  %3491 = vmatprep.mubr.f32.mxu1 %v3036_v35  ;;  %v2304_v52 = vld [vmem:[#allocation3 + $0x50] sm:$0xff] }
 0x39a   : > { %v5739_v29 = vunpack.i.l.bf16 %v5738_v57  ;;  %v5735_v1 = vunpack.i.h.bf16 %v5733_v24  ;;  %v5734_v55 = vunpack.i.l.bf16 %v5733_v24  ;;  %3492 = vmatmul.mubr.f32.gmra.mrb[92].mxu1 %v3004_v10  ;;  %v5740_v47 = vunpack.i.h.bf16 %v5738_v57  ;;  %v2370_v57 = vld [vmem:[#allocation3 + $0x87] sm:$0xff] }
 0x39c   : > { %v3037_v14 = vsel %vm405_vm0, %v7907_v27, %v5734_v55  ;;  %v3005_v58 = vsel %vm405_vm0, %v7578_v61, %v5735_v1  ;;  %v3070_v53 = vsel %vm405_vm0, %v2366_v28, %v5739_v29  ;;  %v5177_v61 = vpack.c.bf16 %v3169_v39, %v3168_v34  ;;  %v2305_v55 = vld [vmem:[#allocation3 + $0x68] sm:$0xff]  ;;  %v2306_v39 = vld [vmem:[#allocation3 + $0x70] sm:$0xff] }
 0x39d   : > { %v5743_v54 = vpop.permute.xlu1 %5742  ;;  %3496 = vmatprep.mubr.f32.mxu1 %v3037_v14  ;;  %v5748_v27 = vpop.permute.xlu0 %5747  ;;  %v3038_v45 = vsel %vm405_vm0, %v2301_v49, %v5740_v47  ;;  %v2371_v47 = vld [vmem:[#allocation3 + $0x8f] sm:$0xff] }
 0x39e   : > { %v5744_v62 = vunpack.i.l.bf16 %v5743_v54  ;;  %3497 = vmatmul.mubr.f32.gmra.mrb[94].mxu1 %v3005_v58  ;;  %v5745_v42 = vunpack.i.h.bf16 %v5743_v54  ;;  %v5749_v11 = vunpack.i.l.bf16 %v5748_v27  ;;  %v5750_v12 = vunpack.i.h.bf16 %v5748_v27  ;;  %v2372_v27 = vld [vmem:[#allocation3 + $0xa7] sm:$0xff] }
 0x39f   : > { %3566 = vmatprep.mubr.f32.mxu1 %v3070_v53 }
 0x3a0   : > { %v3071_v26 = vsel %vm405_vm0, %v2367_v22, %v5744_v62  ;;  %v3039_v60 = vsel %vm405_vm0, %v2302_v25, %v5745_v42  ;;  %v3072_v4 = vsel %vm405_vm0, %v2368_v19, %v5749_v11  ;;  %v3040_v13 = vsel %vm405_vm0, %v2303_v44, %v5750_v12  ;;  %v2308_v25 = vld [vmem:[#allocation3 + $0x90] sm:$0xff] }
 0x3a1   : > { %v5753_v15 = vpop.permute.xlu1 %5752 }
 0x3a2   : > { %3567 = vmatmul.mubr.f32.vlgmr.msra.gmra.mrb[32].mxu1 %v3038_v45  ;;  %v5754_v36 = vunpack.i.l.bf16 %v5753_v15  ;;  %v5755_v21 = vunpack.i.h.bf16 %v5753_v15  ;;  %v2307_v45 = vld [vmem:[#allocation3 + $0x88] sm:$0xff] }
 0x3a3   : > { %3571 = vmatprep.mubr.f32.mxu1 %v3071_v26  ;;  %5176 = vmatpush3.bf16.msra.mxu1 %v7895_v0  ;;  %v5758_v0 = vpop.permute.xlu0 %5757 }
 0x3a4   : > { %5178 = vmatprep.subr.bf16.mxu1 %v5177_v61  ;;  %v5759_v51 = vunpack.i.l.bf16 %v5758_v0  ;;  %v3073_v23 = vsel %vm405_vm0, %v2369_v31, %v5754_v36  ;;  %v5760_v35 = vunpack.i.h.bf16 %v5758_v0  ;;  %v3041_v10 = vsel %vm405_vm0, %v2304_v52, %v5755_v21  ;;  %v2310_v21 = vld [vmem:[#allocation3 + $0xb0] sm:$0xff] }
 0x3a5   : > { %v5763_v8 = vpop.permute.xlu1 %5762 }
 0x3a6   : > { %3572 = vmatmul.mubr.f32.gmra.mrb[34].mxu1 %v3039_v60  ;;  %v5764_v24 = vunpack.i.l.bf16 %v5763_v8  ;;  %v3074_v29 = vsel %vm405_vm0, %v2370_v57, %v5759_v51  ;;  %v5765_v14 = vunpack.i.h.bf16 %v5763_v8  ;;  %v3042_v58 = vsel %vm405_vm0, %v2305_v55, %v5760_v35  ;;  %v2311_v8 = vld [vmem:[#allocation3 + $0xc8] sm:$0xff] }
 0x3a7   : > { %3576 = vmatprep.mubr.f32.mxu1 %v3072_v4  ;;  %5180 = vmatpush3.bf16.msra.mxu1 %v5177_v61  ;;  %v5768_v1 = vpop.permute.xlu0 %5767 }
 0x3a8   : > { %5182 = vmatprep.subr.bf16.mxu1 %v5181_v7  ;;  %v5769_v54 = vunpack.i.l.bf16 %v5768_v1  ;;  %v3075_v28 = vsel %vm405_vm0, %v2371_v47, %v5764_v24  ;;  %v5770_v62 = vunpack.i.h.bf16 %v5768_v1  ;;  %v3043_v53 = vsel %vm405_vm0, %v2306_v39, %v5765_v14  ;;  %v2312_v24 = vld [vmem:[#allocation3 + $0xd0] sm:$0xff] }
 0x3a9   : > { %v5773_v34 = vpop.permute.xlu1 %5772  ;;  %v2314_v39 = vld [vmem:[#allocation3 + $0xf0] sm:$0xff] }
 0x3aa   : > { %3577 = vmatmul.mubr.f32.gmra.mrb[36].mxu1 %v3040_v13  ;;  %v5774_v49 = vunpack.i.l.bf16 %v5773_v34  ;;  %v3076_v61 = vsel %vm405_vm0, %v2372_v27, %v5769_v54  ;;  %v5775_v22 = vunpack.i.h.bf16 %v5773_v34  ;;  %v3044_v63 = vsel %vm405_vm0, %v2307_v45, %v5770_v62 }
 0x3ab   : > { %3581 = vmatprep.mubr.f32.mxu1 %v3073_v23  ;;  %5184 = vmatpush3.bf16.msra.mxu1 %v5181_v7  ;;  %v5778_v42 = vpop.permute.xlu0 %5777 }
 0x3ac   : > { %5186 = vmatprep.subr.bf16.mxu1 %v5185_v5  ;;  %v5779_v11 = vunpack.i.l.bf16 %v5778_v42  ;;  %v3077_v26 = vsel %vm405_vm0, %v2373_v59, %v5774_v49  ;;  %v5780_v7 = vunpack.i.h.bf16 %v5778_v42  ;;  %v3045_v12 = vsel %vm405_vm0, %v2308_v25, %v5775_v22  ;;  %v2316_v59 = vld [vmem:[#allocation3 + $0x110] sm:$0xff] }
 0x3ad   : > { %v5783_v15 = vpop.permute.xlu1 %5782 }
 0x3ae   : > { %3582 = vmatmul.mubr.f32.gmra.mrb[38].mxu1 %v3041_v10  ;;  %v5784_v60 = vunpack.i.l.bf16 %v5783_v15  ;;  %v3078_v19 = vsel %vm405_vm0, %v7803_v56, %v5779_v11  ;;  %v5785_v36 = vunpack.i.h.bf16 %v5783_v15  ;;  %v3046_v4 = vsel %vm405_vm0, %v2309_v40, %v5780_v7  ;;  %v2317_v7 = vld [vmem:[#allocation3 + $0x128] sm:$0xff]  ;;  %v2318_v40 = vld [vmem:[#allocation3 + $0x130] sm:$0xff] }
 0x3af   : > { %3586 = vmatprep.mubr.f32.mxu1 %v3074_v29  ;;  %5188 = vmatpush3.bf16.msra.mxu1 %v5185_v5  ;;  %v5788_v16 = vpop.permute.xlu0 %5787 }
 0x3b0   : > { %5189 = vmatprep.subr.bf16.mxu1 %v5944_v3  ;;  %v5789_v0 = vunpack.i.l.bf16 %v5788_v16  ;;  %v3079_v44 = vsel %vm405_vm0, %v7826_v2, %v5784_v60  ;;  %v5790_v13 = vunpack.i.h.bf16 %v5788_v16  ;;  %v3047_v31 = vsel %vm405_vm0, %v2310_v21, %v5785_v36 }
 0x3b1   : > { %v5793_v5 = vpop.permute.xlu1 %5792 }
 0x3b2   : > { %3587 = vmatmul.mubr.f32.gmra.mrb[40].mxu1 %v3042_v58  ;;  %v5794_v51 = vunpack.i.l.bf16 %v5793_v5  ;;  %v3080_v56 = vsel %vm405_vm0, %v7849_v37, %v5789_v0  ;;  %v5795_v52 = vunpack.i.h.bf16 %v5793_v5  ;;  %v3048_v35 = vsel %vm405_vm0, %v2311_v8, %v5790_v13  ;;  %v2313_v58 = vld [vmem:[#allocation3 + $0xe8] sm:$0xff] }
 0x3b3   : > { %3591 = vmatprep.mubr.f32.mxu1 %v3075_v28  ;;  %v5798_v23 = vpop.permute.xlu0 %5797  ;;  %v2319_v5 = vld [vmem:[#allocation3 + $0x148] sm:$0xff] }
 0x3b4   : > { %v5799_v10 = vunpack.i.l.bf16 %v5798_v23  ;;  %v3081_v2 = vsel %vm405_vm0, %v7880_v38, %v5794_v51  ;;  %v5800_v29 = vunpack.i.h.bf16 %v5798_v23  ;;  %v3049_v1 = vsel %vm405_vm0, %v2312_v24, %v5795_v52 }
 0x3b5   : > { %v5803_v57 = vpop.permute.xlu1 %5802 }
 0x3b6   : > { %3592 = vmatmul.mubr.f32.gmra.mrb[42].mxu1 %v3043_v53  ;;  %v5804_v55 = vunpack.i.l.bf16 %v5803_v57  ;;  %v3082_v37 = vsel %vm405_vm0, %v7901_v17, %v5799_v10  ;;  %v5805_v47 = vunpack.i.h.bf16 %v5803_v57  ;;  %v3050_v54 = vsel %vm405_vm0, %v2313_v58, %v5800_v29  ;;  %v2321_v10 = vld [vmem:[#allocation3 + $0x168] sm:$0xff] }
 0x3b7   : > { %3596 = vmatprep.mubr.f32.mxu1 %v3076_v61  ;;  %v5808_v14 = vpop.permute.xlu0 %5807  ;;  %v2315_v61 = vld [vmem:[#allocation3 + $0x108] sm:$0xff] }
 0x3b8   : > { %v5809_v28 = vunpack.i.l.bf16 %v5808_v14  ;;  %v3083_v38 = vsel %vm405_vm0, %v7914_v32, %v5804_v55  ;;  %v5810_v62 = vunpack.i.h.bf16 %v5808_v14  ;;  %v3051_v53 = vsel %vm405_vm0, %v2314_v39, %v5805_v47  ;;  %v2323_v47 = vld [vmem:[#allocation3 + $0x188] sm:$0xff] }
 0x3b9   : > { %v5813_v34 = vpop.permute.xlu1 %5812 }
 0x3ba   : > { %3597 = vmatmul.mubr.f32.gmra.mrb[44].mxu1 %v3044_v63  ;;  %v5814_v27 = vunpack.i.l.bf16 %v5813_v34  ;;  %v3084_v17 = vsel %vm405_vm0, %v7921_v6, %v5809_v28  ;;  %v5815_v42 = vunpack.i.h.bf16 %v5813_v34  ;;  %v3052_v45 = vsel %vm405_vm0, %v2315_v61, %v5810_v62  ;;  %v2324_v62 = vld [vmem:[#allocation3 + $0x190] sm:$0xff] }
 0x3bb   : > { %3601 = vmatprep.mubr.f32.mxu1 %v3077_v26  ;;  %v5818_v49 = vpop.permute.xlu0 %5817 }
 0x3bc   : > { %v5819_v22 = vunpack.i.l.bf16 %v5818_v49  ;;  %v3085_v32 = vsel %vm405_vm0, %v7927_v50, %v5814_v27  ;;  %v5820_v11 = vunpack.i.h.bf16 %v5818_v49  ;;  %v3053_v26 = vsel %vm405_vm0, %v2316_v59, %v5815_v42  ;;  %v2325_v42 = vld [vmem:[#allocation3 + $0x1a8] sm:$0xff] }
 0x3bd   : > { %v5823_v63 = vpop.permute.xlu1 %5822 }
 0x3be   : > { %3602 = vmatmul.mubr.f32.gmra.mrb[46].mxu1 %v3045_v12  ;;  %v5824_v15 = vunpack.i.l.bf16 %v5823_v63  ;;  %v3086_v6 = vsel %vm405_vm0, %v7933_v41, %v5819_v22  ;;  %v5825_v12 = vunpack.i.h.bf16 %v5823_v63  ;;  %v3054_v60 = vsel %vm405_vm0, %v2317_v7, %v5820_v11 }
 0x3bf   : > { %3606 = vmatprep.mubr.f32.mxu1 %v3078_v19  ;;  %v5828_v25 = vpop.permute.xlu0 %5827 }
 0x3c0   : > { %v5829_v19 = vunpack.i.l.bf16 %v5828_v25  ;;  %v3087_v50 = vsel %vm405_vm0, %v7939_v43, %v5824_v15  ;;  %v5830_v36 = vunpack.i.h.bf16 %v5828_v25  ;;  %v2392_v25 = vld [vmem:[#allocation3 + $0x1e7] sm:$0xff] }
 0x3c1   : > { %v5833_v16 = vpop.permute.xlu1 %5832 }
 0x3c2   : > { %3607 = vmatmul.mubr.f32.gmra.mrb[48].mxu1 %v3046_v4  ;;  %v3055_v4 = vsel %vm405_vm0, %v2318_v40, %v5825_v12  ;;  %v5834_v0 = vunpack.i.l.bf16 %v5833_v16  ;;  %v3088_v41 = vsel %vm405_vm0, %v7945_v30, %v5829_v19  ;;  %v5835_v21 = vunpack.i.h.bf16 %v5833_v16  ;;  %v2327_v19 = vld [vmem:[#allocation3 + $0x1c8] sm:$0xff] }
 0x3c3   : > { %3611 = vmatprep.mubr.f32.mxu1 %v3079_v44  ;;  %v5838_v44 = vpop.permute.xlu0 %5837  ;;  %v3056_v13 = vsel %vm405_vm0, %v2319_v5, %v5830_v36  ;;  %v2393_v40 = vld [vmem:[#allocation3 + $0x1ef] sm:$0xff] }
 0x3c4   : > { %v3089_v43 = vsel %vm405_vm0, %v7951_v20, %v5834_v0  ;;  %v5840_v23 = vunpack.i.h.bf16 %v5838_v44 }
 0x3c5   : > { %v5843_v51 = vpop.permute.xlu1 %5842 }
 0x3c6   : > { %3612 = vmatmul.mubr.f32.gmra.mrb[50].mxu1 %v3047_v31  ;;  %v5839_v31 = vunpack.i.l.bf16 %v5838_v44  ;;  %v5844_v52 = vunpack.i.l.bf16 %v5843_v51  ;;  %v3058_v57 = vsel %vm405_vm0, %v2321_v10, %v5840_v23  ;;  %v2396_v10 = vld [vmem:[#allocation3 + $0x227] sm:$0xff] }
 0x3c7   : > { %3616 = vmatprep.mubr.f32.mxu1 %v3080_v56  ;;  %v2320_v56 = vld [vmem:[#allocation3 + $0x150] sm:$0xff] }
 0x3c8   : > { %v3057_v8 = vsel %vm405_vm0, %v2320_v56, %v5835_v21  ;;  %v3090_v30 = vsel %vm405_vm0, %v7957_v9, %v5839_v31  ;;  %v3091_v20 = vsel %vm405_vm0, %v7963_v18, %v5844_v52  ;;  %v2394_v21 = vld [vmem:[#allocation3 + $0x207] sm:$0xff] }
 0x3c9   : > { %v5853_v29 = vpop.permute.xlu1 %5852 }
 0x3ca   : > { %3617 = vmatmul.mubr.f32.gmra.mrb[52].mxu1 %v3048_v35  ;;  %v5848_v35 = vpop.permute.xlu0 %5847  ;;  %v5854_v14 = vunpack.i.l.bf16 %v5853_v29 }
 0x3cb   : > { %3621 = vmatprep.mubr.f32.mxu1 %v3081_v2  ;;  %v5845_v2 = vunpack.i.h.bf16 %v5843_v51  ;;  %v5849_v24 = vunpack.i.l.bf16 %v5848_v35  ;;  %v5850_v55 = vunpack.i.h.bf16 %v5848_v35  ;;  %v2329_v51 = vld [vmem:[#allocation3 + $0x1e8] sm:$0xff] }
 0x3cd   : > { %v3092_v9 = vsel %vm405_vm0, %v7969_v33, %v5849_v24  ;;  %v3060_v28 = vsel %vm405_vm0, %v2323_v47, %v5850_v55  ;;  %v5863_v39 = vpop.permute.xlu1 %5862  ;;  %v2431_v47 = vld [vmem:[#allocation3 + $0x51] sm:$0xff] }
 0x3ce   : > { %3622 = vmatmul.mubr.f32.gmra.mrb[54].mxu1 %v3049_v1  ;;  %v2322_v1 = vld [vmem:[#allocation3 + $0x170] sm:$0xff]  ;;  %v5858_v58 = vpop.permute.xlu0 %5857  ;;  %v5864_v49 = vunpack.i.l.bf16 %v5863_v39 }
 0x3cf   : > { %3626 = vmatprep.mubr.f32.mxu1 %v3082_v37  ;;  %v3059_v37 = vsel %vm405_vm0, %v2322_v1, %v5845_v2  ;;  %v5859_v34 = vunpack.i.l.bf16 %v5858_v58  ;;  %v2330_v2 = vld [vmem:[#allocation3 + $0x1f0] sm:$0xff] }
 0x3d0   : > { %v2397_v1 = vld [vmem:[#allocation3 + $0x22f] sm:$0xff] }
 0x3d1   : > { %v5873_v11 = vpop.permute.xlu1 %5872 }
 0x3d2   : > { %3627 = vmatmul.mubr.f32.gmra.mrb[56].mxu1 %v3050_v54  ;;  %v5855_v54 = vunpack.i.h.bf16 %v5853_v29  ;;  %v5868_v61 = vpop.permute.xlu0 %5867  ;;  %v5874_v7 = vunpack.i.l.bf16 %v5873_v11 }
 0x3d3   : > { %3631 = vmatprep.mubr.f32.mxu1 %v3083_v38  ;;  %v2389_v38 = vld [vmem:[#allocation3 + $0x1af] sm:$0xff]  ;;  %v5869_v63 = vunpack.i.l.bf16 %v5868_v61  ;;  %v5870_v15 = vunpack.i.h.bf16 %v5868_v61 }
 0x3d4   : > { %v3093_v18 = vsel %vm405_vm0, %v2389_v38, %v5854_v14  ;;  %v3061_v27 = vsel %vm405_vm0, %v2324_v62, %v5855_v54  ;;  %v2432_v54 = vld [vmem:[#allocation3 + $0x69] sm:$0xff]  ;;  %v2435_v38 = vld [vmem:[#allocation3 + $0x91] sm:$0xff] }
 0x3d5   : > { %v3096_v12 = vsel %vm405_vm0, %v2392_v25, %v5869_v63  ;;  %v3064_v16 = vsel %vm405_vm0, %v2327_v19, %v5870_v15  ;;  %v5883_v0 = vpop.permute.xlu1 %5882  ;;  %v2440_v62 = vld [vmem:[#allocation3 + $0xe9] sm:$0xff]  ;;  %v2451_v63 = vld [vmem:[#allocation3 + $0x191] sm:$0xff] }
 0x3d6   : > { %3632 = vmatmul.mubr.f32.gmra.mrb[58].mxu1 %v3051_v53  ;;  %v5860_v53 = vunpack.i.h.bf16 %v5858_v58  ;;  %v5885_v56 = vunpack.i.h.bf16 %v5883_v0  ;;  %v2430_v58 = vld [vmem:[#allocation3 + $0x49] sm:$0xff]  ;;  %v2455_v15 = vld [vmem:[#allocation3 + $0x1d1] sm:$0xff] }
 0x3d7   : > { %3636 = vmatprep.mubr.f32.mxu1 %v3084_v17  ;;  %v2390_v17 = vld [vmem:[#allocation3 + $0x1c7] sm:$0xff]  ;;  %v2457_v25 = vld [vmem:[#allocation3 + $0x1f1] sm:$0xff] }
 0x3d8   : > { %v3094_v33 = vsel %vm405_vm0, %v2390_v17, %v5859_v34  ;;  %v3062_v22 = vsel %vm405_vm0, %v2325_v42, %v5860_v53  ;;  %v3067_v24 = vsel %vm405_vm0, %v2330_v2, %v5885_v56  ;;  %v2437_v34 = vld [vmem:[#allocation3 + $0xb1] sm:$0xff]  ;;  %v2446_v61 = vld [vmem:[#allocation3 + $0x149] sm:$0xff]  ;;  %v4056_v56 = vld [vmem:[%s8422_s5] sm:$0xff] }
 0x3d9   : > { %v5893_v35 = vpop.permute.xlu1 %5892  ;;  %v2441_v53 = vld [vmem:[#allocation3 + $0xf1] sm:$0xff] }
 0x3da   : > { %3637 = vmatmul.mubr.f32.gmra.mrb[60].mxu1 %v3052_v45  ;;  %v5865_v45 = vunpack.i.h.bf16 %v5863_v39  ;;  %v5895_v55 = vunpack.i.h.bf16 %v5893_v35  ;;  %v2439_v39 = vld [vmem:[#allocation3 + $0xd1] sm:$0xff] }
 0x3db   : > { %3641 = vmatprep.mubr.f32.mxu1 %v3085_v32  ;;  %v2391_v32 = vld [vmem:[#allocation3 + $0x1cf] sm:$0xff] }
 0x3dc   : > { %v3095_v59 = vsel %vm405_vm0, %v2391_v32, %v5864_v49  ;;  %v2443_v17 = vld [vmem:[#allocation3 + $0x111] sm:$0xff]  ;;  %v2444_v49 = vld [vmem:[#allocation3 + $0x129] sm:$0xff] }
 0x3dd   : > { %v2447_v42 = vld [vmem:[#allocation3 + $0x151] sm:$0xff]  ;;  %v2450_v32 = vld [vmem:[#allocation3 + $0x189] sm:$0xff] }
 0x3de   : > { %3642 = vmatmul.mubr.f32.gmra.mrb[62].mxu1 %v3053_v26  ;;  %v2326_v26 = vld [vmem:[#allocation3 + $0x1b0] sm:$0xff] }
 0x3df   : > { %3646 = vmatprep.mubr.f32.mxu1 %v3086_v6  ;;  %v3063_v6 = vsel %vm405_vm0, %v2326_v26, %v5865_v45  ;;  %v2448_v45 = vld [vmem:[#allocation3 + $0x169] sm:$0xff]  ;;  %v2461_v19 = vld [vmem:[#allocation3 + $0x231] sm:$0xff] }
 0x3e0   : > { %v2454_v26 = vld [vmem:[#allocation3 + $0x1c9] sm:$0xff] }
 0x3e2   : > { %3647 = vmatmul.mubr.f32.gmra.mrb[64].mxu1 %v3054_v60  ;;  %v5878_v60 = vpop.permute.xlu0 %5877 }
 0x3e3   : > { %3651 = vmatprep.mubr.f32.mxu1 %v3087_v50  ;;  %v5875_v50 = vunpack.i.h.bf16 %v5873_v11  ;;  %v5879_v36 = vunpack.i.l.bf16 %v5878_v60  ;;  %v5880_v44 = vunpack.i.h.bf16 %v5878_v60  ;;  %v2453_v11 = vld [vmem:[#allocation3 + $0x1b1] sm:$0xff] }
 0x3e4   : > { %v2459_v60 = vld [vmem:[#allocation3 + $0x211] sm:$0xff] }
 0x3e5   : > { %v3098_v31 = vsel %vm405_vm0, %v2394_v21, %v5879_v36  ;;  %v3066_v23 = vsel %vm405_vm0, %v2329_v51, %v5880_v44 }
 0x3e6   : > { %3652 = vmatmul.mubr.f32.gmra.mrb[66].mxu1 %v3055_v4  ;;  %v3097_v4 = vsel %vm405_vm0, %v2393_v40, %v5874_v7  ;;  %v2458_v7 = vld [vmem:[#allocation3 + $0x209] sm:$0xff] }
 0x3e7   : > { %3656 = vmatprep.mubr.f32.mxu1 %v3088_v41  ;;  %v2328_v41 = vld [vmem:[#allocation3 + $0x1d0] sm:$0xff] }
 0x3e8   : > { %v3065_v5 = vsel %vm405_vm0, %v2328_v41, %v5875_v50 }
 0x3ea   : > { %3657 = vmatmul.mubr.f32.gmra.mrb[68].mxu1 %v3056_v13  ;;  %v5884_v13 = vunpack.i.l.bf16 %v5883_v0 }
 0x3eb   : > { %3661 = vmatprep.mubr.f32.mxu1 %v3089_v43  ;;  %v5888_v43 = vpop.permute.xlu0 %5887 }
 0x3ec   : > { %v5889_v52 = vunpack.i.l.bf16 %v5888_v43 }
 0x3ee   : > { %3662 = vmatmul.mubr.f32.gmra.mrb[70].mxu1 %v3057_v8  ;;  %v2395_v8 = vld [vmem:[#allocation3 + $0x20f] sm:$0xff]  ;;  %v3100_v29 = vsel %vm405_vm0, %v2396_v10, %v5889_v52 }
 0x3ef   : > { %3666 = vmatprep.mubr.f32.mxu1 %v3090_v30  ;;  %v3099_v30 = vsel %vm405_vm0, %v2395_v8, %v5884_v13 }
 0x3f2   : > { %3667 = vmatmul.mubr.f32.gmra.mrb[72].mxu1 %v3058_v57  ;;  %v5890_v57 = vunpack.i.h.bf16 %v5888_v43 }
 0x3f3   : > { %3671 = vmatprep.mubr.f32.mxu1 %v3091_v20  ;;  %v5894_v20 = vunpack.i.l.bf16 %v5893_v35 }
 0x3f5   : > { %v3101_v14 = vsel %vm405_vm0, %v2397_v1, %v5894_v20 }
 0x3f6   : > { %3672 = vmatmul.mubr.f32.gmra.mrb[74].mxu1 %v3059_v37  ;;  %v3068_v37 = vsel %vm405_vm0, %v7870_v46, %v5890_v57  ;;  %v2434_v46 = vld [vmem:[#allocation3 + $0x89] sm:$0xff] }
 0x3f7   : > { %3676 = vmatprep.mubr.f32.mxu1 %v3092_v9  ;;  %v3069_v9 = vsel %vm405_vm0, %v7897_v48, %v5895_v55  ;;  %v2436_v48 = vld [vmem:[#allocation3 + $0xa9] sm:$0xff] }
 0x3fa   : > { %3677 = vmatmul.mubr.f32.gmra.mrb[76].mxu1 %v3060_v28  ;;  %v2433_v28 = vld [vmem:[#allocation3 + $0x71] sm:$0xff] }
 0x3fb   : > { %3681 = vmatprep.mubr.f32.mxu1 %v3093_v18  ;;  %v2438_v18 = vld [vmem:[#allocation3 + $0xc9] sm:$0xff] }
 0x3fe   : > { %3682 = vmatmul.mubr.f32.gmra.mrb[78].mxu1 %v3061_v27  ;;  %v2442_v27 = vld [vmem:[#allocation3 + $0x109] sm:$0xff] }
 0x3ff   : > { %3686 = vmatprep.mubr.f32.mxu1 %v3094_v33  ;;  %v2445_v33 = vld [vmem:[#allocation3 + $0x131] sm:$0xff] }
 0x402   : > { %3687 = vmatmul.mubr.f32.gmra.mrb[80].mxu1 %v3062_v22  ;;  %v2449_v22 = vld [vmem:[#allocation3 + $0x171] sm:$0xff] }
 0x403   : > { %3691 = vmatprep.mubr.f32.mxu1 %v3095_v59  ;;  %v2452_v59 = vld [vmem:[#allocation3 + $0x1a9] sm:$0xff] }
 0x406   : > { %3692 = vmatmul.mubr.f32.gmra.mrb[82].mxu1 %v3063_v6  ;;  %v2456_v6 = vld [vmem:[#allocation3 + $0x1e9] sm:$0xff] }
 0x407   : > { %3696 = vmatprep.mubr.f32.mxu1 %v3096_v12  ;;  %v2460_v12 = vld [vmem:[#allocation3 + $0x229] sm:$0xff] }
 0x40a   : > { %3697 = vmatmul.mubr.f32.gmra.mrb[84].mxu1 %v3064_v16 }
 0x40b   : > { %3701 = vmatprep.mubr.f32.mxu1 %v3097_v4 }
 0x40e   : > { %3702 = vmatmul.mubr.f32.gmra.mrb[86].mxu1 %v3065_v5 }
 0x40f   : > { %3706 = vmatprep.mubr.f32.mxu1 %v3098_v31 }
 0x412   : > { %3707 = vmatmul.mubr.f32.gmra.mrb[88].mxu1 %v3066_v23  ;;  %v4057_v23 = vld [vmem:[%s8422_s5 + $0x8] sm:$0xff] }
 0x413   : > { %3711 = vmatprep.mubr.f32.mxu1 %v3099_v30  ;;  %v5190_v52 = vpack.c.bf16 %v4057_v23, %v4056_v56 }
 0x416   : > { %3712 = vmatmul.mubr.f32.gmra.mrb[90].mxu1 %v3067_v24 }
 0x417   : > { %3716 = vmatprep.mubr.f32.mxu1 %v3100_v29 }
 0x41a   : > { %3717 = vmatmul.mubr.f32.gmra.mrb[92].mxu1 %v3068_v37 }
 0x41b   : > { %3721 = vmatprep.mubr.f32.mxu1 %v3101_v14 }
 0x41e   : > { %3722 = vmatmul.mubr.f32.gmra.mrb[94].mxu1 %v3069_v9 }
 0x41f   : > { %4789 = vmatprep.mubr.msk.f32.mxu1 %vm405_vm0, %v2430_v58 }
 0x422   : > { %4790 = vmatmul.mubr.msk.f32.vlgmr.msra.gmra.mrb[96].mxu1 %vm405_vm0, %v2431_v47  ;;  %v4058_v47 = vld [vmem:[%s8422_s5 + $0x10] sm:$0xff] }
 0x423   : > { %4792 = vmatprep.mubr.msk.f32.mxu1 %vm405_vm0, %v2432_v54  ;;  %5191 = vmatpush3.bf16.msra.mxu1 %v5190_v52  ;;  %v4059_v54 = vld [vmem:[%s8422_s5 + $0x18] sm:$0xff] }
 0x424   : > { %5192 = vmatprep.subr.bf16.mxu1 %v5944_v3 }
 0x426   : > { %4793 = vmatmul.mubr.msk.f32.gmra.mrb[98].mxu1 %vm405_vm0, %v2433_v28 }
 0x427   : > { %4795 = vmatprep.mubr.msk.f32.mxu1 %vm405_vm0, %v2434_v46  ;;  %v5193_v46 = vpack.c.bf16 %v4059_v54, %v4058_v47 }
 0x429   : > { %5194 = vmatpush3.bf16.msra.mxu1 %v5193_v46 }
 0x42a   : > { %4796 = vmatmul.mubr.msk.f32.gmra.mrb[100].mxu1 %vm405_vm0, %v2435_v38 }
 0x42b   : > { %4798 = vmatprep.mubr.msk.f32.mxu1 %vm405_vm0, %v2436_v48  ;;  %v8173_v48 = vld [vmem:[#allocation2 + $0x8] sm:$0xff] }
 0x42c   : > { %4848 = vmatprep.subr.mxu1 %v8173_v48 }
 0x42e   : > { %4799 = vmatmul.mubr.msk.f32.gmra.mrb[102].mxu1 %vm405_vm0, %v2437_v34 }
 0x42f   : > { %4801 = vmatprep.mubr.msk.f32.mxu1 %vm405_vm0, %v2438_v18 }
 0x432   : > { %4802 = vmatmul.mubr.msk.f32.gmra.mrb[104].mxu1 %vm405_vm0, %v2439_v39 }
 0x433   : > { %4804 = vmatprep.mubr.msk.f32.mxu1 %vm405_vm0, %v2440_v62 }
 0x436   : > { %4805 = vmatmul.mubr.msk.f32.gmra.mrb[106].mxu1 %vm405_vm0, %v2441_v53 }
 0x437   : > { %4807 = vmatprep.mubr.msk.f32.mxu1 %vm405_vm0, %v2442_v27 }
 0x43a   : > { %4808 = vmatmul.mubr.msk.f32.gmra.mrb[108].mxu1 %vm405_vm0, %v2443_v17 }
 0x43b   : > { %4810 = vmatprep.mubr.msk.f32.mxu1 %vm405_vm0, %v2444_v49 }
 0x43e   : > { %4811 = vmatmul.mubr.msk.f32.gmra.mrb[110].mxu1 %vm405_vm0, %v2445_v33 }
 0x43f   : > { %4813 = vmatprep.mubr.msk.f32.mxu1 %vm405_vm0, %v2446_v61 }
 0x442   : > { %4814 = vmatmul.mubr.msk.f32.gmra.mrb[112].mxu1 %vm405_vm0, %v2447_v42 }
 0x443   : > { %4816 = vmatprep.mubr.msk.f32.mxu1 %vm405_vm0, %v2448_v45 }
 0x446   : > { %4817 = vmatmul.mubr.msk.f32.gmra.mrb[114].mxu1 %vm405_vm0, %v2449_v22 }
 0x447   : > { %4819 = vmatprep.mubr.msk.f32.mxu1 %vm405_vm0, %v2450_v32 }
 0x44a   : > { %4820 = vmatmul.mubr.msk.f32.gmra.mrb[116].mxu1 %vm405_vm0, %v2451_v63 }
 0x44b   : > { %4822 = vmatprep.mubr.msk.f32.mxu1 %vm405_vm0, %v2452_v59 }
 0x44e   : > { %4823 = vmatmul.mubr.msk.f32.gmra.mrb[118].mxu1 %vm405_vm0, %v2453_v11 }
 0x44f   : > { %4825 = vmatprep.mubr.msk.f32.mxu1 %vm405_vm0, %v2454_v26 }
 0x452   : > { %4826 = vmatmul.mubr.msk.f32.gmra.mrb[120].mxu1 %vm405_vm0, %v2455_v15 }
 0x453   : > { %4828 = vmatprep.mubr.msk.f32.mxu1 %vm405_vm0, %v2456_v6 }
 0x456   : > { %4829 = vmatmul.mubr.msk.f32.gmra.mrb[122].mxu1 %vm405_vm0, %v2457_v25 }
 0x457   : > { %4831 = vmatprep.mubr.msk.f32.mxu1 %vm405_vm0, %v2458_v7 }
 0x45a   : > { %4832 = vmatmul.mubr.msk.f32.gmra.mrb[124].mxu1 %vm405_vm0, %v2459_v60 }
 0x45b   : > { %4834 = vmatprep.mubr.msk.f32.mxu1 %vm405_vm0, %v2460_v12 }
 0x45e   : > { %4835 = vmatmul.mubr.msk.f32.gmra.mrb[126].mxu1 %vm405_vm0, %v2461_v19 }
 0x45f   : > { %4845 = vmatprep.mubr.msk.f32.mxu1 %vm5947_vm1, %v8173_v48 }
 0x475   : > { %v8128_v50 = vpop.f32.mrb[32].mxu1 }
 0x476   : > { %v3570_v16 = vpop.f32.mrb[33].mxu1 }
 0x479   : > { %v8130_v40 = vpop.f32.mrb[34].mxu1 }
 0x47a   : > { %v3575_v36 = vpop.f32.mrb[35].mxu1 }
 0x47d   : > { %v8132_v4 = vpop.f32.mrb[36].mxu1 }
 0x47e   : > { %v3580_v0 = vpop.f32.mrb[37].mxu1 }
 0x481   : > { %v8134_v41 = vpop.f32.mrb[38].mxu1 }
 0x482   : > { %v3585_v44 = vpop.f32.mrb[39].mxu1 }
 0x485   : > { %v8136_v5 = vpop.f32.mrb[40].mxu1 }
 0x486   : > { %v3590_v21 = vpop.f32.mrb[41].mxu1 }
 0x489   : > { %v8138_v13 = vpop.f32.mrb[42].mxu1 }
 0x48a   : > { %v3595_v31 = vpop.f32.mrb[43].mxu1 }
 0x48d   : > { %v8140_v43 = vpop.f32.mrb[44].mxu1 }
 0x48e   : > { %v3600_v51 = vpop.f32.mrb[45].mxu1 }
 0x48f   : > { %v8213_v51 = vld [vmem:[%s8421_s4] ss:$0 sm:$0xff] }
 0x490   : > { %v5276_v23 = vadd.f32 %v8213_v51, %v8130_v40  ;;  %v5275_v52 = vadd.f32 %v8213_v51, %v8128_v50 }
 0x491   : > { %v8148_v8 = vpop.f32.mrb[46].mxu1 }
 0x492   : > { %v3605_v30 = vpop.f32.mrb[47].mxu1 }
 0x495   : > { %v8151_v35 = vpop.f32.mrb[48].mxu1 }
 0x496   : > { %v3610_v10 = vpop.f32.mrb[49].mxu1 }
 0x499   : > { %v8153_v2 = vpop.f32.mrb[50].mxu1 }
 0x49a   : > { %v3615_v57 = vpop.f32.mrb[51].mxu1 }
 0x49d   : > { %v8155_v24 = vpop.f32.mrb[52].mxu1 }
 0x49e   : > { %v3620_v20 = vpop.f32.mrb[53].mxu1 }
 0x4a1   : > { %v8157_v29 = vpop.f32.mrb[54].mxu1 }
 0x4a2   : > { %v3625_v1 = vpop.f32.mrb[55].mxu1 }
 0x4a3   : > { %v5278_v1 = vadd.f32 %v8213_v51, %v8134_v41 }
 0x4a5   : > { %v8159_v55 = vpop.f32.mrb[56].mxu1 }
 0x4a6   : > { %v3630_v37 = vpop.f32.mrb[57].mxu1 }
 0x4a9   : > { %v8161_v14 = vpop.f32.mrb[58].mxu1 }
 0x4aa   : > { %v3635_v9 = vpop.f32.mrb[59].mxu1 }
 0x4ab   : > { %v5277_v9 = vadd.f32 %v8213_v51, %v8132_v4 }
 0x4ad   : > { %v8163_v58 = vpop.f32.mrb[60].mxu1 }
 0x4ae   : > { %v3640_v3 = vpop.f32.mrb[61].mxu1 }
 0x4b1   : > { %v8171_v28 = vpop.f32.mrb[62].mxu1 }
 0x4b2   : > { %v3645_v38 = vpop.f32.mrb[63].mxu1 }
 0x4b5   : > { %v8176_v34 = vpop.f32.mrb[64].mxu1 }
 0x4b6   : > { %v3650_v18 = vpop.f32.mrb[65].mxu1 }
 0x4b9   : > { %v8178_v39 = vpop.f32.mrb[66].mxu1 }
 0x4ba   : > { %v3655_v62 = vpop.f32.mrb[67].mxu1 }
 0x4bb   : > { %v5280_v62 = vadd.f32 %v8213_v51, %v8138_v13  ;;  %v5281_v13 = vadd.f32 %v8213_v51, %v8140_v43  ;;  %v5283_v43 = vadd.f32 %v8213_v51, %v8151_v35  ;;  %v5285_v35 = vadd.f32 %v8213_v51, %v8155_v24 }
 0x4bc   : > { %v5287_v24 = vadd.f32 %v8213_v51, %v8159_v55  ;;  %v5289_v55 = vadd.f32 %v8213_v51, %v8163_v58  ;;  %v5291_v58 = vadd.f32 %v8213_v51, %v8176_v34 }
 0x4bd   : > { %v8180_v53 = vpop.f32.mrb[68].mxu1 }
 0x4be   : > { %v3660_v27 = vpop.f32.mrb[69].mxu1  ;;  %v5293_v34 = vadd.f32 %v8213_v51, %v8180_v53 }
 0x4c1   : > { %v8182_v17 = vpop.f32.mrb[70].mxu1 }
 0x4c2   : > { %v3665_v49 = vpop.f32.mrb[71].mxu1 }
 0x4c3   : > { %v5279_v49 = vadd.f32 %v8213_v51, %v8136_v5 }
 0x4c5   : > { %v8184_v33 = vpop.f32.mrb[72].mxu1 }
 0x4c6   : > { %v3670_v61 = vpop.f32.mrb[73].mxu1  ;;  %v5295_v53 = vadd.f32 %v8213_v51, %v8184_v33 }
 0x4c9   : > { %v8186_v42 = vpop.f32.mrb[74].mxu1 }
 0x4ca   : > { %v3675_v45 = vpop.f32.mrb[75].mxu1 }
 0x4cd   : > { %v8190_v22 = vpop.f32.mrb[76].mxu1 }
 0x4ce   : > { %v3680_v32 = vpop.f32.mrb[77].mxu1  ;;  %v5297_v33 = vadd.f32 %v8213_v51, %v8190_v22 }
 0x4d1   : > { %v8192_v63 = vpop.f32.mrb[78].mxu1 }
 0x4d2   : > { %v3685_v59 = vpop.f32.mrb[79].mxu1 }
 0x4d5   : > { %v8194_v11 = vpop.f32.mrb[80].mxu1 }
 0x4d6   : > { %v3690_v26 = vpop.f32.mrb[81].mxu1  ;;  %v5299_v22 = vadd.f32 %v8213_v51, %v8194_v11 }
 0x4d9   : > { %v8196_v15 = vpop.f32.mrb[82].mxu1 }
 0x4da   : > { %v3695_v6 = vpop.f32.mrb[83].mxu1 }
 0x4dd   : > { %v8198_v25 = vpop.f32.mrb[84].mxu1 }
 0x4de   : > { %v3700_v7 = vpop.f32.mrb[85].mxu1  ;;  %v5301_v11 = vadd.f32 %v8213_v51, %v8198_v25 }
 0x4df   : > { %v5282_v7 = vadd.f32 %v8213_v51, %v8148_v8  ;;  %v5284_v8 = vadd.f32 %v8213_v51, %v8153_v2  ;;  %v5286_v2 = vadd.f32 %v8213_v51, %v8157_v29  ;;  %v5288_v29 = vadd.f32 %v8213_v51, %v8161_v14 }
 0x4e0   : > { %v5290_v14 = vadd.f32 %v8213_v51, %v8171_v28  ;;  %v5292_v28 = vadd.f32 %v8213_v51, %v8178_v39  ;;  %v5294_v39 = vadd.f32 %v8213_v51, %v8182_v17  ;;  %v5296_v17 = vadd.f32 %v8213_v51, %v8186_v42 }
 0x4e1   : > { %v8200_v12 = vpop.f32.mrb[86].mxu1  ;;  %v5298_v42 = vadd.f32 %v8213_v51, %v8192_v63  ;;  %v5300_v63 = vadd.f32 %v8213_v51, %v8196_v15 }
 0x4e2   : > { %v3705_v60 = vpop.f32.mrb[87].mxu1  ;;  %v5302_v15 = vadd.f32 %v8213_v51, %v8200_v12 }
 0x4e5   : > { %v8202_v19 = vpop.f32.mrb[88].mxu1 }
 0x4e6   : > { %v3710_v16 = vpop.f32.mrb[89].mxu1  ;;  %v5303_v25 = vadd.f32 %v8213_v51, %v8202_v19 }
 0x4e9   : > { %v8204_v36 = vpop.f32.mrb[90].mxu1 }
 0x4ea   : > { %v3715_v0 = vpop.f32.mrb[91].mxu1  ;;  %v5304_v12 = vadd.f32 %v8213_v51, %v8204_v36 }
 0x4ed   : > { %v8206_v44 = vpop.f32.mrb[92].mxu1 }
 0x4ee   : > { %v3720_v21 = vpop.f32.mrb[93].mxu1 }
 0x4f1   : > { %v8208_v31 = vpop.f32.mrb[94].mxu1 }
 0x4f2   : > { %v3725_v56 = vpop.f32.mrb[95].mxu1 }
 0x4f5   : > { %v4791_v30 = vpop.f32.mrb[96].mxu1 }
 0x4f6   : > { %v3799_v10 = vadd.f32 %v5276_v23, %v4791_v30  ;;  %v3793_v57 = vpop.f32.mrb[97].mxu1 }
 0x4f7   : > { %v3794_v20 = vadd.f32 %v5275_v52, %v3793_v57 }
 0x4f8   : > { %v3953_v37 = vmax.f32 %v3799_v10, 0.0 }
 0x4f9   : > { %v3952_v3 = vmax.f32 %v3794_v20, 0.0  ;;  %v4794_v47 = vpop.f32.mrb[98].mxu1 }
 0x4fa   : > { %v3986_v54 = vsel %vm3984_vm2, %v3953_v37, 0.0  ;;  %v3809_v40 = vadd.f32 %v5278_v1, %v4794_v47  ;;  %v3803_v46 = vpop.f32.mrb[99].mxu1 }
 0x4fb   : > { %v3985_v50 = vsel %vm3984_vm2, %v3952_v3, 0.0  ;;  %v8225_v38 = vpack.c.bf16 %v3953_v37, %v3952_v3  ;;  %v3804_v18 = vadd.f32 %v5277_v9, %v3803_v46 }
 0x4fc   : > { %v3987_v27 = vadd.f32 %v3986_v54, %v3985_v50  ;;  %v3955_v41 = vmax.f32 %v3809_v40, 0.0 }
 0x4fd   : > { %v3954_v4 = vmax.f32 %v3804_v18, 0.0  ;;  %v4797_v61 = vpop.f32.mrb[100].mxu1 }
 0x4fe   : > { %v3819_v45 = vadd.f32 %v5280_v62, %v4797_v61  ;;  %v3813_v32 = vpop.f32.mrb[101].mxu1  ;;  %v3990_v0 = vsel %vm3984_vm2, %v3955_v41, 0.0 }
 0x4ff   : > { %v3988_v59 = vsel %vm3984_vm2, %v3954_v4, 0.0  ;;  %v8232_v26 = vpack.c.bf16 %v3955_v41, %v3954_v4  ;;  %v3814_v6 = vadd.f32 %v5279_v49, %v3813_v32 }
 0x500   : > { %v3989_v60 = vadd.f32 %v3988_v59, %v3987_v27  ;;  %v3957_v16 = vmax.f32 %v3819_v45, 0.0 }
 0x501   : > { %v3956_v5 = vmax.f32 %v3814_v6, 0.0  ;;  %v4800_v21 = vpop.f32.mrb[102].mxu1 }
 0x502   : > { %v3991_v56 = vadd.f32 %v3990_v0, %v3989_v60  ;;  %v3829_v23 = vadd.f32 %v5282_v7, %v4800_v21  ;;  %v3823_v52 = vpop.f32.mrb[103].mxu1  ;;  %v3994_v37 = vsel %vm3984_vm2, %v3957_v16, 0.0 }
 0x503   : > { %v3992_v30 = vsel %vm3984_vm2, %v3956_v5, 0.0  ;;  %v8240_v10 = vpack.c.bf16 %v3957_v16, %v3956_v5  ;;  %v3824_v57 = vadd.f32 %v5281_v13, %v3823_v52 }
 0x504   : > { %v3993_v20 = vadd.f32 %v3992_v30, %v3991_v56  ;;  %v3959_v1 = vmax.f32 %v3829_v23, 0.0 }
 0x505   : > { %v3958_v9 = vmax.f32 %v3824_v57, 0.0  ;;  %v4803_v3 = vpop.f32.mrb[104].mxu1 }
 0x506   : > { %v3995_v47 = vadd.f32 %v3994_v37, %v3993_v20  ;;  %v3839_v54 = vadd.f32 %v5284_v8, %v4803_v3  ;;  %v3833_v40 = vpop.f32.mrb[105].mxu1  ;;  %v3998_v41 = vsel %vm3984_vm2, %v3959_v1, 0.0 }
 0x507   : > { %v3996_v46 = vsel %vm3984_vm2, %v3958_v9, 0.0  ;;  %v8248_v50 = vpack.c.bf16 %v3959_v1, %v3958_v9  ;;  %v3834_v18 = vadd.f32 %v5283_v43, %v3833_v40 }
 0x508   : > { %v3997_v62 = vadd.f32 %v3996_v46, %v3995_v47  ;;  %v3961_v27 = vmax.f32 %v3839_v54, 0.0 }
 0x509   : > { %v3960_v49 = vmax.f32 %v3834_v18, 0.0  ;;  %v4806_v4 = vpop.f32.mrb[106].mxu1 }
 0x50a   : > { %v3999_v61 = vadd.f32 %v3998_v41, %v3997_v62  ;;  %v3849_v45 = vadd.f32 %v5286_v2, %v4806_v4  ;;  %v3843_v32 = vpop.f32.mrb[107].mxu1  ;;  %v4002_v13 = vsel %vm3984_vm2, %v3961_v27, 0.0 }
 0x50b   : > { %v4000_v59 = vsel %vm3984_vm2, %v3960_v49, 0.0  ;;  %v8256_v6 = vpack.c.bf16 %v3961_v27, %v3960_v49  ;;  %v3844_v7 = vadd.f32 %v5285_v35, %v3843_v32 }
 0x50c   : > { %v4001_v60 = vadd.f32 %v4000_v59, %v3999_v61  ;;  %v3963_v16 = vmax.f32 %v3849_v45, 0.0 }
 0x50d   : > { %v3962_v0 = vmax.f32 %v3844_v7, 0.0  ;;  %v4809_v5 = vpop.f32.mrb[108].mxu1 }
 0x50e   : > { %v4003_v21 = vadd.f32 %v4002_v13, %v4001_v60  ;;  %v3859_v56 = vadd.f32 %v5288_v29, %v4809_v5  ;;  %v3853_v23 = vpop.f32.mrb[109].mxu1  ;;  %v4006_v1 = vsel %vm3984_vm2, %v3963_v16, 0.0 }
 0x50f   : > { %v4004_v52 = vsel %vm3984_vm2, %v3962_v0, 0.0  ;;  %v8264_v30 = vpack.c.bf16 %v3963_v16, %v3962_v0  ;;  %v3854_v57 = vadd.f32 %v5287_v24, %v3853_v23 }
 0x510   : > { %v4005_v8 = vadd.f32 %v4004_v52, %v4003_v21  ;;  %v3965_v20 = vmax.f32 %v3859_v56, 0.0 }
 0x511   : > { %v3964_v43 = vmax.f32 %v3854_v57, 0.0  ;;  %v4812_v37 = vpop.f32.mrb[110].mxu1 }
 0x512   : > { %v4007_v9 = vadd.f32 %v4006_v1, %v4005_v8  ;;  %v3869_v3 = vadd.f32 %v5290_v14, %v4812_v37  ;;  %v3863_v47 = vpop.f32.mrb[111].mxu1  ;;  %v4010_v62 = vsel %vm3984_vm2, %v3965_v20, 0.0 }
 0x513   : > { %v4008_v54 = vsel %vm3984_vm2, %v3964_v43, 0.0  ;;  %v8272_v40 = vpack.c.bf16 %v3965_v20, %v3964_v43  ;;  %v3864_v46 = vadd.f32 %v5289_v55, %v3863_v47 }
 0x514   : > { %v4009_v18 = vadd.f32 %v4008_v54, %v4007_v9  ;;  %v3967_v2 = vmax.f32 %v3869_v3, 0.0 }
 0x515   : > { %v3966_v27 = vmax.f32 %v3864_v46, 0.0  ;;  %v4815_v35 = vpop.f32.mrb[112].mxu1 }
 0x516   : > { %v4011_v41 = vadd.f32 %v4010_v62, %v4009_v18  ;;  %v3879_v49 = vadd.f32 %v5292_v28, %v4815_v35  ;;  %v3873_v4 = vpop.f32.mrb[113].mxu1  ;;  %v4014_v29 = vsel %vm3984_vm2, %v3967_v2, 0.0 }
 0x517   : > { %v4012_v61 = vsel %vm3984_vm2, %v3966_v27, 0.0  ;;  %v8280_v45 = vpack.c.bf16 %v3967_v2, %v3966_v27  ;;  %v3874_v32 = vadd.f32 %v5291_v58, %v3873_v4 }
 0x518   : > { %v4013_v59 = vadd.f32 %v4012_v61, %v4011_v41  ;;  %v3969_v7 = vmax.f32 %v3879_v49, 0.0 }
 0x519   : > { %v3968_v60 = vmax.f32 %v3874_v32, 0.0  ;;  %v4818_v16 = vpop.f32.mrb[114].mxu1 }
 0x51a   : > { %v4015_v24 = vadd.f32 %v4014_v29, %v4013_v59  ;;  %v3889_v13 = vadd.f32 %v5294_v39, %v4818_v16  ;;  %v3883_v0 = vpop.f32.mrb[115].mxu1  ;;  %v4018_v57 = vsel %vm3984_vm2, %v3969_v7, 0.0 }
 0x51b   : > { %v4016_v5 = vsel %vm3984_vm2, %v3968_v60, 0.0  ;;  %v8288_v21 = vpack.c.bf16 %v3969_v7, %v3968_v60  ;;  %v3884_v56 = vadd.f32 %v5293_v34, %v3883_v0 }
 0x51c   : > { %v4017_v23 = vadd.f32 %v4016_v5, %v4015_v24  ;;  %v3971_v52 = vmax.f32 %v3889_v13, 0.0 }
 0x51d   : > { %v3970_v14 = vmax.f32 %v3884_v56, 0.0  ;;  %v4821_v8 = vpop.f32.mrb[116].mxu1 }
 0x51e   : > { %v4019_v20 = vadd.f32 %v4018_v57, %v4017_v23  ;;  %v3899_v55 = vadd.f32 %v5296_v17, %v4821_v8  ;;  %v3893_v1 = vpop.f32.mrb[117].mxu1  ;;  %v4022_v54 = vsel %vm3984_vm2, %v3971_v52, 0.0 }
 0x51f   : > { %v4020_v43 = vsel %vm3984_vm2, %v3970_v14, 0.0  ;;  %v8296_v37 = vpack.c.bf16 %v3971_v52, %v3970_v14  ;;  %v3894_v9 = vadd.f32 %v5295_v53, %v3893_v1 }
 0x520   : > { %v4021_v3 = vadd.f32 %v4020_v43, %v4019_v20  ;;  %v3973_v47 = vmax.f32 %v3899_v55, 0.0 }
 0x521   : > { %v3972_v46 = vmax.f32 %v3894_v9, 0.0  ;;  %v4824_v28 = vpop.f32.mrb[118].mxu1 }
 0x522   : > { %v4023_v18 = vadd.f32 %v4022_v54, %v4021_v3  ;;  %v3909_v2 = vadd.f32 %v5298_v42, %v4824_v28  ;;  %v3903_v58 = vpop.f32.mrb[119].mxu1  ;;  %v4026_v4 = vsel %vm3984_vm2, %v3973_v47, 0.0  ;;  %v5306_v54 = vadd.f32 %v8213_v51, %v8208_v31 }
 0x523   : > { %v4024_v62 = vsel %vm3984_vm2, %v3972_v46, 0.0  ;;  %v8304_v27 = vpack.c.bf16 %v3973_v47, %v3972_v46  ;;  %v3904_v35 = vadd.f32 %v5297_v33, %v3903_v58  ;;  %v5305_v28 = vadd.f32 %v8213_v51, %v8206_v44 }
 0x524   : > { %v4025_v41 = vadd.f32 %v4024_v62, %v4023_v18  ;;  %v3975_v49 = vmax.f32 %v3909_v2, 0.0 }
 0x525   : > { %v3974_v61 = vmax.f32 %v3904_v35, 0.0  ;;  %v4827_v32 = vpop.f32.mrb[120].mxu1 }
 0x526   : > { %v4027_v39 = vadd.f32 %v4026_v4, %v4025_v41  ;;  %v3919_v59 = vadd.f32 %v5300_v63, %v4827_v32  ;;  %v3913_v7 = vpop.f32.mrb[121].mxu1  ;;  %v4030_v13 = vsel %vm3984_vm2, %v3975_v49, 0.0 }
 0x527   : > { %v4028_v34 = vsel %vm3984_vm2, %v3974_v61, 0.0  ;;  %v8312_v29 = vpack.c.bf16 %v3975_v49, %v3974_v61  ;;  %v3914_v60 = vadd.f32 %v5299_v22, %v3913_v7 }
 0x528   : > { %v4029_v16 = vadd.f32 %v4028_v34, %v4027_v39  ;;  %v3977_v24 = vmax.f32 %v3919_v59, 0.0 }
 0x529   : > { %v3976_v0 = vmax.f32 %v3914_v60, 0.0  ;;  %v4830_v5 = vpop.f32.mrb[122].mxu1 }
 0x52a   : > { %v4031_v56 = vadd.f32 %v4030_v13, %v4029_v16  ;;  %v3929_v17 = vadd.f32 %v5302_v15, %v4830_v5  ;;  %v3923_v23 = vpop.f32.mrb[123].mxu1  ;;  %v4034_v20 = vsel %vm3984_vm2, %v3977_v24, 0.0 }
 0x52b   : > { %v4032_v52 = vsel %vm3984_vm2, %v3976_v0, 0.0  ;;  %v8320_v53 = vpack.c.bf16 %v3977_v24, %v3976_v0  ;;  %v3924_v57 = vadd.f32 %v5301_v11, %v3923_v23  ;;  %v4134_v0 = vld [vmem:[%s8423_s6] sm:$0x3] }
 0x52c   : > { %v4033_v14 = vadd.f32 %v4032_v52, %v4031_v56  ;;  %v3979_v8 = vmax.f32 %v3929_v17, 0.0 }
 0x52d   : > { %v3978_v55 = vmax.f32 %v3924_v57, 0.0  ;;  %v4833_v1 = vpop.f32.mrb[124].mxu1 }
 0x52e   : > { %v4035_v43 = vadd.f32 %v4034_v20, %v4033_v14  ;;  %v3939_v9 = vadd.f32 %v5304_v12, %v4833_v1  ;;  %v3933_v42 = vpop.f32.mrb[125].mxu1  ;;  %v4038_v19 = vsel %vm3984_vm2, %v3979_v8, 0.0 }
 0x52f   : > { %v4036_v3 = vsel %vm3984_vm2, %v3978_v55, 0.0  ;;  %v5225_v47 = vpack.c.bf16 %v3979_v8, %v3978_v55  ;;  %v3934_v33 = vadd.f32 %v5303_v25, %v3933_v42 }
 0x530   : > { %v4037_v36 = vadd.f32 %v4036_v3, %v4035_v43  ;;  %v3981_v46 = vmax.f32 %v3939_v9, 0.0 }
 0x531   : > { %v3980_v18 = vmax.f32 %v3934_v33, 0.0  ;;  %v4836_v2 = vpop.f32.mrb[126].mxu1 }
 0x532   : > { %v4039_v58 = vadd.f32 %v4038_v19, %v4037_v36  ;;  %v3949_v62 = vadd.f32 %v5306_v54, %v4836_v2  ;;  %v3943_v35 = vpop.f32.mrb[127].mxu1  ;;  %v4042_v31 = vsel %vm3984_vm2, %v3981_v46, 0.0 }
 0x533   : > { %v4040_v63 = vsel %vm3984_vm2, %v3980_v18, 0.0  ;;  %v5231_v41 = vpack.c.bf16 %v3981_v46, %v3980_v18  ;;  %v3944_v49 = vadd.f32 %v5305_v28, %v3943_v35 }
 0x534   : > { %v4041_v22 = vadd.f32 %v4040_v63, %v4039_v58  ;;  %v3983_v4 = vmax.f32 %v3949_v62, 0.0 }
 0x535   : > { %v3982_v61 = vmax.f32 %v3944_v49, 0.0 }
 0x536   : > { %v4043_v32 = vadd.f32 %v4042_v31, %v4041_v22  ;;  %v4046_v59 = vsel %vm3984_vm2, %v3983_v4, 0.0 }
 0x537   : > { %v4044_v39 = vsel %vm3984_vm2, %v3982_v61, 0.0  ;;  %v5237_v44 = vpack.c.bf16 %v3983_v4, %v3982_v61 }
 0x538   : > { %v4045_v51 = vadd.f32 %v4044_v39, %v4043_v32 }
 0x53a   : > { %v4047_v7 = vadd.f32 %v4046_v59, %v4045_v51 }
 0x53c   : > { %v4048_v34 = vrot.slane %v4047_v7, 4 }
 0x53e   : > { %v4049_v60 = vadd.f32 %v4048_v34, %v4047_v7 }
 0x540   : > { %v4050_v15 = vrot.slane %v4049_v60, 2 }
 0x542   : > { %v4051_v16 = vadd.f32 %v4050_v15, %v4049_v60 }
 0x544   : > { %v4052_v24 = vrot.slane %v4051_v16, 1 }
 0x546   : > { %v4053_v11 = vadd.f32 %v4052_v24, %v4051_v16 }
 0x548   : > { %v4055_v13 = vmul.f32 0.00390625, %v4053_v11 }
 0x54a   : > { %4846 = vmatmul.mubr.msk.f32.vlgmr.msra.gmra.mrb[128].mxu1 %vm3984_vm2, %v4055_v13 }
 0x54b   : > { %4849 = vmatpush3.msk.msra.mxu1 %vm4139_vm3, %v4134_v0  ;;  %4850 = vmatprep.mubr.msk.f32.mxu1 %vm5947_vm1, %v8173_v48  ;;  %v4227_v48 = vld [vmem:[%s8425_s8] sm:$0xff] }
 0x54c   : > { %5197 = vmatprep.subr.msk.bf16.mxu1 %vm8342_vm4, %v8288_v21 }
 0x61d   : > { %v4129_v56 = vpop.f32.mrb[128].mxu1 }
 0x61e   : > { %v4133_v17 = vmax.f32 %v4129_v56, 0.0  ;;  %v4847_v23 = vpop.f32.mrb[129].mxu1 }
 0x620   : > { %4851 = vmatmul.mubr.msk.f32.vlgmr.msra.gmra.mrb[130].mxu1 %vm4135_vm5, %v4133_v17 }
 0x621   : > { %5200 = vmatpush3.bf16.xpose.msk.msra.mxu1 %vm8342_vm4, %v8225_v38  ;;  %v4228_v38 = vld [vmem:[%s8425_s8 + $0x8] sm:$0x1] }
 0x622   : > { %5203 = vmatprep.subr.msk.bf16.mxu1 %vm8342_vm4, %v8296_v37 }
 0x629   : > { %5206 = vmatpush3.bf16.xpose.msk.msra.mxu1 %vm8342_vm4, %v8232_v26  ;;  %v5948_v26 = vmov 0  }
 0x62a   : > { %5209 = vmatprep.subr.msk.bf16.mxu1 %vm8342_vm4, %v8304_v27  ;;  %5896 = vset.pattern.permute.xlu0 %v5948_v26 }
 0x62b   : > { %5897 = vset.pattern.permute.xlu1 %v5948_v26  ;;  %4231 = vperm.xlu0 %5896, %v4227_v48  }
 0x62c   : > { %4236 = vperm.xlu1 %5897, %v4228_v38  }
 0x631   : > { %5212 = vmatpush3.bf16.xpose.msk.msra.mxu1 %vm8342_vm4, %v8240_v10 }
 0x632   : > { %5215 = vmatprep.subr.msk.bf16.mxu1 %vm8342_vm4, %v8312_v29  ;;  %v4219_v29 = vld [vmem:[%s8424_s7] sm:$0xff] }
 0x639   : > { %5218 = vmatpush3.bf16.xpose.msk.msra.mxu1 %vm8342_vm4, %v8248_v50 }
 0x63a   : > { %5221 = vmatprep.subr.msk.bf16.mxu1 %vm8342_vm4, %v8320_v53  ;;  %v4220_v53 = vld [vmem:[%s8424_s7 + $0x8] sm:$0x1] }
 0x641   : > { %5224 = vmatpush3.bf16.xpose.msk.msra.mxu1 %vm8342_vm4, %v8256_v6 }
 0x642   : > { %5227 = vmatprep.subr.msk.bf16.mxu1 %vm8342_vm4, %v5225_v47 }
 0x649   : > { %5230 = vmatpush3.bf16.xpose.msk.msra.mxu1 %vm8342_vm4, %v8264_v30 }
 0x64a   : > { %5233 = vmatprep.subr.msk.bf16.mxu1 %vm8342_vm4, %v5231_v41 }
 0x651   : > { %5236 = vmatpush3.bf16.xpose.msk.msra.mxu1 %vm8342_vm4, %v8272_v40 }
 0x652   : > { %5239 = vmatprep.subr.msk.bf16.mxu1 %vm8342_vm4, %v5237_v44 }
 0x659   : > { %5242 = vmatpush3.bf16.xpose.msk.msra.mxu1 %vm8342_vm4, %v8280_v45  ;;  %v4221_v45 = vlaneseq }
 0x65b   : > { %v4222_v21 = vshrl.u32 %v4221_v45, 7 }
 0x65d   : > { %v4223_v37 = vsub.s32 0, %v4222_v21 }
 0x6aa   : > { %v4232_v14 = vpop.permute.xlu0 %4231 }
 0x6ab   : > { %v4237_v1 = vpop.permute.xlu1 %4236 }
 0x6f3   : > { %v4209_v10 = vpop.f32.mrb[130].mxu1 }
 0x6f4   : > { %v4523_v50 = vmul.f32 -1.442695, %v4209_v10  ;;  %v4852_v6 = vpop.f32.mrb[131].mxu1 }
 0x6f6   : > { %5898 = vpow2.f32 %v4523_v50 }
 0x700   : > { %v5899_v30 = vpop.eup %5898 }
 0x701   : > { %v4216_v40 = vadd.f32 1.0, %v5899_v30 }
 0x703   : > { %5900 = vrcp.f32 %v4216_v40 }
 0x70d   : > { %v5901_v27 = vpop.eup %5900 }
 0x70e   : > { %v4224_v52 = vrot.slane %v5901_v27, %v4223_v37 }
 0x710   : > { %v4225_v57 = vmul.f32 %v4224_v52, %v4219_v29  ;;  %v4226_v12 = vmul.f32 %v4224_v52, %v4220_v53 }
 0x712   : > { %4689 = vmatprep.mubr.msk.f32.mxu1 %vm3984_vm2, %v4225_v57 }
 0x713   : > { %4690 = vmatmul.mubr.msk.f32.vlgmr.msra.gmra.mrb[132].mxu1 %vm3984_vm2, %v4225_v57 }
 0x714   : > { %4691 = vmatprep.mubr.msk.f32.mxu1 %vm3984_vm2, %v4226_v12 }
 0x717   : > { %4692 = vmatmul.mubr.msk.f32.gmra.mrb[134].mxu1 %vm3984_vm2, %v4226_v12 }
 0x7e6   : > { %v4407_v8 = vpop.f32.mrb[132].mxu1 }
 0x7e7   : > { %v4408_v25 = vadd.f32 %v4407_v8, %v4232_v14  ;;  %v4409_v20 = vpop.f32.mrb[133].mxu1 }
 0x7e8   : > { %v4410_v55 = vadd.f32 %v4409_v20, %v4232_v14 }
 0x7e9   : > { %4418 = vst [vmem:[%s332_s26] sm:$0xff] %v4408_v25 }
 0x7ea   : > { %4419 = vst [vmem:[%s332_s26 + $0x8] sm:$0xff] %v4410_v55  ;;  %v4413_v43 = vpop.f32.mrb[134].mxu1 }
 0x7eb   : > { %v4414_v9 = vadd.f32 %v4413_v43, %v4237_v1  ;;  %v4415_v42 = vpop.f32.mrb[135].mxu1 }
 0x7ec   : > { %v4416_v3 = vadd.f32 %v4415_v42, %v4237_v1 }
 0x7ed   : > { %4420 = vst [vmem:[%s332_s26 + $0x10] sm:$0x1] %v4414_v9 }
 0x7ee   : > { %4421 = vst [vmem:[%s332_s26 + $0x18] sm:$0x1] %v4416_v3 }
 0x7ef PF: > { %s19_s30 = sadd.s32 1, %s5942_s30  }
 0x7f0   : > { %p16_p4 = scmp.ge.s32.totalorder %s19_s30, 4  }
 0x7f2   :  { %18 = sbr.rel (!%p16_p4) target bundleno = 1 (0x1), region = 90 }

</bundles_post_ra>
